<compile_context>
chip_gen: v7x
topology: tpu7x:2x2x1
jax: 0.10.0
libtpu: 0.0.40
codegen_flags: <defaults>
</compile_context>

<pallas_src>
import functools

import jax
import jax.numpy as jnp
from jax.experimental import pallas as pl
from jax.experimental.pallas import tpu as pltpu

EPS = 1e-5  # PyTorch BatchNorm2d default eps


# --------------------------- in-kernel helpers ---------------------------

def _pad_hw(a):
    """Zero-pad H and W by 1 on each side: (tb,h,w,c) -> (tb,h+2,w+2,c)."""
    tb, h, w, c = a.shape
    zr = jnp.zeros((tb, 1, w, c), a.dtype)
    a = jnp.concatenate([zr, a, zr], axis=1)
    zc = jnp.zeros((tb, h + 2, 1, c), a.dtype)
    return jnp.concatenate([zc, a, zc], axis=2)


def _im2col3x3(ap):
    """(tb,h+2,w+2,c) halo'd activation -> (tb*h*w, 9*c) 3x3/s1/p1 patches."""
    tb, hp, wp, c = ap.shape
    h, w = hp - 2, wp - 2
    cols = [ap[:, dy:dy + h, dx:dx + w, :] for dy in range(3) for dx in range(3)]
    return jnp.concatenate(cols, axis=-1).reshape(tb * h * w, 9 * c)


def _maxpool2x2(y, tb, h, w, c):
    """(tb*h*w, c) rows in (b,h,w) order -> (tb, h//2, w//2, c) 2x2/s2 max."""
    y = y.reshape(tb * h * (w // 2), 2, c)
    y = jnp.maximum(y[:, 0, :], y[:, 1, :])          # pool along W (adjacent rows)
    y = y.reshape(tb * (h // 2), 2, w // 2, c)
    y = jnp.maximum(y[:, 0], y[:, 1])                # pool along H
    return y.reshape(tb, h // 2, w // 2, c)


# ------------------------------ fused kernel ------------------------------

def _fused_forward_kernel(x_ref, add_ref,
                          w1_ref, b1_ref, w2_ref, b2_ref, w3_ref, b3_ref,
                          wa_ref, ba_ref, w2i_ref, w2a_ref, bh_ref,
                          wo_ref, bo_ref, o_ref, *, tb, H, W):
    f32, bf16 = jnp.float32, jnp.bfloat16
    Hp, Wp = H // 2, W // 2

    # conv1 (1->32) + folded BN + ReLU: one dot with K=9.
    xe = x_ref[...].astype(bf16)[..., None]                  # (tb, H+2, W+2, 1)
    p1 = _im2col3x3(xe)                                      # (tb*H*W, 9)
    y1 = jnp.dot(p1, w1_ref[...], preferred_element_type=f32) + b1_ref[...]
    a1 = jnp.maximum(y1, 0.0).astype(bf16).reshape(tb, H, W, 32)

    # conv2 (32->64) + folded BN + ReLU + MaxPool2x2 (pool raw matmul output,
    # then a single bias+ReLU epilogue -- max commutes with it).
    p2 = _im2col3x3(_pad_hw(a1))                             # (tb*H*W, 288)
    y2 = jnp.dot(p2, w2_ref[...], preferred_element_type=f32)
    a2 = jnp.maximum(_maxpool2x2(y2, tb, H, W, 64) + b2_ref[...], 0.0)
    a2 = a2.astype(bf16)                                     # (tb, Hp, Wp, 64)

    # conv3 (64->128) + folded BN + ReLU + MaxPool2x2; Dropout(0.3) = identity.
    p3 = _im2col3x3(_pad_hw(a2))                             # (tb*Hp*Wp, 576)
    y3 = jnp.dot(p3, w3_ref[...], preferred_element_type=f32)
    a3 = jnp.maximum(_maxpool2x2(y3, tb, Hp, Wp, 128) + b3_ref[...], 0.0)
    # a3: (tb, H//4, W//4, 128) f32

    # fc_additional: Linear(A,128) + ReLU (Dropout(0.4) = identity).
    add = add_ref[...].reshape(tb, -1).astype(bf16)
    h = jnp.dot(add, wa_ref[...], preferred_element_type=f32) + ba_ref[...]
    h = jnp.maximum(h, 0.0)

    # fc_combined layer 1 on concat([img_flat, h]) == split-weight matmuls.
    # Image features stay in NHWC flatten order; w2i's columns were permuted
    # once in prepare_params() to match.
    img = a3.reshape(tb, -1).astype(bf16)
    z = (jnp.dot(img, w2i_ref[...], preferred_element_type=f32)
         + jnp.dot(h.astype(bf16), w2a_ref[...], preferred_element_type=f32)
         + bh_ref[...])
    z = jnp.maximum(z, 0.0)                                  # Dropout(0.5) = id
    out = (jnp.dot(z.astype(bf16), wo_ref[...], preferred_element_type=f32)
           + bo_ref[...])
    o_ref[...] = out.reshape(tb, 1, out.shape[-1])


# ---------------------- hoisted weight preparation ----------------------

def _fold_bn(w_pt, b, gamma, beta, mean, var):
    """Fold inference BatchNorm into conv weight/bias; weight -> (9*Cin, Cout)."""
    cout, cin = w_pt.shape[0], w_pt.shape[1]
    scale = gamma / jnp.sqrt(var + EPS)                      # (Cout,)
    w = jnp.transpose(w_pt, (2, 3, 1, 0)).reshape(9 * cin, cout)
    w = (w * scale[None, :]).astype(jnp.bfloat16)
    bias = ((b - mean) * scale + beta).reshape(1, cout).astype(jnp.float32)
    return w, bias


def prepare_params(params, H, W):
    """One-time weight prep (BN fold, transposes, bf16 casts, w2 column perm)."""
    Ho, Wo = H // 4, W // 4
    C3 = params['conv3_w'].shape[0]
    F = C3 * Ho * Wo

    w1, b1 = _fold_bn(params['conv1_w'], params['conv1_b'], params['bn1_gamma'],
                      params['bn1_beta'], params['bn1_mean'], params['bn1_var'])
    w2, b2 = _fold_bn(params['conv2_w'], params['conv2_b'], params['bn2_gamma'],
                      params['bn2_beta'], params['bn2_mean'], params['bn2_var'])
    w3, b3 = _fold_bn(params['conv3_w'], params['conv3_b'], params['bn3_gamma'],
                      params['bn3_beta'], params['bn3_mean'], params['bn3_var'])

    wa = params['w_add'].T.astype(jnp.bfloat16)                     # (A, 128)
    ba = params['b_add'].reshape(1, -1).astype(jnp.float32)

    # fc_combined layer 1: permute the image columns from PyTorch's NCHW
    # flatten order to the kernel's NHWC order, split image / additional parts.
    w2c = params['w2']                                              # (256, F+128)
    perm = jnp.transpose(jnp.arange(F).reshape(C3, Ho, Wo), (1, 2, 0)).reshape(F)
    w2i = jnp.take(w2c[:, :F], perm, axis=1).T.astype(jnp.bfloat16)  # (F, 256)
    w2a = w2c[:, F:].T.astype(jnp.bfloat16)                          # (128, 256)
    bh = params['b2'].reshape(1, -1).astype(jnp.float32)

    wo = params['w3'].T.astype(jnp.bfloat16)                         # (256, nc)
    bo = params['b3'].reshape(1, -1).astype(jnp.float32)

    return {'w1': w1, 'b1': b1, 'w2': w2, 'b2': b2, 'w3': w3, 'b3': b3,
            'wa': wa, 'ba': ba, 'w2i': w2i, 'w2a': w2a, 'bh': bh,
            'wo': wo, 'bo': bo}


# ------------------------------- forward -------------------------------

def _pick_batch_tile(B):
    # >=2 grid steps when possible (pipelining + both v7x TensorCores), with a
    # small per-step VMEM footprint.
    for tb in (8, 4, 2):
        if B % tb == 0 and B // tb >= 2:
            return tb
    return 1


def traffic_status_cnn_forward(images, additional_features, prep):
    if images.ndim == 4:                       # (B, 1, H, W) NCHW with C = 1
        images = images[:, 0]
    images = images.astype(jnp.float32)
    B, H, W = images.shape

    add = additional_features
    if add.ndim == 3 and add.shape[1] == 1:
        add = add[:, 0]
    A = add.shape[-1]
    nc = prep['bo'].shape[-1]

    xp = jnp.pad(images, ((0, 0), (1, 1), (1, 1)))          # (B, H+2, W+2)
    add3 = add.reshape(B, 1, A).astype(jnp.float32)

    TB = _pick_batch_tile(B)
    grid = (B // TB,)

    weights = (prep['w1'], prep['b1'], prep['w2'], prep['b2'], prep['w3'],
               prep['b3'], prep['wa'], prep['ba'], prep['w2i'], prep['w2a'],
               prep['bh'], prep['wo'], prep['bo'])

    in_specs = ([pl.BlockSpec((TB, H + 2, W + 2), lambda i: (i, 0, 0)),
                 pl.BlockSpec((TB, 1, A), lambda i: (i, 0, 0))]
                + [pl.BlockSpec(w.shape, lambda i: (0, 0)) for w in weights])

    out = pl.pallas_call(
        functools.partial(_fused_forward_kernel, tb=TB, H=H, W=W),
        out_shape=jax.ShapeDtypeStruct((B, 1, nc), jnp.float32),
        grid=grid,
        in_specs=in_specs,
        out_specs=pl.BlockSpec((TB, 1, nc), lambda i: (i, 0, 0)),
        compiler_params=pltpu.CompilerParams(
            dimension_semantics=("parallel",),
            vmem_limit_bytes=32 * 1024 * 1024),
    )(xp, add3, *weights)
    return out.reshape(B, nc)


# ---------------------------- parameter init ----------------------------

def init_params(key, num_additional_features, num_classes, flattened_size):
    ks = jax.random.split(key, 8)

    def conv_w(k, cout, cin):
        # kaiming_normal_, mode='fan_out', nonlinearity='relu'
        std = (2.0 / (cout * 9)) ** 0.5
        return std * jax.random.normal(k, (cout, cin, 3, 3), jnp.float32)

    def lin_w(k, out_f, in_f):
        return 0.01 * jax.random.normal(k, (out_f, in_f), jnp.float32)

    def bn(c):
        return (jnp.ones((c,), jnp.float32), jnp.zeros((c,), jnp.float32),
                jnp.zeros((c,), jnp.float32), jnp.ones((c,), jnp.float32))

    g1, b1, m1, v1 = bn(32)
    g2, b2, m2, v2 = bn(64)
    g3, b3, m3, v3 = bn(128)
    return {
        'conv1_w': conv_w(ks[0], 32, 1),  'conv1_b': jnp.zeros((32,), jnp.float32),
        'bn1_gamma': g1, 'bn1_beta': b1, 'bn1_mean': m1, 'bn1_var': v1,
        'conv2_w': conv_w(ks[1], 64, 32), 'conv2_b': jnp.zeros((64,), jnp.float32),
        'bn2_gamma': g2, 'bn2_beta': b2, 'bn2_mean': m2, 'bn2_var': v2,
        'conv3_w': conv_w(ks[2], 128, 64), 'conv3_b': jnp.zeros((128,), jnp.float32),
        'bn3_gamma': g3, 'bn3_beta': b3, 'bn3_mean': m3, 'bn3_var': v3,
        'w_add': lin_w(ks[3], 128, num_additional_features),
        'b_add': jnp.zeros((128,), jnp.float32),
        'w2': lin_w(ks[4], 256, flattened_size + 128),
        'b2': jnp.zeros((256,), jnp.float32),
        'w3': lin_w(ks[5], num_classes, 256),
        'b3': jnp.zeros((num_classes,), jnp.float32),
    }


# ---------------------------------- main ----------------------------------

if __name__ == "__main__":
    B, H, W = 2, 16, 16
    num_additional_features = 10
    num_classes = 3

    key = jax.random.PRNGKey(0)
    k_img, k_add, k_params = jax.random.split(key, 3)
    images = jax.random.normal(k_img, (B, H, W), jnp.float32)
    additional_features = jax.random.normal(
        k_add, (B, num_additional_features), jnp.float32)

    flattened_size = 128 * (H // 4) * (W // 4)   # CNN output: (B, 128, H/4, W/4)
    params = init_params(k_params, num_additional_features, num_classes,
                         flattened_size)

    prep = prepare_params(params, H, W)          # hoisted weight prep, runs once
    fwd = jax.jit(traffic_status_cnn_forward)
    out = jax.block_until_ready(fwd(images, additional_features, prep))

    assert out.shape == (B, num_classes) and out.dtype == jnp.float32
    assert bool(jnp.isfinite(out).all())
    print("KERNEL_OK")
</pallas_src>

<mosaic_0001>
module attributes {stable_mosaic.version = 11 : i64} {
  func.func @_fused_forward_kernel(%arg0: i32, %arg1: memref<1x18x18xf32, #tpu.memory_space<vmem>>, %arg2: memref<1x1x10xf32, #tpu.memory_space<vmem>>, %arg3: memref<9x32xbf16, #tpu.memory_space<vmem>>, %arg4: memref<1x32xf32, #tpu.memory_space<vmem>>, %arg5: memref<288x64xbf16, #tpu.memory_space<vmem>>, %arg6: memref<1x64xf32, #tpu.memory_space<vmem>>, %arg7: memref<576x128xbf16, #tpu.memory_space<vmem>>, %arg8: memref<1x128xf32, #tpu.memory_space<vmem>>, %arg9: memref<10x128xbf16, #tpu.memory_space<vmem>>, %arg10: memref<1x128xf32, #tpu.memory_space<vmem>>, %arg11: memref<2048x256xbf16, #tpu.memory_space<vmem>>, %arg12: memref<128x256xbf16, #tpu.memory_space<vmem>>, %arg13: memref<1x256xf32, #tpu.memory_space<vmem>>, %arg14: memref<256x3xbf16, #tpu.memory_space<vmem>>, %arg15: memref<1x3xf32, #tpu.memory_space<vmem>>, %arg16: memref<1x1x3xf32, #tpu.memory_space<vmem>>) attributes {dimension_semantics = [#tpu.dimension_semantics<parallel>], iteration_bounds = array<i64: 2>, scalar_prefetch = 0 : i64, scratch_operands = 0 : i64, tpu.core_type = #tpu.core_type<tc>, window_params = [{transform_indices = @transform_0, window_bounds = array<i64: 1, 18, 18>}, {transform_indices = @transform_1, window_bounds = array<i64: 1, 1, 10>}, {pipeline_mode = #tpu.pipeline_mode<synchronous>, transform_indices = @transform_2, window_bounds = array<i64: 9, 32>}, {pipeline_mode = #tpu.pipeline_mode<synchronous>, transform_indices = @transform_3, window_bounds = array<i64: 1, 32>}, {pipeline_mode = #tpu.pipeline_mode<synchronous>, transform_indices = @transform_4, window_bounds = array<i64: 288, 64>}, {pipeline_mode = #tpu.pipeline_mode<synchronous>, transform_indices = @transform_5, window_bounds = array<i64: 1, 64>}, {pipeline_mode = #tpu.pipeline_mode<synchronous>, transform_indices = @transform_6, window_bounds = array<i64: 576, 128>}, {pipeline_mode = #tpu.pipeline_mode<synchronous>, transform_indices = @transform_7, window_bounds = array<i64: 1, 128>}, {pipeline_mode = #tpu.pipeline_mode<synchronous>, transform_indices = @transform_8, window_bounds = array<i64: 10, 128>}, {pipeline_mode = #tpu.pipeline_mode<synchronous>, transform_indices = @transform_9, window_bounds = array<i64: 1, 128>}, {pipeline_mode = #tpu.pipeline_mode<synchronous>, transform_indices = @transform_10, window_bounds = array<i64: 2048, 256>}, {pipeline_mode = #tpu.pipeline_mode<synchronous>, transform_indices = @transform_11, window_bounds = array<i64: 128, 256>}, {pipeline_mode = #tpu.pipeline_mode<synchronous>, transform_indices = @transform_12, window_bounds = array<i64: 1, 256>}, {pipeline_mode = #tpu.pipeline_mode<synchronous>, transform_indices = @transform_13, window_bounds = array<i64: 256, 3>}, {pipeline_mode = #tpu.pipeline_mode<synchronous>, transform_indices = @transform_14, window_bounds = array<i64: 1, 3>}, {transform_indices = @transform_15, window_bounds = array<i64: 1, 1, 3>}]} {
    %c0 = arith.constant 0 : index
    %c0_0 = arith.constant 0 : index
    %c0_1 = arith.constant 0 : index
    %0 = vector.load %arg1[%c0, %c0_0, %c0_1] : memref<1x18x18xf32, #tpu.memory_space<vmem>>, vector<1x18x18xf32>
    %1 = arith.truncf %0 : vector<1x18x18xf32> to vector<1x18x18xbf16>
    %2 = vector.shape_cast %1 : vector<1x18x18xbf16> to vector<1x18x18x1xbf16>
    %3 = vector.extract_strided_slice %2 {offsets = [0, 0, 0, 0], sizes = [1, 16, 16, 1], strides = [1, 1, 1, 1]} : vector<1x18x18x1xbf16> to vector<1x16x16x1xbf16>
    %4 = vector.extract_strided_slice %2 {offsets = [0, 0, 1, 0], sizes = [1, 16, 16, 1], strides = [1, 1, 1, 1]} : vector<1x18x18x1xbf16> to vector<1x16x16x1xbf16>
    %5 = vector.extract_strided_slice %2 {offsets = [0, 0, 2, 0], sizes = [1, 16, 16, 1], strides = [1, 1, 1, 1]} : vector<1x18x18x1xbf16> to vector<1x16x16x1xbf16>
    %6 = vector.extract_strided_slice %2 {offsets = [0, 1, 0, 0], sizes = [1, 16, 16, 1], strides = [1, 1, 1, 1]} : vector<1x18x18x1xbf16> to vector<1x16x16x1xbf16>
    %7 = vector.extract_strided_slice %2 {offsets = [0, 1, 1, 0], sizes = [1, 16, 16, 1], strides = [1, 1, 1, 1]} : vector<1x18x18x1xbf16> to vector<1x16x16x1xbf16>
    %8 = vector.extract_strided_slice %2 {offsets = [0, 1, 2, 0], sizes = [1, 16, 16, 1], strides = [1, 1, 1, 1]} : vector<1x18x18x1xbf16> to vector<1x16x16x1xbf16>
    %9 = vector.extract_strided_slice %2 {offsets = [0, 2, 0, 0], sizes = [1, 16, 16, 1], strides = [1, 1, 1, 1]} : vector<1x18x18x1xbf16> to vector<1x16x16x1xbf16>
    %10 = vector.extract_strided_slice %2 {offsets = [0, 2, 1, 0], sizes = [1, 16, 16, 1], strides = [1, 1, 1, 1]} : vector<1x18x18x1xbf16> to vector<1x16x16x1xbf16>
    %11 = vector.extract_strided_slice %2 {offsets = [0, 2, 2, 0], sizes = [1, 16, 16, 1], strides = [1, 1, 1, 1]} : vector<1x18x18x1xbf16> to vector<1x16x16x1xbf16>
    %12 = tpu.concatenate %3, %4, %5, %6, %7, %8, %9, %10, %11 in 3 : vector<1x16x16x1xbf16>, vector<1x16x16x1xbf16>, vector<1x16x16x1xbf16>, vector<1x16x16x1xbf16>, vector<1x16x16x1xbf16>, vector<1x16x16x1xbf16>, vector<1x16x16x1xbf16>, vector<1x16x16x1xbf16>, vector<1x16x16x1xbf16> -> vector<1x16x16x9xbf16>
    %13 = vector.shape_cast %12 : vector<1x16x16x9xbf16> to vector<256x9xbf16>
    %c0_2 = arith.constant 0 : index
    %c0_3 = arith.constant 0 : index
    %14 = vector.load %arg3[%c0_2, %c0_3] : memref<9x32xbf16, #tpu.memory_space<vmem>>, vector<9x32xbf16>
    %cst = arith.constant dense<0.000000e+00> : vector<256x32xf32>
    %15 = tpu.matmul %13, %14, %cst {dimension_numbers = #tpu.dot_dimension_numbers<[1], [0], [0], [1], [0, 0, 1, 1], [], []>} : vector<256x9xbf16>, vector<9x32xbf16>, vector<256x32xf32> -> vector<256x32xf32>
    %c0_4 = arith.constant 0 : index
    %c0_5 = arith.constant 0 : index
    %16 = vector.load %arg4[%c0_4, %c0_5] : memref<1x32xf32, #tpu.memory_space<vmem>>, vector<1x32xf32>
    %17 = vector.broadcast %16 : vector<1x32xf32> to vector<256x32xf32>
    %18 = arith.addf %15, %17 : vector<256x32xf32>
    %cst_6 = arith.constant 0.000000e+00 : f32
    %19 = vector.broadcast %cst_6 : f32 to vector<256x32xf32>
    %20 = arith.maximumf %18, %19 : vector<256x32xf32>
    %21 = arith.truncf %20 : vector<256x32xf32> to vector<256x32xbf16>
    %22 = vector.shape_cast %21 : vector<256x32xbf16> to vector<1x16x16x32xbf16>
    %cst_7 = arith.constant 0.000000e+00 : bf16
    %23 = vector.broadcast %cst_7 : bf16 to vector<1x1x16x32xbf16>
    %24 = tpu.concatenate %23, %22, %23 in 1 : vector<1x1x16x32xbf16>, vector<1x16x16x32xbf16>, vector<1x1x16x32xbf16> -> vector<1x18x16x32xbf16>
    %cst_8 = arith.constant 0.000000e+00 : bf16
    %25 = vector.broadcast %cst_8 : bf16 to vector<1x18x1x32xbf16>
    %26 = tpu.concatenate %25, %24, %25 in 2 : vector<1x18x1x32xbf16>, vector<1x18x16x32xbf16>, vector<1x18x1x32xbf16> -> vector<1x18x18x32xbf16>
    %27 = vector.extract_strided_slice %26 {offsets = [0, 0, 0, 0], sizes = [1, 16, 16, 32], strides = [1, 1, 1, 1]} : vector<1x18x18x32xbf16> to vector<1x16x16x32xbf16>
    %28 = vector.extract_strided_slice %26 {offsets = [0, 0, 1, 0], sizes = [1, 16, 16, 32], strides = [1, 1, 1, 1]} : vector<1x18x18x32xbf16> to vector<1x16x16x32xbf16>
    %29 = vector.extract_strided_slice %26 {offsets = [0, 0, 2, 0], sizes = [1, 16, 16, 32], strides = [1, 1, 1, 1]} : vector<1x18x18x32xbf16> to vector<1x16x16x32xbf16>
    %30 = vector.extract_strided_slice %26 {offsets = [0, 1, 0, 0], sizes = [1, 16, 16, 32], strides = [1, 1, 1, 1]} : vector<1x18x18x32xbf16> to vector<1x16x16x32xbf16>
    %31 = vector.extract_strided_slice %26 {offsets = [0, 1, 1, 0], sizes = [1, 16, 16, 32], strides = [1, 1, 1, 1]} : vector<1x18x18x32xbf16> to vector<1x16x16x32xbf16>
    %32 = vector.extract_strided_slice %26 {offsets = [0, 1, 2, 0], sizes = [1, 16, 16, 32], strides = [1, 1, 1, 1]} : vector<1x18x18x32xbf16> to vector<1x16x16x32xbf16>
    %33 = vector.extract_strided_slice %26 {offsets = [0, 2, 0, 0], sizes = [1, 16, 16, 32], strides = [1, 1, 1, 1]} : vector<1x18x18x32xbf16> to vector<1x16x16x32xbf16>
    %34 = vector.extract_strided_slice %26 {offsets = [0, 2, 1, 0], sizes = [1, 16, 16, 32], strides = [1, 1, 1, 1]} : vector<1x18x18x32xbf16> to vector<1x16x16x32xbf16>
    %35 = vector.extract_strided_slice %26 {offsets = [0, 2, 2, 0], sizes = [1, 16, 16, 32], strides = [1, 1, 1, 1]} : vector<1x18x18x32xbf16> to vector<1x16x16x32xbf16>
    %36 = tpu.concatenate %27, %28, %29, %30, %31, %32, %33, %34, %35 in 3 : vector<1x16x16x32xbf16>, vector<1x16x16x32xbf16>, vector<1x16x16x32xbf16>, vector<1x16x16x32xbf16>, vector<1x16x16x32xbf16>, vector<1x16x16x32xbf16>, vector<1x16x16x32xbf16>, vector<1x16x16x32xbf16>, vector<1x16x16x32xbf16> -> vector<1x16x16x288xbf16>
    %37 = vector.shape_cast %36 : vector<1x16x16x288xbf16> to vector<256x288xbf16>
    %c0_9 = arith.constant 0 : index
    %c0_10 = arith.constant 0 : index
    %38 = vector.load %arg5[%c0_9, %c0_10] : memref<288x64xbf16, #tpu.memory_space<vmem>>, vector<288x64xbf16>
    %cst_11 = arith.constant dense<0.000000e+00> : vector<256x64xf32>
    %39 = tpu.matmul %37, %38, %cst_11 {dimension_numbers = #tpu.dot_dimension_numbers<[1], [0], [0], [1], [0, 0, 1, 1], [], []>} : vector<256x288xbf16>, vector<288x64xbf16>, vector<256x64xf32> -> vector<256x64xf32>
    %40 = vector.shape_cast %39 : vector<256x64xf32> to vector<128x2x64xf32>
    %41 = vector.extract_strided_slice %40 {offsets = [0, 0, 0], sizes = [128, 1, 64], strides = [1, 1, 1]} : vector<128x2x64xf32> to vector<128x1x64xf32>
    %42 = vector.shape_cast %41 : vector<128x1x64xf32> to vector<128x64xf32>
    %43 = vector.extract_strided_slice %40 {offsets = [0, 1, 0], sizes = [128, 1, 64], strides = [1, 1, 1]} : vector<128x2x64xf32> to vector<128x1x64xf32>
    %44 = vector.shape_cast %43 : vector<128x1x64xf32> to vector<128x64xf32>
    %45 = arith.maximumf %42, %44 : vector<128x64xf32>
    %46 = vector.shape_cast %45 : vector<128x64xf32> to vector<8x2x8x64xf32>
    %47 = vector.extract_strided_slice %46 {offsets = [0, 0, 0, 0], sizes = [8, 1, 8, 64], strides = [1, 1, 1, 1]} : vector<8x2x8x64xf32> to vector<8x1x8x64xf32>
    %48 = vector.shape_cast %47 : vector<8x1x8x64xf32> to vector<8x8x64xf32>
    %49 = vector.extract_strided_slice %46 {offsets = [0, 1, 0, 0], sizes = [8, 1, 8, 64], strides = [1, 1, 1, 1]} : vector<8x2x8x64xf32> to vector<8x1x8x64xf32>
    %50 = vector.shape_cast %49 : vector<8x1x8x64xf32> to vector<8x8x64xf32>
    %51 = arith.maximumf %48, %50 : vector<8x8x64xf32>
    %52 = vector.shape_cast %51 : vector<8x8x64xf32> to vector<1x8x8x64xf32>
    %c0_12 = arith.constant 0 : index
    %c0_13 = arith.constant 0 : index
    %53 = vector.load %arg6[%c0_12, %c0_13] : memref<1x64xf32, #tpu.memory_space<vmem>>, vector<1x64xf32>
    %54 = vector.shape_cast %53 : vector<1x64xf32> to vector<1x1x1x64xf32>
    %55 = vector.broadcast %54 : vector<1x1x1x64xf32> to vector<1x8x8x64xf32>
    %56 = arith.addf %52, %55 : vector<1x8x8x64xf32>
    %cst_14 = arith.constant 0.000000e+00 : f32
    %57 = vector.broadcast %cst_14 : f32 to vector<1x8x8x64xf32>
    %58 = arith.maximumf %56, %57 : vector<1x8x8x64xf32>
    %59 = arith.truncf %58 : vector<1x8x8x64xf32> to vector<1x8x8x64xbf16>
    %cst_15 = arith.constant 0.000000e+00 : bf16
    %60 = vector.broadcast %cst_15 : bf16 to vector<1x1x8x64xbf16>
    %61 = tpu.concatenate %60, %59, %60 in 1 : vector<1x1x8x64xbf16>, vector<1x8x8x64xbf16>, vector<1x1x8x64xbf16> -> vector<1x10x8x64xbf16>
    %cst_16 = arith.constant 0.000000e+00 : bf16
    %62 = vector.broadcast %cst_16 : bf16 to vector<1x10x1x64xbf16>
    %63 = tpu.concatenate %62, %61, %62 in 2 : vector<1x10x1x64xbf16>, vector<1x10x8x64xbf16>, vector<1x10x1x64xbf16> -> vector<1x10x10x64xbf16>
    %64 = vector.extract_strided_slice %63 {offsets = [0, 0, 0, 0], sizes = [1, 8, 8, 64], strides = [1, 1, 1, 1]} : vector<1x10x10x64xbf16> to vector<1x8x8x64xbf16>
    %65 = vector.extract_strided_slice %63 {offsets = [0, 0, 1, 0], sizes = [1, 8, 8, 64], strides = [1, 1, 1, 1]} : vector<1x10x10x64xbf16> to vector<1x8x8x64xbf16>
    %66 = vector.extract_strided_slice %63 {offsets = [0, 0, 2, 0], sizes = [1, 8, 8, 64], strides = [1, 1, 1, 1]} : vector<1x10x10x64xbf16> to vector<1x8x8x64xbf16>
    %67 = vector.extract_strided_slice %63 {offsets = [0, 1, 0, 0], sizes = [1, 8, 8, 64], strides = [1, 1, 1, 1]} : vector<1x10x10x64xbf16> to vector<1x8x8x64xbf16>
    %68 = vector.extract_strided_slice %63 {offsets = [0, 1, 1, 0], sizes = [1, 8, 8, 64], strides = [1, 1, 1, 1]} : vector<1x10x10x64xbf16> to vector<1x8x8x64xbf16>
    %69 = vector.extract_strided_slice %63 {offsets = [0, 1, 2, 0], sizes = [1, 8, 8, 64], strides = [1, 1, 1, 1]} : vector<1x10x10x64xbf16> to vector<1x8x8x64xbf16>
    %70 = vector.extract_strided_slice %63 {offsets = [0, 2, 0, 0], sizes = [1, 8, 8, 64], strides = [1, 1, 1, 1]} : vector<1x10x10x64xbf16> to vector<1x8x8x64xbf16>
    %71 = vector.extract_strided_slice %63 {offsets = [0, 2, 1, 0], sizes = [1, 8, 8, 64], strides = [1, 1, 1, 1]} : vector<1x10x10x64xbf16> to vector<1x8x8x64xbf16>
    %72 = vector.extract_strided_slice %63 {offsets = [0, 2, 2, 0], sizes = [1, 8, 8, 64], strides = [1, 1, 1, 1]} : vector<1x10x10x64xbf16> to vector<1x8x8x64xbf16>
    %73 = tpu.concatenate %64, %65, %66, %67, %68, %69, %70, %71, %72 in 3 : vector<1x8x8x64xbf16>, vector<1x8x8x64xbf16>, vector<1x8x8x64xbf16>, vector<1x8x8x64xbf16>, vector<1x8x8x64xbf16>, vector<1x8x8x64xbf16>, vector<1x8x8x64xbf16>, vector<1x8x8x64xbf16>, vector<1x8x8x64xbf16> -> vector<1x8x8x576xbf16>
    %74 = vector.shape_cast %73 : vector<1x8x8x576xbf16> to vector<64x576xbf16>
    %c0_17 = arith.constant 0 : index
    %c0_18 = arith.constant 0 : index
    %75 = vector.load %arg7[%c0_17, %c0_18] : memref<576x128xbf16, #tpu.memory_space<vmem>>, vector<576x128xbf16>
    %cst_19 = arith.constant dense<0.000000e+00> : vector<64x128xf32>
    %76 = tpu.matmul %74, %75, %cst_19 {dimension_numbers = #tpu.dot_dimension_numbers<[1], [0], [0], [1], [0, 0, 1, 1], [], []>} : vector<64x576xbf16>, vector<576x128xbf16>, vector<64x128xf32> -> vector<64x128xf32>
    %77 = vector.shape_cast %76 : vector<64x128xf32> to vector<32x2x128xf32>
    %78 = vector.extract_strided_slice %77 {offsets = [0, 0, 0], sizes = [32, 1, 128], strides = [1, 1, 1]} : vector<32x2x128xf32> to vector<32x1x128xf32>
    %79 = vector.shape_cast %78 : vector<32x1x128xf32> to vector<32x128xf32>
    %80 = vector.extract_strided_slice %77 {offsets = [0, 1, 0], sizes = [32, 1, 128], strides = [1, 1, 1]} : vector<32x2x128xf32> to vector<32x1x128xf32>
    %81 = vector.shape_cast %80 : vector<32x1x128xf32> to vector<32x128xf32>
    %82 = arith.maximumf %79, %81 : vector<32x128xf32>
    %83 = vector.shape_cast %82 : vector<32x128xf32> to vector<4x2x4x128xf32>
    %84 = vector.extract_strided_slice %83 {offsets = [0, 0, 0, 0], sizes = [4, 1, 4, 128], strides = [1, 1, 1, 1]} : vector<4x2x4x128xf32> to vector<4x1x4x128xf32>
    %85 = vector.shape_cast %84 : vector<4x1x4x128xf32> to vector<4x4x128xf32>
    %86 = vector.extract_strided_slice %83 {offsets = [0, 1, 0, 0], sizes = [4, 1, 4, 128], strides = [1, 1, 1, 1]} : vector<4x2x4x128xf32> to vector<4x1x4x128xf32>
    %87 = vector.shape_cast %86 : vector<4x1x4x128xf32> to vector<4x4x128xf32>
    %88 = arith.maximumf %85, %87 : vector<4x4x128xf32>
    %89 = vector.shape_cast %88 : vector<4x4x128xf32> to vector<1x4x4x128xf32>
    %c0_20 = arith.constant 0 : index
    %c0_21 = arith.constant 0 : index
    %90 = vector.load %arg8[%c0_20, %c0_21] : memref<1x128xf32, #tpu.memory_space<vmem>>, vector<1x128xf32>
    %91 = vector.shape_cast %90 : vector<1x128xf32> to vector<1x1x1x128xf32>
    %92 = vector.broadcast %91 : vector<1x1x1x128xf32> to vector<1x4x4x128xf32>
    %93 = arith.addf %89, %92 : vector<1x4x4x128xf32>
    %cst_22 = arith.constant 0.000000e+00 : f32
    %94 = vector.broadcast %cst_22 : f32 to vector<1x4x4x128xf32>
    %95 = arith.maximumf %93, %94 : vector<1x4x4x128xf32>
    %c0_23 = arith.constant 0 : index
    %c0_24 = arith.constant 0 : index
    %c0_25 = arith.constant 0 : index
    %96 = vector.load %arg2[%c0_23, %c0_24, %c0_25] : memref<1x1x10xf32, #tpu.memory_space<vmem>>, vector<1x1x10xf32>
    %97 = vector.shape_cast %96 : vector<1x1x10xf32> to vector<1x10xf32>
    %98 = arith.truncf %97 : vector<1x10xf32> to vector<1x10xbf16>
    %c0_26 = arith.constant 0 : index
    %c0_27 = arith.constant 0 : index
    %99 = vector.load %arg9[%c0_26, %c0_27] : memref<10x128xbf16, #tpu.memory_space<vmem>>, vector<10x128xbf16>
    %cst_28 = arith.constant dense<0.000000e+00> : vector<1x128xf32>
    %100 = tpu.matmul %98, %99, %cst_28 {dimension_numbers = #tpu.dot_dimension_numbers<[1], [0], [0], [1], [0, 0, 1, 1], [], []>} : vector<1x10xbf16>, vector<10x128xbf16>, vector<1x128xf32> -> vector<1x128xf32>
    %c0_29 = arith.constant 0 : index
    %c0_30 = arith.constant 0 : index
    %101 = vector.load %arg10[%c0_29, %c0_30] : memref<1x128xf32, #tpu.memory_space<vmem>>, vector<1x128xf32>
    %102 = arith.addf %100, %101 : vector<1x128xf32>
    %cst_31 = arith.constant 0.000000e+00 : f32
    %103 = vector.broadcast %cst_31 : f32 to vector<1x128xf32>
    %104 = arith.maximumf %102, %103 : vector<1x128xf32>
    %105 = vector.shape_cast %95 : vector<1x4x4x128xf32> to vector<1x2048xf32>
    %106 = arith.truncf %105 : vector<1x2048xf32> to vector<1x2048xbf16>
    %c0_32 = arith.constant 0 : index
    %c0_33 = arith.constant 0 : index
    %107 = vector.load %arg11[%c0_32, %c0_33] : memref<2048x256xbf16, #tpu.memory_space<vmem>>, vector<2048x256xbf16>
    %cst_34 = arith.constant dense<0.000000e+00> : vector<1x256xf32>
    %108 = tpu.matmul %106, %107, %cst_34 {dimension_numbers = #tpu.dot_dimension_numbers<[1], [0], [0], [1], [0, 0, 1, 1], [], []>} : vector<1x2048xbf16>, vector<2048x256xbf16>, vector<1x256xf32> -> vector<1x256xf32>
    %109 = arith.truncf %104 : vector<1x128xf32> to vector<1x128xbf16>
    %c0_35 = arith.constant 0 : index
    %c0_36 = arith.constant 0 : index
    %110 = vector.load %arg12[%c0_35, %c0_36] : memref<128x256xbf16, #tpu.memory_space<vmem>>, vector<128x256xbf16>
    %cst_37 = arith.constant dense<0.000000e+00> : vector<1x256xf32>
    %111 = tpu.matmul %109, %110, %cst_37 {dimension_numbers = #tpu.dot_dimension_numbers<[1], [0], [0], [1], [0, 0, 1, 1], [], []>} : vector<1x128xbf16>, vector<128x256xbf16>, vector<1x256xf32> -> vector<1x256xf32>
    %112 = arith.addf %108, %111 : vector<1x256xf32>
    %c0_38 = arith.constant 0 : index
    %c0_39 = arith.constant 0 : index
    %113 = vector.load %arg13[%c0_38, %c0_39] : memref<1x256xf32, #tpu.memory_space<vmem>>, vector<1x256xf32>
    %114 = arith.addf %112, %113 : vector<1x256xf32>
    %cst_40 = arith.constant 0.000000e+00 : f32
    %115 = vector.broadcast %cst_40 : f32 to vector<1x256xf32>
    %116 = arith.maximumf %114, %115 : vector<1x256xf32>
    %117 = arith.truncf %116 : vector<1x256xf32> to vector<1x256xbf16>
    %c0_41 = arith.constant 0 : index
    %c0_42 = arith.constant 0 : index
    %118 = vector.load %arg14[%c0_41, %c0_42] : memref<256x3xbf16, #tpu.memory_space<vmem>>, vector<256x3xbf16>
    %cst_43 = arith.constant dense<0.000000e+00> : vector<1x3xf32>
    %119 = tpu.matmul %117, %118, %cst_43 {dimension_numbers = #tpu.dot_dimension_numbers<[1], [0], [0], [1], [0, 0, 1, 1], [], []>} : vector<1x256xbf16>, vector<256x3xbf16>, vector<1x3xf32> -> vector<1x3xf32>
    %c0_44 = arith.constant 0 : index
    %c0_45 = arith.constant 0 : index
    %120 = vector.load %arg15[%c0_44, %c0_45] : memref<1x3xf32, #tpu.memory_space<vmem>>, vector<1x3xf32>
    %121 = arith.addf %119, %120 : vector<1x3xf32>
    %122 = vector.shape_cast %121 : vector<1x3xf32> to vector<1x1x3xf32>
    %c0_46 = arith.constant 0 : index
    %c0_47 = arith.constant 0 : index
    %c0_48 = arith.constant 0 : index
    %123 = vector.load %arg16[%c0_46, %c0_47, %c0_48] : memref<1x1x3xf32, #tpu.memory_space<vmem>>, vector<1x1x3xf32>
    tpu.vector_store %arg16[%c0_46, %c0_47, %c0_48], %122 {strides = array<i32>} : memref<1x1x3xf32, #tpu.memory_space<vmem>>, vector<1x1x3xf32>,
    return
  }
  func.func @transform_0(%arg0: i32) -> (i32, i32, i32) {
    %c0_i32 = arith.constant 0 : i32
    %c0_i32_0 = arith.constant 0 : i32
    %c0_i32_1 = arith.constant 0 : i32
    return %arg0, %c0_i32, %c0_i32_0 : i32, i32, i32
  }
  func.func @transform_1(%arg0: i32) -> (i32, i32, i32) {
    %c0_i32 = arith.constant 0 : i32
    %c0_i32_0 = arith.constant 0 : i32
    %c0_i32_1 = arith.constant 0 : i32
    return %arg0, %c0_i32, %c0_i32_0 : i32, i32, i32
  }
  func.func @transform_2(%arg0: i32) -> (i32, i32) {
    %c0_i32 = arith.constant 0 : i32
    %c0_i32_0 = arith.constant 0 : i32
    %c0_i32_1 = arith.constant 0 : i32
    return %c0_i32, %c0_i32_0 : i32, i32
  }
  func.func @transform_3(%arg0: i32) -> (i32, i32) {
    %c0_i32 = arith.constant 0 : i32
    %c0_i32_0 = arith.constant 0 : i32
    %c0_i32_1 = arith.constant 0 : i32
    return %c0_i32, %c0_i32_0 : i32, i32
  }
  func.func @transform_4(%arg0: i32) -> (i32, i32) {
    %c0_i32 = arith.constant 0 : i32
    %c0_i32_0 = arith.constant 0 : i32
    %c0_i32_1 = arith.constant 0 : i32
    return %c0_i32, %c0_i32_0 : i32, i32
  }
  func.func @transform_5(%arg0: i32) -> (i32, i32) {
    %c0_i32 = arith.constant 0 : i32
    %c0_i32_0 = arith.constant 0 : i32
    %c0_i32_1 = arith.constant 0 : i32
    return %c0_i32, %c0_i32_0 : i32, i32
  }
  func.func @transform_6(%arg0: i32) -> (i32, i32) {
    %c0_i32 = arith.constant 0 : i32
    %c0_i32_0 = arith.constant 0 : i32
    %c0_i32_1 = arith.constant 0 : i32
    return %c0_i32, %c0_i32_0 : i32, i32
  }
  func.func @transform_7(%arg0: i32) -> (i32, i32) {
    %c0_i32 = arith.constant 0 : i32
    %c0_i32_0 = arith.constant 0 : i32
    %c0_i32_1 = arith.constant 0 : i32
    return %c0_i32, %c0_i32_0 : i32, i32
  }
  func.func @transform_8(%arg0: i32) -> (i32, i32) {
    %c0_i32 = arith.constant 0 : i32
    %c0_i32_0 = arith.constant 0 : i32
    %c0_i32_1 = arith.constant 0 : i32
    return %c0_i32, %c0_i32_0 : i32, i32
  }
  func.func @transform_9(%arg0: i32) -> (i32, i32) {
    %c0_i32 = arith.constant 0 : i32
    %c0_i32_0 = arith.constant 0 : i32
    %c0_i32_1 = arith.constant 0 : i32
    return %c0_i32, %c0_i32_0 : i32, i32
  }
  func.func @transform_10(%arg0: i32) -> (i32, i32) {
    %c0_i32 = arith.constant 0 : i32
    %c0_i32_0 = arith.constant 0 : i32
    %c0_i32_1 = arith.constant 0 : i32
    return %c0_i32, %c0_i32_0 : i32, i32
  }
  func.func @transform_11(%arg0: i32) -> (i32, i32) {
    %c0_i32 = arith.constant 0 : i32
    %c0_i32_0 = arith.constant 0 : i32
    %c0_i32_1 = arith.constant 0 : i32
    return %c0_i32, %c0_i32_0 : i32, i32
  }
  func.func @transform_12(%arg0: i32) -> (i32, i32) {
    %c0_i32 = arith.constant 0 : i32
    %c0_i32_0 = arith.constant 0 : i32
    %c0_i32_1 = arith.constant 0 : i32
    return %c0_i32, %c0_i32_0 : i32, i32
  }
  func.func @transform_13(%arg0: i32) -> (i32, i32) {
    %c0_i32 = arith.constant 0 : i32
    %c0_i32_0 = arith.constant 0 : i32
    %c0_i32_1 = arith.constant 0 : i32
    return %c0_i32, %c0_i32_0 : i32, i32
  }
  func.func @transform_14(%arg0: i32) -> (i32, i32) {
    %c0_i32 = arith.constant 0 : i32
    %c0_i32_0 = arith.constant 0 : i32
    %c0_i32_1 = arith.constant 0 : i32
    return %c0_i32, %c0_i32_0 : i32, i32
  }
  func.func @transform_15(%arg0: i32) -> (i32, i32, i32) {
    %c0_i32 = arith.constant 0 : i32
    %c0_i32_0 = arith.constant 0 : i32
    %c0_i32_1 = arith.constant 0 : i32
    return %arg0, %c0_i32, %c0_i32_0 : i32, i32, i32
  }
}

</mosaic_0001>

<bundles_post_ra>
// kernel: traffic_status_cnn_forward.1
= control target key start
LH: loop header
LB: loop body
LE: loop exit
PB: predicated region body
PF: predicated region fallthrough
CT: control target
= control target key end

     0   :  { %20 = vsyncpa [#allocation3], 0  ;;  %s12623_s0 = inlined_call_operand.vmem [shape: f32[2,18,18], index: 0, kind: input, shape index: {}]   ;;  %s12624_s1 = inlined_call_operand.vmem [shape: f32[2,1,10], index: 1, kind: input, shape index: {}]   ;;  %s12625_s2 = inlined_call_operand.vmem [shape: bf16[9,32], index: 2, kind: input, shape index: {}]   ;;  %s12626_s3 = inlined_call_operand.vmem [shape: f32[1,32], index: 3, kind: input, shape index: {}]   ;;  %s12627_s4 = inlined_call_operand.vmem [shape: bf16[288,64], index: 4, kind: input, shape index: {}]   ;;  %s12628_s5 = inlined_call_operand.vmem [shape: f32[1,64], index: 5, kind: input, shape index: {}]   ;;  %s12629_s6 = inlined_call_operand.vmem [shape: bf16[576,128], index: 6, kind: input, shape index: {}]   ;;  %s12630_s7 = inlined_call_operand.vmem [shape: f32[1,128], index: 7, kind: input, shape index: {}]   ;;  %s12631_s8 = inlined_call_operand.vmem [shape: bf16[10,128], index: 8, kind: input, shape index: {}]   ;;  %s12632_s9 = inlined_call_operand.vmem [shape: f32[1,128], index: 9, kind: input, shape index: {}]   ;;  %s12633_s10 = inlined_call_operand.hbm [shape: bf16[2048,256], index: 10, kind: input, shape index: {}]   ;;  %s12634_s11 = inlined_call_operand.vmem [shape: bf16[128,256], index: 11, kind: input, shape index: {}]   ;;  %s12635_s12 = inlined_call_operand.vmem [shape: f32[1,256], index: 12, kind: input, shape index: {}]   ;;  %s12636_s13 = inlined_call_operand.vmem [shape: bf16[256,3], index: 13, kind: input, shape index: {}]   ;;  %s12637_s14 = inlined_call_operand.vmem [shape: f32[1,3], index: 14, kind: input, shape index: {}]   ;;  %s12638_s15 = inlined_call_operand.hbm [shape: f32[2,1,3], index: 15, kind: output, shape index: {}]  }
   0x1   :  { %21 = vsyncpa [#allocation4], 0 }
   0x2   :  { %23 = vsyncpa [#allocation4 + $0x1], 0  ;;  %s10084_s18 = smov 0   ;;  %s10086_s19 = smov 0  }
   0x3   :  { %s10088_s20 = smov 0   ;;  %s10090_s21 = smov 0  }
   0x4 LB: > { %12667 = sst [smem:[#allocation8_spill]] %s9978_s18  ;;  %s10105_s22 = sadd.s32 4294967295, %s9990_s21   ;;  %s9990_s21 = sphi %s10090_s21, %s12753_s21   ;;  %s9986_s20 = sphi %s10088_s20, %s12755_s20   ;;  %s9982_s19 = sphi %s10086_s19, %s12757_s19   ;;  %s9978_s18 = sphi %s10084_s18, %s12756_s18  }
   0x5   : > { %12668 = sst [smem:[#allocation9_spill]] %s9986_s20  ;;  %s8385_s23 = sadd.s32 4294967294, %s9990_s21  }
   0x6   : > { %s10109_s24 = sadd.s32 1, %s9990_s21   ;;  %s361_s25 = sadd.s32 1, %s9986_s20 }
   0x7   : > { %12669 = sst [smem:[#allocation10_spill]] %s10109_s24  ;;  %s358_s26 = ssub.s32 %s9990_s21, %s10109_s24 }
   0x8   : > { %p371_p0 = scmp.ne.s32.totalorder %s9986_s20, %s9982_s19  ;;  %p359_p1 = scmp.eq.s32.totalorder %s358_s26, 0 }
   0x9   : > { %p372_p2 = scmp.eq.s32.totalorder %s10105_s22, 1  ;;  %p377_p3 = scmp.ne.s32.totalorder %s9982_s19, %s9978_s18 }
   0xa   : > { %p378_p4 = scmp.eq.s32.totalorder %s8385_s23, 1  ;;  %p8386_p7 = scmp.ge.s32.totalorder %s9990_s21, 1 }
   0xb   : > { %s10120_s27 = scalar_select %p359_p1, %s9986_s20, %s361_s25  }
   0xc   : > { %p10122_p5 = por %p372_p2, %p371_p0  ;;  %p10126_p6 = por %p378_p4, %p377_p3 }
   0xd   : > { %12670 = sst [smem:[#allocation11_spill]] %s10120_s27  ;;  %p385_p8 = scmp.lt.s32.totalorder %s9990_s21, 3 }
   0xe   : > { %s12671_s28 = scalar_select %p10122_p5, 1, 0 }
   0xf   : > { %s12672_s29 = scalar_select %p10126_p6, 1, 0 }
  0x10   : > { %p12644_p9 = scmp.eq.s32.totalorder %s10105_s22, 0  ;;  %p10133_p10 = pnand %p8386_p7, %p385_p8 }
  0x11   : > { %12673 = sst [smem:[#allocation12_spill]] %s12672_s29  ;;  %s9992_s16 = smov [#allocation2]  }
  0x12   : > { %s12674_s30 = scalar_select %p10133_p10, 1, 0 }
  0x13   : > { %s421_s17 = sshll.u32 %s9992_s16, 4  ;;  %p9362_p11 = pneg %p10133_p10  ;;  %s422_s17 = int_to_ptr.vmem [resolvable:$true] %s421_s17 }
  0x14   : > { %s9896_s27 = scalar_lea.hbm %s12633_s10, 32768 }
  0x15   : > { %p10141_p12 = pnand %p12644_p9, %p9362_p11  ;;  %p9897_p13 = scmp.ne.s32.totalorder %s12633_s10, %s9896_s27 }
  0x16   : > { %p9903_p3 = scmp.lt.u32.totalorder %s9896_s27, %s12633_s10 }
  0x17   : > { %p9898_p0 = pneg %p10141_p12 }
  0x19   : > { %p9899_p1 = pnand %p9898_p0, %p9897_p13 }
  0x1b   : > { %p9900_p2 = pneg %p9899_p1 }
  0x1d   : > { %p9905_p4 = pnand %p9903_p3, %p9900_p2 }
  0x1f   : > { %9908 = shalt.err (!%p9905_p4)
}
  0x20   : > { %s9909_s18 = scalar_lea.vmem %s422_s17, 32768  ;;  %p9917_p9 = scmp.lt.s32.totalorder %s422_s17, %s422_s17 }
  0x21   : > { %p9910_p7 = scmp.ne.s32.totalorder %s422_s17, %s9909_s18  ;;  %p9918_p6 = scmp.lt.s32.totalorder %s9909_s18, %s9909_s18 }
  0x23   : > { %p9912_p8 = pnand %p9910_p7, %p9898_p0  ;;  %p9919_p5 = por %p9918_p6, %p9917_p9 }
  0x25   : > { %p9913_p11 = pneg %p9912_p8 }
  0x27   : > { %p9920_p10 = pnand %p9919_p5, %p9913_p11 }
  0x29   : > { %9923 = shalt.err (!%p9920_p10)
}
  0x2a   : > { %s9993_s20 = smov 128   ;;  %s9994_s24 = smov 8  }
  0x2b   : > { %9365 = dma.hbm_to_vmem [thread:$0]  (!%p10141_p12), %s12633_s10, 32768, %s422_s17, [#allocation3], %s9993_s20, %s9993_s20, %s9994_s24  }
  0x2c   : > { %p12676_p13 = scmp.ne.s32.totalorder %s12674_s30, 0 }
  0x2e   : > { %463 = sbr.rel (%p12676_p13) target bundleno = 2140 (0x85c), region = 80 }
  0x35   : > { %p12677_p1 = scmp.eq.s32.totalorder %s10105_s22, 0 }
  0x37   : > { %9969 = dma.done.wait (%p12677_p1), [#allocation3], 32768   ;;  %p12678_p0 = pmov %p12677_p1 }
  0x38   : > { %p513_p5 = scmp.lt.s32.totalorder %s10105_s22, 1  ;;  %v530_v0 = vlaneseq  ;;  %vm1264_vm0 = vcmask 1043456   ;;  %v9416_v12 = vld [vmem:[%s12625_s2] sm:$0x1f]   ;;  %vm1265_vm1 = vcmask 1044480   ;;  %v9995_v13 = vmov 65535  }
  0x39   : > { %9971 = vsyncadd (%p12678_p0), [#allocation3], 4294934528  ;;  %v1266_v14 = vsel %vm1264_vm0, 4294967295, %v9995_v13  ;;  %vm962_vm2 = vcmask 1046528   ;;  %vm737_vm3 = vsmask.f32 7424 }
  0x3a   : > { %s10169_s18 = scalar_select %p513_p5, %s10105_s22, 1  ;;  %v10171_v1 = vshrl.u32 %v530_v0, 7  ;;  %v1267_v18 = vsel %vm1265_vm1, %v1266_v14, 0  ;;  %vm1045_vm4 = vcmask 7168   ;;  %vm1078_vm5 = vcmask 15360  }
  0x3b   : > { %v1269_v20 = vand.u32 %v9416_v12, %v1267_v18  ;;  %vm1111_vm6 = vcmask 23552   ;;  %vm1128_vm7 = vcmask 31744   ;;  %vm1146_vm8 = vcmask 39936   ;;  %s12647_s20 = smov 32   ;;  %s12649_s24 = smov 64  }
  0x3c   : > { %s9355_s27 = smul.u32 24, %s10169_s18  ;;  %v10182_v4 = vsub.s32 0, %v10171_v1  ;;  %v10185_v8 = vsub.s32 1, %v10171_v1  ;;  %v579_v16 = vsub.s32 2, %v10171_v1  ;;  %v601_v17 = vsub.s32 3, %v10171_v1  ;;  %s9999_s25 = smov 96  }
  0x3d   : > { %v623_v19 = vsub.s32 4, %v10171_v1  ;;  %9263 = vmatprep.subr.bf16.mxu0 %v1269_v20  ;;  %v645_v22 = vsub.s32 5, %v10171_v1  ;;  %v667_v31 = vsub.s32 6, %v10171_v1  ;;  %v689_v35 = vsub.s32 7, %v10171_v1  ;;  %s12684_s26 = smov 64   ;;  %s520_s23 = scalar_lea.vmem %s12624_s1, %s10169_s18 }
  0x3e   : > { %s10177_s30 = scalar_lea.vmem %s12623_s0, %s9355_s27  ;;  %12679 = vst [vmem:[#allocation13_spill] sm:$0xff] %v10182_v4  ;;  %12680 = vst [vmem:[#allocation14_spill] sm:$0xff] %v10185_v8  ;;  %9264 = vmatpush3.bf16.msra.mxu0 %v1269_v20  ;;  %vm1164_vm9 = vcmask 48128   ;;  %vm1181_vm10 = vcmask 56320   ;;  %vm1199_vm11 = vcmask 64512   ;;  %vm1231_vm12 = vcmask 72704  }
  0x3f   : > { %v522_v2 = vld [vmem:[%s10177_s30] sm:$0xff]  ;;  %v523_v3 = vld [vmem:[%s10177_s30 + $0x8] sm:$0xff]  ;;  %v524_v33 = vld [vmem:[%s10177_s30 + $0x10] sm:$0x3]  ;;  %vm1633_vm13 = vcmask 1040384   ;;  %vm2151_vm0 = vcmask 261120  }
  0x40   : > { %v525_v5 = vpack.c.bf16 %v523_v3, %v522_v2  ;;  %v526_v37 = vpack.c.bf16 %v524_v33, %v524_v33  ;;  %vm1634_vm14 = vsmask.f32 256  ;;  %s9001_s29 = sshll.u32 %s10105_s22, 4  ;;  %p12749_p9 = scmp.ne.s32.totalorder %s12671_s28, 0 }
  0x41   : > { %vm10449_vm15 = vmand %vm1633_vm13, %vm1634_vm14  ;;  %vm5916_vm14 = vcmask 80896   ;;  %s12581_s16 = scalar_lea.hbm %s12638_s15, %s9001_s29 }
  0x42   : > { %v528_v6 = vpack.i.b16 %v525_v5, %v525_v5  ;;  %v541_v7 = vshrl.u32 %v525_v5, 16  ;;  %v710_v39 = vpack.i.b16 %v526_v37, %v526_v37  ;;  %v723_v40 = vshrl.u32 %v526_v37, 16 }
  0x44   : > { %v533_v9 = vrot.slane %v528_v6, %v10182_v4  ;;  %v542_v10 = vpack.i.b16 %v541_v7, %v541_v7  ;;  %v558_v15 = vrot.slane %v528_v6, %v10185_v8  ;;  %v580_v23 = vrot.slane %v528_v6, %v579_v16 }
  0x45   : > { %v602_v25 = vrot.slane %v528_v6, %v601_v17  ;;  %v624_v27 = vrot.slane %v528_v6, %v623_v19  ;;  %v646_v29 = vrot.slane %v528_v6, %v645_v22  ;;  %v668_v32 = vrot.slane %v528_v6, %v667_v31 }
  0x46   : > { %539 = vbcast.lane.c.b16.xlu1 %v533_v9, 272  ;;  %535 = vbcast.lane.c.b16.xlu0 %v533_v9, 256  ;;  %v547_v11 = vrot.slane %v542_v10, %v10182_v4  ;;  %v569_v21 = vrot.slane %v542_v10, %v10185_v8  ;;  %v591_v24 = vrot.slane %v542_v10, %v579_v16 }
  0x47   : > { %v613_v26 = vrot.slane %v542_v10, %v601_v17  ;;  %v635_v28 = vrot.slane %v542_v10, %v623_v19  ;;  %v657_v30 = vrot.slane %v542_v10, %v645_v22  ;;  %v679_v34 = vrot.slane %v542_v10, %v667_v31 }
  0x48   : > { %v690_v36 = vrot.slane %v528_v6, %v689_v35  ;;  %v701_v38 = vrot.slane %v542_v10, %v689_v35  ;;  %v715_v41 = vrot.slane %v710_v39, %v10182_v4  ;;  %v724_v42 = vpack.i.b16 %v723_v40, %v723_v40 }
  0x4a   : > { %553 = vbcast.lane.c.b16.xlu1 %v547_v11, 272  ;;  %549 = vbcast.lane.c.b16.xlu0 %v547_v11, 256  ;;  %v729_v43 = vrot.slane %v724_v42, %v10182_v4 }
  0x4e   : > { %564 = vbcast.lane.c.b16.xlu1 %v558_v15, 272  ;;  %560 = vbcast.lane.c.b16.xlu0 %v558_v15, 256 }
  0x52   : > { %575 = vbcast.lane.c.b16.xlu1 %v569_v21, 272  ;;  %571 = vbcast.lane.c.b16.xlu0 %v569_v21, 256 }
  0x56   : > { %582 = vbcast.lane.c.b16.xlu0 %v580_v23, 256  ;;  %586 = vbcast.lane.c.b16.xlu1 %v580_v23, 272 }
  0x5a   : > { %593 = vbcast.lane.c.b16.xlu0 %v591_v24, 256  ;;  %597 = vbcast.lane.c.b16.xlu1 %v591_v24, 272 }
  0x5e   : > { %604 = vbcast.lane.c.b16.xlu0 %v602_v25, 256  ;;  %608 = vbcast.lane.c.b16.xlu1 %v602_v25, 272 }
  0x62   : > { %615 = vbcast.lane.c.b16.xlu0 %v613_v26, 256  ;;  %619 = vbcast.lane.c.b16.xlu1 %v613_v26, 272 }
  0x66   : > { %626 = vbcast.lane.c.b16.xlu0 %v624_v27, 256  ;;  %630 = vbcast.lane.c.b16.xlu1 %v624_v27, 272 }
  0x6a   : > { %637 = vbcast.lane.c.b16.xlu0 %v635_v28, 256  ;;  %641 = vbcast.lane.c.b16.xlu1 %v635_v28, 272 }
  0x6e   : > { %648 = vbcast.lane.c.b16.xlu0 %v646_v29, 256  ;;  %652 = vbcast.lane.c.b16.xlu1 %v646_v29, 272 }
  0x72   : > { %659 = vbcast.lane.c.b16.xlu0 %v657_v30, 256  ;;  %663 = vbcast.lane.c.b16.xlu1 %v657_v30, 272 }
  0x76   : > { %670 = vbcast.lane.c.b16.xlu0 %v668_v32, 256  ;;  %674 = vbcast.lane.c.b16.xlu1 %v668_v32, 272 }
  0x7a   : > { %681 = vbcast.lane.c.b16.xlu0 %v679_v34, 256  ;;  %685 = vbcast.lane.c.b16.xlu1 %v679_v34, 272 }
  0x7e   : > { %692 = vbcast.lane.c.b16.xlu0 %v690_v36, 256  ;;  %696 = vbcast.lane.c.b16.xlu1 %v690_v36, 272 }
  0x82   : > { %703 = vbcast.lane.c.b16.xlu0 %v701_v38, 256  ;;  %707 = vbcast.lane.c.b16.xlu1 %v701_v38, 272 }
  0x86   : > { %717 = vbcast.lane.c.b16.xlu0 %v715_v41, 256  ;;  %721 = vbcast.lane.c.b16.xlu1 %v715_v41, 272 }
  0x8a   : > { %731 = vbcast.lane.c.b16.xlu0 %v729_v43, 256  ;;  %735 = vbcast.lane.c.b16.xlu1 %v729_v43, 272 }
  0xb8   : > { %v540_v44 = vpop.permute.xlu1 %539  ;;  %v536_v45 = vpop.permute.xlu0 %535 }
  0xb9   : > { %v746_v46 = vshll.u32 %v540_v44, 16  ;;  %v741_v47 = vshll.u32 %v536_v45, 16  ;;  %v964_v48 = vrot.slane %v540_v44, 1  ;;  %v739_v49 = vshrl.u32 %v536_v45, 16 }
  0xba   : > { %v963_v52 = vrot.slane %v536_v45, 1 }
  0xbb   : > { %v748_v50 = vrot.slane %v746_v46, 1  ;;  %v743_v51 = vrot.slane %v741_v47, 1 }
  0xbc   : > { %v554_v53 = vpop.permute.xlu1 %553  ;;  %v550_v54 = vpop.permute.xlu0 %549  ;;  %v965_v59 = vsel %vm962_vm2, %v963_v52, %v964_v48 }
  0xbd   : > { %v744_v55 = vor.u32 %v743_v51, %v739_v49  ;;  %v758_v56 = vshll.u32 %v554_v53, 16  ;;  %v753_v57 = vshll.u32 %v550_v54, 16  ;;  %v751_v62 = vshrl.u32 %v550_v54, 16 }
  0xbe   : > { %v967_v5 = vrot.slane %v554_v53, 1  ;;  %v966_v6 = vrot.slane %v550_v54, 1 }
  0xbf   : > { %v749_v58 = vsel %vm737_vm3, %v744_v55, %v748_v50  ;;  %v760_v61 = vrot.slane %v758_v56, 1  ;;  %v755_v63 = vrot.slane %v753_v57, 1 }
  0xc0   : > { %v1047_v60 = vsel %vm1045_vm4, %v536_v45, %v749_v58  ;;  %v565_v0 = vpop.permute.xlu1 %564  ;;  %v561_v2 = vpop.permute.xlu0 %560  ;;  %v968_v22 = vsel %vm962_vm2, %v966_v6, %v967_v5 }
  0xc1   : > { %v1080_v3 = vsel %vm1078_vm5, %v1047_v60, %v965_v59  ;;  %v770_v7 = vshll.u32 %v565_v0, 16  ;;  %v756_v9 = vor.u32 %v755_v63, %v751_v62  ;;  %v765_v10 = vshll.u32 %v561_v2, 16 }
  0xc2   : > { %v1112_v11 = vsel %vm1111_vm6, %v1080_v3, %v550_v54  ;;  %v970_v12 = vrot.slane %v565_v0, 1  ;;  %v763_v13 = vshrl.u32 %v561_v2, 16  ;;  %v969_v19 = vrot.slane %v561_v2, 1 }
  0xc3   : > { %v761_v14 = vsel %vm737_vm3, %v756_v9, %v760_v61  ;;  %v772_v15 = vrot.slane %v770_v7, 1  ;;  %v767_v18 = vrot.slane %v765_v10, 1 }
  0xc4   : > { %v576_v16 = vpop.permute.xlu1 %575  ;;  %v572_v17 = vpop.permute.xlu0 %571  ;;  %v1049_v20 = vsel %vm1045_vm4, %v550_v54, %v761_v14  ;;  %v1129_v23 = vsel %vm1128_vm7, %v1112_v11, %v761_v14  ;;  %v971_v36 = vsel %vm962_vm2, %v969_v19, %v970_v12 }
  0xc5   : > { %v782_v21 = vshll.u32 %v576_v16, 16  ;;  %v973_v24 = vrot.slane %v576_v16, 1  ;;  %v768_v25 = vor.u32 %v767_v18, %v763_v13  ;;  %v1082_v26 = vsel %vm1078_vm5, %v1049_v20, %v968_v22 }
  0xc6   : > { %v1147_v27 = vsel %vm1146_vm8, %v1129_v23, %v968_v22  ;;  %v1113_v28 = vsel %vm1111_vm6, %v1082_v26, %v561_v2  ;;  %v775_v30 = vshrl.u32 %v572_v17, 16  ;;  %v777_v31 = vshll.u32 %v572_v17, 16 }
  0xc7   : > { %v1165_v29 = vsel %vm1164_vm9, %v1147_v27, %v561_v2  ;;  %v784_v32 = vrot.slane %v782_v21, 1  ;;  %v773_v35 = vsel %vm737_vm3, %v768_v25, %v772_v15  ;;  %v972_v37 = vrot.slane %v572_v17, 1 }
  0xc8   : > { %v583_v33 = vpop.permute.xlu0 %582  ;;  %v587_v34 = vpop.permute.xlu1 %586  ;;  %v1051_v40 = vsel %vm1045_vm4, %v561_v2, %v773_v35  ;;  %v1130_v41 = vsel %vm1128_vm7, %v1113_v28, %v773_v35  ;;  %v1182_v44 = vsel %vm1181_vm10, %v1165_v29, %v773_v35  ;;  %v779_v45 = vrot.slane %v777_v31, 1 }
  0xc9   : > { %v794_v38 = vshll.u32 %v587_v34, 16  ;;  %v976_v39 = vrot.slane %v587_v34, 1  ;;  %v1084_v42 = vsel %vm1078_vm5, %v1051_v40, %v971_v36  ;;  %v1148_v43 = vsel %vm1146_vm8, %v1130_v41, %v971_v36 }
  0xca   : > { %v1114_v47 = vsel %vm1111_vm6, %v1084_v42, %v572_v17  ;;  %v1166_v48 = vsel %vm1164_vm9, %v1148_v43, %v572_v17  ;;  %v1200_v49 = vsel %vm1199_vm11, %v1182_v44, %v971_v36  ;;  %v780_v52 = vor.u32 %v779_v45, %v775_v30 }
  0xcb   : > { %v796_v46 = vrot.slane %v794_v38, 1  ;;  %9265 = vmatprep.mubr.msk.bf16.mxu0 %vm1231_vm12, %v1200_v49  ;;  %v974_v53 = vsel %vm962_vm2, %v972_v37, %v973_v24  ;;  %v787_v54 = vshrl.u32 %v583_v33, 16  ;;  %v789_v55 = vshll.u32 %v583_v33, 16 }
  0xcc   : > { %v594_v50 = vpop.permute.xlu0 %593  ;;  %v598_v51 = vpop.permute.xlu1 %597  ;;  %v975_v58 = vrot.slane %v583_v33, 1  ;;  %v785_v60 = vsel %vm737_vm3, %v780_v52, %v784_v32 }
  0xcd   : > { %v806_v56 = vshll.u32 %v598_v51, 16  ;;  %v979_v57 = vrot.slane %v598_v51, 1  ;;  %v799_v59 = vshrl.u32 %v594_v50, 16  ;;  %v791_v61 = vrot.slane %v789_v55, 1 }
  0xce   : > { %v801_v62 = vshll.u32 %v594_v50, 16  ;;  %v978_v63 = vrot.slane %v594_v50, 1  ;;  %v1053_v2 = vsel %vm1045_vm4, %v572_v17, %v785_v60  ;;  %v1131_v3 = vsel %vm1128_vm7, %v1114_v47, %v785_v60 }
  0xcf   : > { %v808_v0 = vrot.slane %v806_v56, 1  ;;  %v1183_v5 = vsel %vm1181_vm10, %v1166_v48, %v785_v60  ;;  %v1086_v6 = vsel %vm1078_vm5, %v1053_v2, %v974_v53  ;;  %v1149_v7 = vsel %vm1146_vm8, %v1131_v3, %v974_v53 }
  0xd0   : > { %v1201_v9 = vsel %vm1199_vm11, %v1183_v5, %v974_v53  ;;  %v605_v10 = vpop.permute.xlu0 %604  ;;  %v609_v11 = vpop.permute.xlu1 %608  ;;  %v792_v12 = vor.u32 %v791_v61, %v787_v54  ;;  %v1115_v13 = vsel %vm1111_vm6, %v1086_v6, %v583_v33  ;;  %v977_v16 = vsel %vm962_vm2, %v975_v58, %v976_v39 }
  0xd1   : > { %9266 = vmatmul.mubr.msk.bf16.vlgmr.msra.gmra.mrb[0].mxu0 %vm1231_vm12, %v1201_v9  ;;  %v818_v14 = vshll.u32 %v609_v11, 16  ;;  %v982_v15 = vrot.slane %v609_v11, 1  ;;  %v1167_v18 = vsel %vm1164_vm9, %v1149_v7, %v583_v33  ;;  %v803_v19 = vrot.slane %v801_v62, 1 }
  0xd2   : > { %v797_v17 = vsel %vm737_vm3, %v792_v12, %v796_v46  ;;  %v980_v20 = vsel %vm962_vm2, %v978_v63, %v979_v57  ;;  %v811_v36 = vshrl.u32 %v605_v10, 16  ;;  %v813_v37 = vshll.u32 %v605_v10, 16 }
  0xd3   : > { %v820_v21 = vrot.slane %v818_v14, 1  ;;  %v1055_v22 = vsel %vm1045_vm4, %v583_v33, %v797_v17  ;;  %v1132_v23 = vsel %vm1128_vm7, %v1115_v13, %v797_v17  ;;  %v1184_v24 = vsel %vm1181_vm10, %v1167_v18, %v797_v17 }
  0xd4   : > { %v1088_v25 = vsel %vm1078_vm5, %v1055_v22, %v977_v16  ;;  %v1150_v26 = vsel %vm1146_vm8, %v1132_v23, %v977_v16  ;;  %v1202_v27 = vsel %vm1199_vm11, %v1184_v24, %v977_v16  ;;  %v616_v28 = vpop.permute.xlu0 %615  ;;  %v620_v29 = vpop.permute.xlu1 %619  ;;  %v804_v30 = vor.u32 %v803_v19, %v799_v59 }
  0xd5   : > { %v1116_v31 = vsel %vm1111_vm6, %v1088_v25, %v594_v50  ;;  %9269 = vmatprep.mubr.msk.bf16.mxu0 %vm1231_vm12, %v1202_v27  ;;  %v830_v32 = vshll.u32 %v620_v29, 16  ;;  %v985_v34 = vrot.slane %v620_v29, 1  ;;  %v1168_v33 = vsel %vm1164_vm9, %v1150_v26, %v594_v50 }
  0xd6   : > { %v809_v35 = vsel %vm737_vm3, %v804_v30, %v808_v0  ;;  %v981_v38 = vrot.slane %v605_v10, 1  ;;  %v815_v46 = vrot.slane %v813_v37, 1  ;;  %v823_v52 = vshrl.u32 %v616_v28, 16 }
  0xd7   : > { %v832_v39 = vrot.slane %v830_v32, 1  ;;  %v1057_v40 = vsel %vm1045_vm4, %v594_v50, %v809_v35  ;;  %v1133_v41 = vsel %vm1128_vm7, %v1116_v31, %v809_v35  ;;  %v1185_v42 = vsel %vm1181_vm10, %v1168_v33, %v809_v35 }
  0xd8   : > { %v1090_v43 = vsel %vm1078_vm5, %v1057_v40, %v980_v20  ;;  %v1151_v44 = vsel %vm1146_vm8, %v1133_v41, %v980_v20  ;;  %v1203_v45 = vsel %vm1199_vm11, %v1185_v42, %v980_v20  ;;  %v627_v47 = vpop.permute.xlu0 %626  ;;  %v631_v48 = vpop.permute.xlu1 %630  ;;  %v983_v51 = vsel %vm962_vm2, %v981_v38, %v982_v15 }
  0xd9   : > { %v1117_v49 = vsel %vm1111_vm6, %v1090_v43, %v605_v10  ;;  %9270 = vmatmul.mubr.msk.bf16.gmra.mrb[4].mxu0 %vm1231_vm12, %v1203_v45  ;;  %v1169_v50 = vsel %vm1164_vm9, %v1151_v44, %v605_v10  ;;  %v816_v53 = vor.u32 %v815_v46, %v811_v36  ;;  %v825_v54 = vshll.u32 %v616_v28, 16 }
  0xda   : > { %v984_v55 = vrot.slane %v616_v28, 1  ;;  %v842_v56 = vshll.u32 %v631_v48, 16  ;;  %v988_v57 = vrot.slane %v631_v48, 1  ;;  %v835_v58 = vshrl.u32 %v627_v47, 16 }
  0xdb   : > { %v837_v59 = vshll.u32 %v627_v47, 16  ;;  %v987_v60 = vrot.slane %v627_v47, 1  ;;  %v821_v61 = vsel %vm737_vm3, %v816_v53, %v820_v21  ;;  %v827_v62 = vrot.slane %v825_v54, 1 }
  0xdc   : > { %v986_v63 = vsel %vm962_vm2, %v984_v55, %v985_v34  ;;  %v844_v0 = vrot.slane %v842_v56, 1  ;;  %v638_v2 = vpop.permute.xlu0 %637  ;;  %v642_v3 = vpop.permute.xlu1 %641  ;;  %v1059_v5 = vsel %vm1045_vm4, %v605_v10, %v821_v61  ;;  %v1134_v6 = vsel %vm1128_vm7, %v1117_v49, %v821_v61 }
  0xdd   : > { %v1186_v7 = vsel %vm1181_vm10, %v1169_v50, %v821_v61  ;;  %v854_v9 = vshll.u32 %v642_v3, 16  ;;  %v1092_v11 = vsel %vm1078_vm5, %v1059_v5, %v983_v51  ;;  %v1152_v12 = vsel %vm1146_vm8, %v1134_v6, %v983_v51 }
  0xde   : > { %v1204_v13 = vsel %vm1199_vm11, %v1186_v7, %v983_v51  ;;  %v828_v14 = vor.u32 %v827_v62, %v823_v52  ;;  %v1118_v15 = vsel %vm1111_vm6, %v1092_v11, %v616_v28  ;;  %v1170_v16 = vsel %vm1164_vm9, %v1152_v12, %v616_v28 }
  0xdf   : > { %9273 = vmatprep.mubr.msk.bf16.mxu0 %vm1231_vm12, %v1204_v13  ;;  %v856_v17 = vrot.slane %v854_v9, 1  ;;  %v991_v10 = vrot.slane %v642_v3, 1  ;;  %v839_v19 = vrot.slane %v837_v59, 1  ;;  %v989_v20 = vsel %vm962_vm2, %v987_v60, %v988_v57 }
  0xe0   : > { %v833_v18 = vsel %vm737_vm3, %v828_v14, %v832_v39  ;;  %v847_v21 = vshrl.u32 %v638_v2, 16  ;;  %v10275_v22 = vpop.permute.xlu0 %648  ;;  %v653_v23 = vpop.permute.xlu1 %652  ;;  %v849_v27 = vshll.u32 %v638_v2, 16 }
  0xe1   : > { %v1061_v24 = vsel %vm1045_vm4, %v616_v28, %v833_v18  ;;  %v1135_v25 = vsel %vm1128_vm7, %v1118_v15, %v833_v18  ;;  %v1187_v26 = vsel %vm1181_vm10, %v1170_v16, %v833_v18  ;;  %v840_v32 = vor.u32 %v839_v19, %v835_v58 }
  0xe2   : > { %v1094_v29 = vsel %vm1078_vm5, %v1061_v24, %v986_v63  ;;  %v1153_v30 = vsel %vm1146_vm8, %v1135_v25, %v986_v63  ;;  %v1205_v31 = vsel %vm1199_vm11, %v1187_v26, %v986_v63  ;;  %v851_v35 = vrot.slane %v849_v27, 1 }
  0xe3   : > { %9274 = vmatmul.mubr.msk.bf16.gmra.mrb[8].mxu0 %vm1231_vm12, %v1205_v31  ;;  %v1119_v34 = vsel %vm1111_vm6, %v1094_v29, %v627_v47  ;;  %v1171_v33 = vsel %vm1164_vm9, %v1153_v30, %v627_v47  ;;  %v990_v28 = vrot.slane %v638_v2, 1  ;;  %v845_v36 = vsel %vm737_vm3, %v840_v32, %v844_v0 }
  0xe4   : > { %v866_v37 = vshll.u32 %v653_v23, 16  ;;  %v994_v38 = vrot.slane %v653_v23, 1  ;;  %v10287_v39 = vpop.permute.xlu0 %659  ;;  %v664_v40 = vpop.permute.xlu1 %663  ;;  %v859_v41 = vshrl.u32 %v10275_v22, 16  ;;  %v1063_v42 = vsel %vm1045_vm4, %v627_v47, %v845_v36 }
  0xe5   : > { %v1136_v43 = vsel %vm1128_vm7, %v1119_v34, %v845_v36  ;;  %v1188_v44 = vsel %vm1181_vm10, %v1171_v33, %v845_v36  ;;  %v852_v45 = vor.u32 %v851_v35, %v847_v21  ;;  %v1096_v46 = vsel %vm1078_vm5, %v1063_v42, %v989_v20 }
  0xe6   : > { %v1154_v48 = vsel %vm1146_vm8, %v1136_v43, %v989_v20  ;;  %v1206_v49 = vsel %vm1199_vm11, %v1188_v44, %v989_v20  ;;  %v992_v51 = vsel %vm962_vm2, %v990_v28, %v991_v10  ;;  %v1120_v50 = vsel %vm1111_vm6, %v1096_v46, %v638_v2 }
  0xe7   : > { %9277 = vmatprep.mubr.msk.bf16.mxu0 %vm1231_vm12, %v1206_v49  ;;  %v857_v52 = vsel %vm737_vm3, %v852_v45, %v856_v17  ;;  %v1172_v47 = vsel %vm1164_vm9, %v1154_v48, %v638_v2  ;;  %v868_v53 = vrot.slane %v866_v37, 1  ;;  %v878_v57 = vshll.u32 %v664_v40, 16 }
  0xe8   : > { %v1065_v54 = vsel %vm1045_vm4, %v638_v2, %v857_v52  ;;  %v1137_v55 = vsel %vm1128_vm7, %v1120_v50, %v857_v52  ;;  %v1189_v56 = vsel %vm1181_vm10, %v1172_v47, %v857_v52  ;;  %v10304_v58 = vpop.permute.xlu0 %670  ;;  %v675_v59 = vpop.permute.xlu1 %674  ;;  %v997_v63 = vrot.slane %v664_v40, 1 }
  0xe9   : > { %v1098_v60 = vsel %vm1078_vm5, %v1065_v54, %v992_v51  ;;  %v1155_v61 = vsel %vm1146_vm8, %v1137_v55, %v992_v51  ;;  %v1207_v62 = vsel %vm1199_vm11, %v1189_v56, %v992_v51  ;;  %v880_v0 = vrot.slane %v878_v57, 1 }
  0xea   : > { %v861_v3 = vshll.u32 %v10275_v22, 16  ;;  %v993_v2 = vrot.slane %v10275_v22, 1  ;;  %v1121_v5 = vsel %vm1111_vm6, %v1098_v60, %v10275_v22  ;;  %v1173_v6 = vsel %vm1164_vm9, %v1155_v61, %v10275_v22 }
  0xeb   : > { %9278 = vmatmul.mubr.msk.bf16.gmra.mrb[12].mxu0 %vm1231_vm12, %v1207_v62  ;;  %v871_v7 = vshrl.u32 %v10287_v39, 16  ;;  %v873_v9 = vshll.u32 %v10287_v39, 16  ;;  %v996_v11 = vrot.slane %v10287_v39, 1  ;;  %v890_v14 = vshll.u32 %v675_v59, 16 }
  0xec   : > { %v863_v12 = vrot.slane %v861_v3, 1  ;;  %v995_v13 = vsel %vm962_vm2, %v993_v2, %v994_v38  ;;  %v1000_v15 = vrot.slane %v675_v59, 1  ;;  %v10320_v16 = vpop.permute.xlu0 %681  ;;  %v686_v17 = vpop.permute.xlu1 %685  ;;  %v883_v24 = vshrl.u32 %v10304_v58, 16 }
  0xed   : > { %v875_v10 = vrot.slane %v873_v9, 1  ;;  %v998_v18 = vsel %vm962_vm2, %v996_v11, %v997_v63  ;;  %v902_v19 = vshll.u32 %v686_v17, 16  ;;  %v1003_v20 = vrot.slane %v686_v17, 1 }
  0xee   : > { %v864_v21 = vor.u32 %v863_v12, %v859_v41  ;;  %v892_v23 = vrot.slane %v890_v14, 1  ;;  %v885_v25 = vshll.u32 %v10304_v58, 16  ;;  %v999_v29 = vrot.slane %v10304_v58, 1 }
  0xef   : > { %v876_v26 = vor.u32 %v875_v10, %v871_v7  ;;  %v904_v27 = vrot.slane %v902_v19, 1  ;;  %v895_v30 = vshrl.u32 %v10320_v16, 16  ;;  %v897_v34 = vshll.u32 %v10320_v16, 16 }
  0xf0   : > { %v869_v31 = vsel %vm737_vm3, %v864_v21, %v868_v53  ;;  %v887_v32 = vrot.slane %v885_v25, 1  ;;  %v1002_v33 = vrot.slane %v10320_v16, 1  ;;  %v10330_v35 = vpop.permute.xlu0 %692  ;;  %v10332_v28 = vpop.permute.xlu1 %696  ;;  %v1001_v50 = vsel %vm962_vm2, %v999_v29, %v1000_v15 }
  0xf1   : > { %v1067_v36 = vsel %vm1045_vm4, %v10275_v22, %v869_v31  ;;  %v1138_v37 = vsel %vm1128_vm7, %v1121_v5, %v869_v31  ;;  %v1190_v38 = vsel %vm1181_vm10, %v1173_v6, %v869_v31  ;;  %v881_v40 = vsel %vm737_vm3, %v876_v26, %v880_v0 }
  0xf2   : > { %v1100_v41 = vsel %vm1078_vm5, %v1067_v36, %v995_v13  ;;  %v1156_v42 = vsel %vm1146_vm8, %v1138_v37, %v995_v13  ;;  %v1208_v43 = vsel %vm1199_vm11, %v1190_v38, %v995_v13  ;;  %v1069_v44 = vsel %vm1045_vm4, %v10287_v39, %v881_v40 }
  0xf3   : > { %v1122_v45 = vsel %vm1111_vm6, %v1100_v41, %v10287_v39  ;;  %9281 = vmatprep.mubr.msk.bf16.mxu0 %vm1231_vm12, %v1208_v43  ;;  %v1102_v22 = vsel %vm1078_vm5, %v1069_v44, %v998_v18  ;;  %v1174_v46 = vsel %vm1164_vm9, %v1156_v42, %v10287_v39  ;;  %v888_v48 = vor.u32 %v887_v32, %v883_v24 }
  0xf4   : > { %v1139_v49 = vsel %vm1128_vm7, %v1122_v45, %v881_v40  ;;  %v1191_v51 = vsel %vm1181_vm10, %v1174_v46, %v881_v40  ;;  %v1123_v52 = vsel %vm1111_vm6, %v1102_v22, %v10304_v58  ;;  %v10355_v47 = vpop.permute.xlu0 %703  ;;  %v708_v53 = vpop.permute.xlu1 %707  ;;  %v899_v39 = vrot.slane %v897_v34, 1 }
  0xf5   : > { %v1157_v54 = vsel %vm1146_vm8, %v1139_v49, %v998_v18  ;;  %v1209_v55 = vsel %vm1199_vm11, %v1191_v51, %v998_v18  ;;  %v893_v56 = vsel %vm737_vm3, %v888_v48, %v892_v23  ;;  %v1004_v61 = vsel %vm962_vm2, %v1002_v33, %v1003_v20 }
  0xf6   : > { %9282 = vmatmul.mubr.msk.bf16.gmra.mrb[16].mxu0 %vm1231_vm12, %v1209_v55  ;;  %v1071_v57 = vsel %vm1045_vm4, %v10304_v58, %v893_v56  ;;  %v1140_v59 = vsel %vm1128_vm7, %v1123_v52, %v893_v56  ;;  %v1175_v60 = vsel %vm1164_vm9, %v1157_v54, %v10304_v58  ;;  %v900_v3 = vor.u32 %v899_v39, %v895_v30 }
  0xf7   : > { %v1104_v62 = vsel %vm1078_vm5, %v1071_v57, %v1001_v50  ;;  %v1158_v63 = vsel %vm1146_vm8, %v1140_v59, %v1001_v50  ;;  %v1192_v0 = vsel %vm1181_vm10, %v1175_v60, %v893_v56  ;;  %v914_v7 = vshll.u32 %v10332_v28, 16 }
  0xf8   : > { %v1124_v2 = vsel %vm1111_vm6, %v1104_v62, %v10320_v16  ;;  %v1210_v5 = vsel %vm1199_vm11, %v1192_v0, %v1001_v50  ;;  %v1176_v6 = vsel %vm1164_vm9, %v1158_v63, %v10320_v16  ;;  %v10376_v58 = vpop.permute.xlu0 %717  ;;  %v10378_v9 = vpop.permute.xlu1 %721  ;;  %v905_v11 = vsel %vm737_vm3, %v900_v3, %v904_v27 }
  0xf9   : > { %9285 = vmatprep.mubr.msk.bf16.mxu0 %vm1231_vm12, %v1210_v5  ;;  %v1006_v12 = vrot.slane %v10332_v28, 1  ;;  %v926_v13 = vshll.u32 %v708_v53, 16  ;;  %v1009_v14 = vrot.slane %v708_v53, 1  ;;  %v1073_v15 = vsel %vm1045_vm4, %v10320_v16, %v905_v11 }
  0xfa   : > { %v1141_v17 = vsel %vm1128_vm7, %v1124_v2, %v905_v11  ;;  %v1193_v10 = vsel %vm1181_vm10, %v1176_v6, %v905_v11  ;;  %v916_v18 = vrot.slane %v914_v7, 1  ;;  %v1106_v19 = vsel %vm1078_vm5, %v1073_v15, %v1004_v61 }
  0xfb   : > { %v1159_v20 = vsel %vm1146_vm8, %v1141_v17, %v1004_v61  ;;  %v1211_v21 = vsel %vm1199_vm11, %v1193_v10, %v1004_v61  ;;  %v928_v23 = vrot.slane %v926_v13, 1  ;;  %v907_v24 = vshrl.u32 %v10330_v35, 16 }
  0xfc   : > { %v909_v25 = vshll.u32 %v10330_v35, 16  ;;  %v1005_v26 = vrot.slane %v10330_v35, 1  ;;  %v1125_v16 = vsel %vm1111_vm6, %v1106_v19, %v10330_v35  ;;  %v1177_v27 = vsel %vm1164_vm9, %v1159_v20, %v10330_v35  ;;  %v732_v32 = vpop.permute.xlu0 %731  ;;  %v736_v37 = vpop.permute.xlu1 %735 }
  0xfd   : > { %v919_v29 = vshrl.u32 %v10355_v47, 16  ;;  %v921_v30 = vshll.u32 %v10355_v47, 16  ;;  %v1008_v31 = vrot.slane %v10355_v47, 1  ;;  %v1012_v28 = vshrl.u32 %v10376_v58, 16 }
  0xfe   : > { %9286 = vmatmul.mubr.msk.bf16.gmra.mrb[20].mxu0 %vm1231_vm12, %v1211_v21  ;;  %v911_v34 = vrot.slane %v909_v25, 1  ;;  %v1007_v33 = vsel %vm962_vm2, %v1005_v26, %v1006_v12  ;;  %v1014_v36 = vshll.u32 %v10376_v58, 16  ;;  %v1019_v41 = vshll.u32 %v10378_v9, 16 }
  0xff   : > { %v923_v38 = vrot.slane %v921_v30, 1  ;;  %v1010_v40 = vsel %vm962_vm2, %v1008_v31, %v1009_v14  ;;  %v1026_v42 = vrot.slane %v10378_v9, 1  ;;  %v1029_v45 = vshrl.u32 %v732_v32, 16 }
 0x100   : > { %v912_v43 = vor.u32 %v911_v34, %v907_v24  ;;  %v1016_v44 = vrot.slane %v1014_v36, 1  ;;  %v1031_v22 = vshll.u32 %v732_v32, 16  ;;  %v1021_v48 = vrot.slane %v1019_v41, 1  ;;  %v9418_v41 = vld [vmem:[%s12627_s4 + $0x88] sm:$0xff]  }
 0x101   : > { %v924_v46 = vor.u32 %v923_v38, %v919_v29  ;;  %v1042_v49 = vrot.slane %v732_v32, 1  ;;  %v1036_v51 = vshll.u32 %v736_v37, 16  ;;  %v1043_v53 = vrot.slane %v736_v37, 1 }
 0x102   : > { %v917_v50 = vsel %vm737_vm3, %v912_v43, %v916_v18  ;;  %v1033_v52 = vrot.slane %v1031_v22, 1  ;;  %v1017_v54 = vor.u32 %v1016_v44, %v1012_v28  ;;  %v1025_v13 = vrot.slane %v10376_v58, 1  ;;  %v9420_v43 = vld [vmem:[%s12627_s4] sm:$0xff]   ;;  %v9421_v44 = vld [vmem:[%s12627_s4 + $0x48] sm:$0xff]   ;;  %v9423_v22 = vld [vmem:[%s12627_s4 + $0x50] sm:$0xff]  }
 0x103   : > { %v1075_v55 = vsel %vm1045_vm4, %v10330_v35, %v917_v50  ;;  %v1142_v56 = vsel %vm1128_vm7, %v1125_v16, %v917_v50  ;;  %v1194_v39 = vsel %vm1181_vm10, %v1177_v27, %v917_v50  ;;  %v929_v57 = vsel %vm737_vm3, %v924_v46, %v928_v23  ;;  %v9424_v46 = vld [vmem:[%s12627_s4 + $0x10] sm:$0xff]  }
 0x104   : > { %v1108_v59 = vsel %vm1078_vm5, %v1075_v55, %v1007_v33  ;;  %v1160_v60 = vsel %vm1146_vm8, %v1142_v56, %v1007_v33  ;;  %v1212_v61 = vsel %vm1199_vm11, %v1194_v39, %v1007_v33  ;;  %v1077_v62 = vsel %vm1045_vm4, %v10355_v47, %v929_v57 }
 0x105   : > { %v1126_v63 = vsel %vm1111_vm6, %v1108_v59, %v10355_v47  ;;  %9289 = vmatprep.mubr.msk.bf16.mxu0 %vm1231_vm12, %v1212_v61  ;;  %v1110_v35 = vsel %vm1078_vm5, %v1077_v62, %v1010_v40  ;;  %v1178_v0 = vsel %vm1164_vm9, %v1160_v60, %v10355_v47  ;;  %v1034_v3 = vor.u32 %v1033_v52, %v1029_v45  ;;  %v9422_v45 = vld [vmem:[%s12627_s4 + $0x8] sm:$0xff]   ;;  %v9427_v52 = vld [vmem:[%s12627_s4 + $0x60] sm:$0xff]  }
 0x106   : > { %v1143_v2 = vsel %vm1128_vm7, %v1126_v63, %v929_v57  ;;  %v1195_v5 = vsel %vm1181_vm10, %v1178_v0, %v929_v57  ;;  %v1127_v6 = vsel %vm1111_vm6, %v1110_v35, %v10376_v58  ;;  %v1038_v7 = vrot.slane %v1036_v51, 1  ;;  %v10505_v51 = vld [vmem:[%s12626_s3] ss:$0 sm:$0xff]  ;;  %v9429_v61 = vld [vmem:[%s12627_s4 + $0x68] sm:$0xff]  }
 0x107   : > { %v1161_v9 = vsel %vm1146_vm8, %v1143_v2, %v1010_v40  ;;  %v1213_v11 = vsel %vm1199_vm11, %v1195_v5, %v1010_v40  ;;  %v1022_v12 = vsel %vm737_vm3, %v1017_v54, %v1021_v48  ;;  %v1027_v15 = vsel %vm962_vm2, %v1025_v13, %v1026_v42  ;;  %v9417_v40 = vld [vmem:[%s12627_s4 + $0x80] sm:$0xff]   ;;  %v9425_v48 = vld [vmem:[%s12627_s4 + $0x58] sm:$0xff]   ;;  %v9430_v62 = vld [vmem:[%s12627_s4 + $0x28] sm:$0xff]  }
 0x108   : > { %9290 = vmatmul.mubr.msk.bf16.gmra.mrb[24].mxu0 %vm1231_vm12, %v1213_v11  ;;  %v1145_v47 = vsel %vm1128_vm7, %v1127_v6, %v1022_v12  ;;  %v1179_v14 = vsel %vm1164_vm9, %v1161_v9, %v10376_v58  ;;  %v1039_v10 = vsel %vm737_vm3, %v1034_v3, %v1038_v7  ;;  %v1044_v20 = vsel %vm962_vm2, %v1042_v49, %v1043_v53  ;;  %v9419_v42 = vld [vmem:[%s12627_s4 + $0x40] sm:$0xff]   ;;  %v9426_v49 = vld [vmem:[%s12627_s4 + $0x18] sm:$0xff]   ;;  %v9431_v7 = vld [vmem:[%s12627_s4 + $0x70] sm:$0xff]  }
 0x109   : > { %v1196_v17 = vsel %vm1181_vm10, %v1179_v14, %v1022_v12  ;;  %v1163_v18 = vsel %vm1146_vm8, %v1145_v47, %v1027_v15  ;;  %v12651_v24 = vmov 0   ;;  %v12681_v26 = vmov 0  ;;  %9297 = vmatprep.subr.bf16.mxu0 %v9417_v40  ;;  %9021 = vmatprep.subr.bf16.mxu1 %v9419_v42  ;;  %v9428_v53 = vld [vmem:[%s12627_s4 + $0x20] sm:$0xff]   ;;  %v9432_v9 = vld [vmem:[%s12627_s4 + $0x30] sm:$0xff]  }
 0x10a   : > { %v1214_v19 = vsel %vm1199_vm11, %v1196_v17, %v1027_v15  ;;  %v1180_v21 = vsel %vm1164_vm9, %v1163_v18, %v732_v32  ;;  %v1483_v25 = vrot.slane %v12651_v24, 7  ;;  %v12682_v26 = vsel %vm10449_vm15, 4294967295, %v12681_v26  ;;  %9298 = vmatpush3.bf16.msra.mxu0 %v9417_v40  ;;  %9022 = vmatpush3.bf16.msra.mxu1 %v9420_v43 }
 0x10b   : > { %9293 = vmatprep.mubr.msk.bf16.mxu0 %vm1231_vm12, %v1214_v19  ;;  %v1198_v23 = vsel %vm1181_vm10, %v1180_v21, %v1039_v10  ;;  %12683 = vst [vmem:[#allocation15_spill] sm:$0xff] %v12682_v26  ;;  %9299 = vmatprep.subr.bf16.mxu0 %v9418_v41  ;;  %vm2217_vm4 = vcmask 785408   ;;  %vm4544_vm6 = vcmask 1041409   ;;  %vm4547_vm7 = vcmask 1042434  }
 0x10c   : > { %v1216_v58 = vsel %vm1199_vm11, %v1198_v23, %v1044_v20  ;;  %v10455_v16 = vsel %vm10449_vm15, 0, %v1483_v25  ;;  %v1653_v29 = vsel %vm10449_vm15, %v1483_v25, 0  ;;  %9023 = vmatprep.subr.bf16.mxu1 %v9421_v44  ;;  %v9434_v25 = vld [vmem:[%s12627_s4 + $0x38] sm:$0xff]   ;;  %vm4550_vm8 = vcmask 1043459  }
 0x10d   : > { %v1673_v27 = vshll.u32 %v10455_v16, 16  ;;  %v1671_v30 = vshrl.u32 %v10455_v16, 16  ;;  %v1678_v32 = vshll.u32 %v1653_v29, 16  ;;  %v1926_v36 = vrot.slane %v10455_v16, 1 }
 0x10e   : > { %v1927_v37 = vrot.slane %v1653_v29, 1  ;;  %9300 = vmatpush3.bf16.msra.mxu0 %v9418_v41  ;;  %9024 = vmatpush3.bf16.msra.mxu1 %v9422_v45  ;;  %vm4553_vm9 = vcmask 1044484   ;;  %vm4556_vm10 = vcmask 1045509   ;;  %vm4559_vm11 = vcmask 1046534  }
 0x10f   : > { %v1675_v31 = vrot.slane %v1673_v27, 1  ;;  %v1680_v33 = vrot.slane %v1678_v32, 1  ;;  %9025 = vmatprep.subr.bf16.mxu1 %v9423_v22 }
 0x110   : > { %9294 = vmatmul.mubr.msk.bf16.gmra.mrb[28].mxu0 %vm1231_vm12, %v1216_v58  ;;  %v10468_v38 = vsel %vm962_vm2, %v1926_v36, %v1927_v37  ;;  %v9433_v58 = vld [vmem:[%s12627_s4 + $0x78] sm:$0xff]   ;;  %vm4562_vm12 = vcmask 1047559  }
 0x111   : > { %v1676_v34 = vor.u32 %v1675_v31, %v1671_v30 }
 0x112   : > { %9026 = vmatpush3.bf16.msra.mxu1 %v9424_v46 }
 0x113   : > { %v10462_v28 = vsel %vm737_vm3, %v1676_v34, %v1680_v33  ;;  %9027 = vmatprep.subr.bf16.mxu1 %v9425_v48 }
 0x114   : > { %1862 = vrot.lane.b32.xlu1 %v10462_v28, %s12647_s20  ;;  %s12685_s20 = smov 32  }
 0x116   : > { %9028 = vmatpush3.bf16.msra.mxu1 %v9426_v49 }
 0x117   : > { %9029 = vmatprep.subr.bf16.mxu1 %v9427_v52 }
 0x118   : > { %1974 = vrot.lane.b32.xlu1 %v10468_v38, %s12649_s24  ;;  %s511_s24 = sand.u32 1, %s9982_s19  }
 0x119   : > { %s512_s17 = scalar_lea.vmem [#allocation5], %s511_s24 }
 0x11a   : > { %9030 = vmatpush3.bf16.msra.mxu1 %v9428_v53  ;;  %s8309_s30 = sshll.u32 %s512_s17, 4  ;;  %s12583_s30 = int_to_ptr.vmem [resolvable:$true] %s8309_s30 }
 0x11b   : > { %9031 = vmatprep.subr.bf16.mxu1 %v9429_v61  ;;  %s9924_s22 = scalar_lea.vmem %s12583_s30, 16 }
 0x11c   : > { %p9925_p6 = scmp.ne.s32.totalorder %s12583_s30, %s9924_s22 }
 0x11e   : > { %9032 = vmatpush3.bf16.msra.mxu1 %v9430_v62  ;;  %p9926_p10 = pnand %p9925_p6, %p12749_p9 }
 0x11f   : > { %9033 = vmatprep.subr.bf16.mxu1 %v9431_v7 }
 0x120   : > { %p9927_p12 = pneg %p9926_p10 }
 0x122   : > { %9034 = vmatpush3.bf16.msra.mxu1 %v9432_v9 }
 0x123   : > { %9035 = vmatprep.subr.bf16.mxu1 %v9433_v58 }
 0x126   : > { %9036 = vmatpush3.bf16.msra.mxu1 %v9434_v25 }
 0x1a4   : > { %v9267_v50 = vpop.f32.mrb[0].mxu0 }
 0x1a5   : > { %v1314_v54 = vadd.f32 %v9267_v50, %v10505_v51  ;;  %v1305_v55 = vpop.f32.mrb[1].mxu0 }
 0x1a6   : > { %v1306_v56 = vadd.f32 %v10505_v51, %v1305_v55  ;;  %v9268_v39 = vpop.f32.mrb[2].mxu0 }
 0x1a7   : > { %v1317_v57 = vadd.f32 %v9268_v39, %v10505_v51  ;;  %v1308_v59 = vpop.f32.mrb[3].mxu0  ;;  %v1434_v63 = vmax.f32 %v1314_v54, 0.0 }
 0x1a8   : > { %v1309_v60 = vadd.f32 %v10505_v51, %v1308_v59  ;;  %v1432_v0 = vmax.f32 %v1306_v56, 0.0 }
 0x1a9   : > { %v1435_v35 = vmax.f32 %v1317_v57, 0.0 }
 0x1aa   : > { %v1433_v3 = vmax.f32 %v1309_v60, 0.0 }
 0x1ab   : > { %v1465_v2 = vpack.c.bf16 %v1435_v35, %v1434_v63 }
 0x1ac   : > { %v1464_v5 = vpack.c.bf16 %v1433_v3, %v1432_v0  ;;  %v9271_v6 = vpop.f32.mrb[4].mxu0 }
 0x1ad   : > { %v1495_v11 = vshrl.u32 %v1465_v2, 16  ;;  %v1330_v12 = vadd.f32 %v9271_v6, %v10505_v51  ;;  %v1321_v13 = vpop.f32.mrb[5].mxu0  ;;  %v1498_v10 = vshll.u32 %v1465_v2, 16 }
 0x1ae   : > { %v1488_v47 = vshrl.u32 %v1464_v5, 16  ;;  %v1322_v14 = vadd.f32 %v10505_v51, %v1321_v13  ;;  %v9272_v15 = vpop.f32.mrb[6].mxu0  ;;  %v1491_v21 = vshll.u32 %v1464_v5, 16 }
 0x1af   : > { %v1497_v17 = vrot.slane %v1495_v11, 7  ;;  %v1333_v18 = vadd.f32 %v9272_v15, %v10505_v51  ;;  %v1324_v19 = vpop.f32.mrb[7].mxu0  ;;  %v1438_v30 = vmax.f32 %v1330_v12, 0.0 }
 0x1b0   : > { %v1490_v20 = vrot.slane %v1488_v47, 7  ;;  %v1325_v23 = vadd.f32 %v10505_v51, %v1324_v19  ;;  %v1436_v34 = vmax.f32 %v1322_v14, 0.0 }
 0x1b1   : > { %v1500_v27 = vor.u32 %v1498_v10, %v1497_v17  ;;  %v1655_v29 = vsel %vm10449_vm15, %v1497_v17, 0  ;;  %v1439_v31 = vmax.f32 %v1333_v18, 0.0 }
 0x1b2   : > { %v1493_v32 = vor.u32 %v1491_v21, %v1490_v20  ;;  %v1437_v33 = vmax.f32 %v1325_v23, 0.0  ;;  %v1933_v40 = vrot.slane %v1655_v29, 1  ;;  %v10547_v41 = vsel %vm10449_vm15, %v1490_v20, 0 }
 0x1b3   : > { %v1467_v36 = vpack.c.bf16 %v1439_v31, %v1438_v30  ;;  %v10543_v37 = vsel %vm10449_vm15, 0, %v1500_v27  ;;  %v1702_v45 = vshll.u32 %v1655_v29, 16  ;;  %v1930_v53 = vrot.slane %v10547_v41, 1 }
 0x1b4   : > { %v1466_v42 = vpack.c.bf16 %v1437_v33, %v1436_v34  ;;  %2009 = vrot.lane.b32.xlu1 %v10543_v37, %s9999_s25  ;;  %2087 = vrot.lane.b32.xlu0 %v10543_v37, %s12684_s26  ;;  %v1932_v43 = vrot.slane %v10543_v37, 1  ;;  %v10556_v44 = vsel %vm10449_vm15, 0, %v1493_v32  ;;  %v1697_v48 = vshll.u32 %v10543_v37, 16 }
 0x1b5   : > { %v1509_v22 = vshrl.u32 %v1467_v36, 16  ;;  %v1929_v46 = vrot.slane %v10556_v44, 1  ;;  %v1695_v54 = vshrl.u32 %v10543_v37, 16  ;;  %v1512_v56 = vshll.u32 %v1467_v36, 16 }
 0x1b6   : > { %v1502_v49 = vshrl.u32 %v1466_v42, 16  ;;  %v9275_v50 = vpop.f32.mrb[8].mxu0  ;;  %v1934_v52 = vsel %vm962_vm2, %v1932_v43, %v1933_v40  ;;  %v1699_v59 = vrot.slane %v1697_v48, 1  ;;  %v1505_v61 = vshll.u32 %v1466_v42, 16 }
 0x1b7   : > { %v1511_v55 = vrot.slane %v1509_v22, 7  ;;  %v1346_v39 = vadd.f32 %v9275_v50, %v10505_v51  ;;  %v1337_v57 = vpop.f32.mrb[9].mxu0  ;;  %9301 = vmatprep.mubr.msk.bf16.mxu0 %vm2151_vm0, %v1934_v52  ;;  %v1704_v35 = vrot.slane %v1702_v45, 1  ;;  %v1931_v5 = vsel %vm962_vm2, %v1929_v46, %v1930_v53 }
 0x1b8   : > { %v1504_v60 = vrot.slane %v1502_v49, 7  ;;  %v1338_v62 = vadd.f32 %v10505_v51, %v1337_v57  ;;  %v9276_v63 = vpop.f32.mrb[10].mxu0  ;;  %2057 = vrot.lane.b32.xlu0 %v1934_v52, %s12685_s20  ;;  %2007 = vrot.lane.b32.xlu1 %v10556_v44, %s9999_s25  ;;  %v1685_v6 = vshll.u32 %v10556_v44, 16  ;;  %v1700_v15 = vor.u32 %v1699_v59, %v1695_v54 }
 0x1b9   : > { %v1514_v0 = vor.u32 %v1512_v56, %v1511_v55  ;;  %v1349_v3 = vadd.f32 %v9276_v63, %v10505_v51  ;;  %v1340_v2 = vpop.f32.mrb[11].mxu0  ;;  %v10574_v7 = vsel %vm10449_vm15, %v1511_v55, 0  ;;  %v1442_v47 = vmax.f32 %v1346_v39, 0.0 }
 0x1ba   : > { %v1507_v9 = vor.u32 %v1505_v61, %v1504_v60  ;;  %v10578_v11 = vsel %vm10449_vm15, %v1504_v60, 0  ;;  %v1341_v12 = vadd.f32 %v10505_v51, %v1340_v2  ;;  %v1440_v10 = vmax.f32 %v1338_v62, 0.0 }
 0x1bb   : > { %v10583_v13 = vsel %vm10449_vm15, 0, %v1514_v0  ;;  %v1443_v14 = vmax.f32 %v1349_v3, 0.0  ;;  %v1936_v20 = vrot.slane %v10578_v11, 1  ;;  %v1939_v58 = vrot.slane %v10574_v7, 1 }
 0x1bc   : > { %v10587_v17 = vsel %vm10449_vm15, 0, %v1507_v9  ;;  %v1441_v18 = vmax.f32 %v1341_v12, 0.0  ;;  %1978 = vrot.lane.b32.xlu1 %v1934_v52, %s12684_s26  ;;  %2055 = vrot.lane.b32.xlu0 %v1931_v5, %s12685_s20  ;;  %v1938_v19 = vrot.slane %v10583_v13, 1  ;;  %v10596_v27 = vsel %vm737_vm3, %v1700_v15, %v1704_v35 }
 0x1bd   : > { %v1469_v21 = vpack.c.bf16 %v1443_v14, %v1442_v47  ;;  %v1935_v23 = vrot.slane %v10587_v17, 1  ;;  %v1683_v30 = vshrl.u32 %v10556_v44, 16  ;;  %v1687_v31 = vrot.slane %v1685_v6, 1 }
 0x1be   : > { %v1468_v25 = vpack.c.bf16 %v1441_v18, %v1440_v10  ;;  %v9279_v29 = vpop.f32.mrb[12].mxu0  ;;  %v10603_v33 = vsel %vm962_vm2, %v1938_v19, %v1939_v58  ;;  %v1690_v46 = vshll.u32 %v10547_v41, 16  ;;  %v1721_v3 = vshll.u32 %v10583_v13, 16 }
 0x1bf   : > { %v1523_v32 = vshrl.u32 %v1469_v21, 16  ;;  %v10600_v34 = vsel %vm962_vm2, %v1935_v23, %v1936_v20  ;;  %v1362_v36 = vadd.f32 %v9279_v29, %v10505_v51  ;;  %v1353_v40 = vpop.f32.mrb[13].mxu0  ;;  %v1526_v42 = vshll.u32 %v1469_v21, 16 }
 0x1c0   : > { %v1516_v43 = vshrl.u32 %v1468_v25, 16  ;;  %1976 = vrot.lane.b32.xlu1 %v1931_v5, %s12684_s26  ;;  %2119 = vrot.lane.b32.xlu0 %v10596_v27, %s9999_s25  ;;  %v1354_v45 = vadd.f32 %v10505_v51, %v1353_v40  ;;  %v9280_v22 = vpop.f32.mrb[14].mxu0  ;;  %v1519_v49 = vshll.u32 %v1468_v25, 16  ;;  %v1688_v39 = vor.u32 %v1687_v31, %v1683_v30 }
 0x1c1   : > { %v1525_v48 = vrot.slane %v1523_v32, 7  ;;  %9302 = vmatmul.mubr.msk.bf16.vlgmr.msra.gmra.mrb[32].mxu0 %vm2151_vm0, %v10600_v34  ;;  %v1446_v50 = vmax.f32 %v1362_v36, 0.0  ;;  %v1365_v52 = vadd.f32 %v9280_v22, %v10505_v51  ;;  %v1356_v53 = vpop.f32.mrb[15].mxu0  ;;  %v1692_v62 = vrot.slane %v1690_v46, 1 }
 0x1c2   : > { %v1518_v54 = vrot.slane %v1516_v43, 7  ;;  %9305 = vmatprep.mubr.msk.bf16.mxu0 %vm2151_vm0, %v10603_v33  ;;  %v1444_v55 = vmax.f32 %v1354_v45, 0.0  ;;  %v1357_v56 = vadd.f32 %v10505_v51, %v1356_v53  ;;  %v1723_v23 = vrot.slane %v1721_v3, 1 }
 0x1c3   : > { %v1528_v57 = vor.u32 %v1526_v42, %v1525_v48  ;;  %v1447_v59 = vmax.f32 %v1365_v52, 0.0  ;;  %v10631_v35 = vsel %vm10449_vm15, %v1525_v48, 0  ;;  %v10639_v6 = vsel %vm737_vm3, %v1688_v39, %v1692_v62 }
 0x1c4   : > { %v1521_v41 = vor.u32 %v1519_v49, %v1518_v54  ;;  %v10619_v60 = vsel %vm10449_vm15, %v1518_v54, 0  ;;  %1866 = vrot.lane.b32.xlu1 %v10596_v27, %s12685_s20  ;;  %2091 = vrot.lane.b32.xlu0 %v10583_v13, %s12684_s26  ;;  %v1445_v61 = vmax.f32 %v1357_v56, 0.0  ;;  %v1945_v19 = vrot.slane %v10631_v35, 1 }
 0x1c5   : > { %v10627_v63 = vsel %vm10449_vm15, 0, %v1528_v57  ;;  %v1471_v0 = vpack.c.bf16 %v1447_v59, %v1446_v50  ;;  %v1942_v15 = vrot.slane %v10619_v60, 1  ;;  %v1719_v30 = vshrl.u32 %v10583_v13, 16 }
 0x1c6   : > { %v10636_v2 = vsel %vm10449_vm15, 0, %v1521_v41  ;;  %v1470_v5 = vpack.c.bf16 %v1445_v61, %v1444_v55  ;;  %v1944_v9 = vrot.slane %v10627_v63, 1  ;;  %v1709_v42 = vshll.u32 %v10587_v17, 16 }
 0x1c7   : > { %v1537_v12 = vshrl.u32 %v1471_v0, 16  ;;  %v1540_v47 = vshll.u32 %v1471_v0, 16  ;;  %v1941_v14 = vrot.slane %v10636_v2, 1  ;;  %v1726_v48 = vshll.u32 %v10574_v7, 16 }
 0x1c8   : > { %v1530_v10 = vshrl.u32 %v1470_v5, 16  ;;  %v1533_v18 = vshll.u32 %v1470_v5, 16  ;;  %1864 = vrot.lane.b32.xlu1 %v10639_v6, %s12685_s20  ;;  %2089 = vrot.lane.b32.xlu0 %v10587_v17, %s12684_s26  ;;  %v10655_v29 = vsel %vm962_vm2, %v1944_v9, %v1945_v19  ;;  %v1724_v53 = vor.u32 %v1723_v23, %v1719_v30 }
 0x1c9   : > { %v1539_v20 = vrot.slane %v1537_v12, 7  ;;  %v10650_v21 = vsel %vm962_vm2, %v1941_v14, %v1942_v15  ;;  %v9283_v58 = vpop.f32.mrb[16].mxu0  ;;  %v1711_v59 = vrot.slane %v1709_v42, 1  ;;  %v1728_v62 = vrot.slane %v1726_v48, 1 }
 0x1ca   : > { %v1532_v25 = vrot.slane %v1530_v10, 7  ;;  %9306 = vmatmul.mubr.msk.bf16.gmra.mrb[36].mxu0 %vm2151_vm0, %v10650_v21  ;;  %v1378_v31 = vadd.f32 %v9283_v58, %v10505_v51  ;;  %v1369_v32 = vpop.f32.mrb[17].mxu0  ;;  %v1707_v9 = vshrl.u32 %v10587_v17, 16  ;;  %v1714_v12 = vshll.u32 %v10578_v11, 16 }
 0x1cb   : > { %v1542_v36 = vor.u32 %v1540_v47, %v1539_v20  ;;  %v10661_v40 = vsel %vm10449_vm15, %v1539_v20, 0  ;;  %9309 = vmatprep.mubr.msk.bf16.mxu0 %vm2151_vm0, %v10655_v29  ;;  %v1370_v43 = vadd.f32 %v10505_v51, %v1369_v32  ;;  %v9284_v45 = vpop.f32.mrb[18].mxu0  ;;  %v10703_v15 = vsel %vm737_vm3, %v1724_v53, %v1728_v62 }
 0x1cc   : > { %v1535_v22 = vor.u32 %v1533_v18, %v1532_v25  ;;  %v10669_v46 = vsel %vm10449_vm15, %v1532_v25, 0  ;;  %2013 = vrot.lane.b32.xlu1 %v10583_v13, %s9999_s25  ;;  %2061 = vrot.lane.b32.xlu0 %v10603_v33, %s12685_s20  ;;  %v1951_v49 = vrot.slane %v10661_v40, 1  ;;  %v1372_v50 = vpop.f32.mrb[19].mxu0  ;;  %v1450_v39 = vmax.f32 %v1378_v31, 0.0 }
 0x1cd   : > { %v10679_v52 = vsel %vm10449_vm15, 0, %v1542_v36  ;;  %v1948_v54 = vrot.slane %v10669_v46, 1  ;;  %v1381_v57 = vadd.f32 %v9284_v45, %v10505_v51  ;;  %v1448_v41 = vmax.f32 %v1370_v43, 0.0 }
 0x1ce   : > { %v10684_v55 = vsel %vm10449_vm15, 0, %v1535_v22  ;;  %v1950_v56 = vrot.slane %v10679_v52, 1  ;;  %v1373_v61 = vadd.f32 %v10505_v51, %v1372_v50  ;;  %v1712_v19 = vor.u32 %v1711_v59, %v1707_v9 }
 0x1cf   : > { %v1947_v7 = vrot.slane %v10684_v55, 1  ;;  %v1451_v3 = vmax.f32 %v1381_v57, 0.0  ;;  %v1716_v32 = vrot.slane %v1714_v12, 1 }
 0x1d0   : > { %2011 = vrot.lane.b32.xlu1 %v10587_v17, %s9999_s25  ;;  %2059 = vrot.lane.b32.xlu0 %v10600_v34, %s12685_s20  ;;  %v10695_v0 = vsel %vm962_vm2, %v1950_v56, %v1951_v49  ;;  %v1449_v47 = vmax.f32 %v1373_v61, 0.0 }
 0x1d1   : > { %v10698_v5 = vsel %vm962_vm2, %v1947_v7, %v1948_v54  ;;  %v9287_v14 = vpop.f32.mrb[20].mxu0  ;;  %v1473_v10 = vpack.c.bf16 %v1451_v3, %v1450_v39  ;;  %v10717_v48 = vsel %vm737_vm3, %v1712_v19, %v1716_v32 }
 0x1d2   : > { %9310 = vmatmul.mubr.msk.bf16.gmra.mrb[40].mxu0 %vm2151_vm0, %v10698_v5  ;;  %v1385_v18 = vpop.f32.mrb[21].mxu0  ;;  %v1472_v20 = vpack.c.bf16 %v1449_v47, %v1448_v41  ;;  %v1394_v23 = vadd.f32 %v9287_v14, %v10505_v51 }
 0x1d3   : > { %9313 = vmatprep.mubr.msk.bf16.mxu0 %vm2151_vm0, %v10695_v0  ;;  %v1386_v58 = vadd.f32 %v10505_v51, %v1385_v18  ;;  %v9288_v11 = vpop.f32.mrb[22].mxu0  ;;  %v1551_v25 = vshrl.u32 %v1473_v10, 16  ;;  %v1554_v30 = vshll.u32 %v1473_v10, 16 }
 0x1d4   : > { %1982 = vrot.lane.b32.xlu1 %v10603_v33, %s12684_s26  ;;  %2123 = vrot.lane.b32.xlu0 %v10703_v15, %s9999_s25  ;;  %v1388_v31 = vpop.f32.mrb[23].mxu0  ;;  %v1544_v36 = vshrl.u32 %v1472_v20, 16  ;;  %v1547_v42 = vshll.u32 %v1472_v20, 16  ;;  %v1454_v45 = vmax.f32 %v1394_v23, 0.0  ;;  %v1397_v22 = vadd.f32 %v9288_v11, %v10505_v51 }
 0x1d5   : > { %v1553_v43 = vrot.slane %v1551_v25, 7  ;;  %v1452_v50 = vmax.f32 %v1386_v58, 0.0  ;;  %v1389_v33 = vadd.f32 %v10505_v51, %v1388_v31  ;;  %v1745_v58 = vshll.u32 %v10627_v63, 16 }
 0x1d6   : > { %v1546_v49 = vrot.slane %v1544_v36, 7  ;;  %v1455_v56 = vmax.f32 %v1397_v22, 0.0  ;;  %v1733_v22 = vshll.u32 %v10636_v2, 16 }
 0x1d7   : > { %v1556_v53 = vor.u32 %v1554_v30, %v1553_v43  ;;  %v10726_v54 = vsel %vm10449_vm15, %v1553_v43, 0  ;;  %v1453_v7 = vmax.f32 %v1389_v33, 0.0  ;;  %v1747_v33 = vrot.slane %v1745_v58, 1 }
 0x1d8   : > { %1980 = vrot.lane.b32.xlu1 %v10600_v34, %s12684_s26  ;;  %2121 = vrot.lane.b32.xlu0 %v10717_v48, %s9999_s25  ;;  %v1549_v39 = vor.u32 %v1547_v42, %v1546_v49  ;;  %v10730_v57 = vsel %vm10449_vm15, %v1546_v49, 0  ;;  %v1957_v41 = vrot.slane %v10726_v54, 1  ;;  %v1475_v61 = vpack.c.bf16 %v1455_v56, %v1454_v45 }
 0x1d9   : > { %v10734_v59 = vsel %vm10449_vm15, 0, %v1556_v53  ;;  %v1954_v34 = vrot.slane %v10730_v57, 1  ;;  %v1474_v9 = vpack.c.bf16 %v1453_v7, %v1452_v50 }
 0x1da   : > { %v10740_v62 = vsel %vm10449_vm15, 0, %v1549_v39  ;;  %v1956_v3 = vrot.slane %v10734_v59, 1  ;;  %v1565_v14 = vshrl.u32 %v1475_v61, 16  ;;  %v1568_v10 = vshll.u32 %v1475_v61, 16 }
 0x1db   : > { %v9291_v12 = vpop.f32.mrb[24].mxu0  ;;  %v1953_v47 = vrot.slane %v10740_v62, 1  ;;  %v1558_v19 = vshrl.u32 %v1474_v9, 16  ;;  %v1561_v20 = vshll.u32 %v1474_v9, 16 }
 0x1dc   : > { %1870 = vrot.lane.b32.xlu1 %v10703_v15, %s12685_s20  ;;  %2095 = vrot.lane.b32.xlu0 %v10627_v63, %s12684_s26  ;;  %v1401_v18 = vpop.f32.mrb[25].mxu0  ;;  %v10753_v25 = vsel %vm962_vm2, %v1956_v3, %v1957_v41  ;;  %v1567_v30 = vrot.slane %v1565_v14, 7  ;;  %v1410_v36 = vadd.f32 %v9291_v12, %v10505_v51 }
 0x1dd   : > { %v9292_v23 = vpop.f32.mrb[26].mxu0  ;;  %v10750_v11 = vsel %vm962_vm2, %v1953_v47, %v1954_v34  ;;  %v1560_v32 = vrot.slane %v1558_v19, 7  ;;  %v1402_v45 = vadd.f32 %v10505_v51, %v1401_v18  ;;  %v1750_v18 = vshll.u32 %v10631_v35, 16 }
 0x1de   : > { %v1404_v31 = vpop.f32.mrb[27].mxu0  ;;  %9314 = vmatmul.mubr.msk.bf16.gmra.mrb[44].mxu0 %vm2151_vm0, %v10750_v11  ;;  %v1570_v42 = vor.u32 %v1568_v10, %v1567_v30  ;;  %v10764_v43 = vsel %vm10449_vm15, %v1567_v30, 0  ;;  %v1458_v41 = vmax.f32 %v1410_v36, 0.0  ;;  %v1413_v61 = vadd.f32 %v9292_v23, %v10505_v51 }
 0x1df   : > { %9317 = vmatprep.mubr.msk.bf16.mxu0 %vm2151_vm0, %v10753_v25  ;;  %v1563_v49 = vor.u32 %v1561_v20, %v1560_v32  ;;  %v10772_v50 = vsel %vm10449_vm15, %v1560_v32, 0  ;;  %v1963_v39 = vrot.slane %v10764_v43, 1  ;;  %v1456_v12 = vmax.f32 %v1402_v45, 0.0 }
 0x1e0   : > { %1868 = vrot.lane.b32.xlu1 %v10717_v48, %s12685_s20  ;;  %2093 = vrot.lane.b32.xlu0 %v10636_v2, %s12684_s26  ;;  %v10776_v53 = vsel %vm10449_vm15, 0, %v1570_v42  ;;  %v1960_v56 = vrot.slane %v10772_v50, 1  ;;  %v1405_v47 = vadd.f32 %v10505_v51, %v1404_v31  ;;  %v1743_v10 = vshrl.u32 %v10627_v63, 16 }
 0x1e1   : > { %v10782_v7 = vsel %vm10449_vm15, 0, %v1563_v49  ;;  %v1962_v34 = vrot.slane %v10776_v53, 1  ;;  %v1459_v19 = vmax.f32 %v1413_v61, 0.0  ;;  %v1735_v23 = vrot.slane %v1733_v22, 1 }
 0x1e2   : > { %v1959_v9 = vrot.slane %v10782_v7, 1  ;;  %v1457_v32 = vmax.f32 %v1405_v47, 0.0  ;;  %v1748_v42 = vor.u32 %v1747_v33, %v1743_v10  ;;  %v1731_v45 = vshrl.u32 %v10636_v2, 16 }
 0x1e3   : > { %v9295_v3 = vpop.f32.mrb[28].mxu0  ;;  %v10798_v30 = vsel %vm962_vm2, %v1962_v34, %v1963_v39  ;;  %v1477_v31 = vpack.c.bf16 %v1459_v19, %v1458_v41  ;;  %v1738_v35 = vshll.u32 %v10619_v60, 16  ;;  %v1752_v33 = vrot.slane %v1750_v18, 1 }
 0x1e4   : > { %2017 = vrot.lane.b32.xlu1 %v10627_v63, %s9999_s25  ;;  %2065 = vrot.lane.b32.xlu0 %v10655_v29, %s12685_s20  ;;  %v1417_v14 = vpop.f32.mrb[29].mxu0  ;;  %v10795_v58 = vsel %vm962_vm2, %v1959_v9, %v1960_v56  ;;  %v1476_v22 = vpack.c.bf16 %v1457_v32, %v1456_v12  ;;  %v1426_v49 = vadd.f32 %v9295_v3, %v10505_v51 }
 0x1e5   : > { %v9296_v20 = vpop.f32.mrb[30].mxu0  ;;  %v1418_v56 = vadd.f32 %v10505_v51, %v1417_v14  ;;  %v1579_v39 = vshrl.u32 %v1477_v31, 16  ;;  %v1582_v34 = vshll.u32 %v1477_v31, 16  ;;  %v1736_v41 = vor.u32 %v1735_v23, %v1731_v45 }
 0x1e6   : > { %v1420_v36 = vpop.f32.mrb[31].mxu0  ;;  %9318 = vmatmul.mubr.msk.bf16.gmra.mrb[48].mxu0 %vm2151_vm0, %v10795_v58  ;;  %v1572_v61 = vshrl.u32 %v1476_v22, 16  ;;  %v1575_v9 = vshll.u32 %v1476_v22, 16  ;;  %v10813_v47 = vsel %vm737_vm3, %v1748_v42, %v1752_v33  ;;  %v1462_v19 = vmax.f32 %v1426_v49, 0.0 }
 0x1e7   : > { %9321 = vmatprep.mubr.msk.bf16.mxu0 %vm2151_vm0, %v10798_v30  ;;  %v1581_v10 = vrot.slane %v1579_v39, 7  ;;  %v1429_v60 = vadd.f32 %v9296_v20, %v10505_v51  ;;  %v1740_v3 = vrot.slane %v1738_v35, 1  ;;  %v1460_v14 = vmax.f32 %v1418_v56, 0.0 }
 0x1e8   : > { %2015 = vrot.lane.b32.xlu1 %v10636_v2, %s9999_s25  ;;  %2063 = vrot.lane.b32.xlu0 %v10650_v21, %s12685_s20  ;;  %v1574_v12 = vrot.slane %v1572_v61, 7  ;;  %v1421_v18 = vadd.f32 %v10505_v51, %v1420_v36 }
 0x1e9   : > { %v1584_v23 = vor.u32 %v1582_v34, %v1581_v10  ;;  %v10823_v32 = vsel %vm10449_vm15, %v1581_v10, 0  ;;  %v1463_v42 = vmax.f32 %v1429_v60, 0.0  ;;  %v10826_v45 = vsel %vm737_vm3, %v1736_v41, %v1740_v3 }
 0x1ea   : > { %v1577_v20 = vor.u32 %v1575_v9, %v1574_v12  ;;  %v1461_v31 = vmax.f32 %v1421_v18, 0.0  ;;  %v1969_v36 = vrot.slane %v10823_v32, 1 }
 0x1eb   : > { %v10834_v35 = vsel %vm10449_vm15, 0, %v1584_v23  ;;  %v1479_v22 = vpack.c.bf16 %v1463_v42, %v1462_v19 }
 0x1ec   : > { %1986 = vrot.lane.b32.xlu1 %v10655_v29, %s12684_s26  ;;  %2127 = vrot.lane.b32.xlu0 %v10813_v47, %s9999_s25  ;;  %v10830_v29 = vsel %vm10449_vm15, %v1574_v12, 0  ;;  %v10844_v49 = vsel %vm10449_vm15, 0, %v1577_v20  ;;  %v1968_v56 = vrot.slane %v10834_v35, 1  ;;  %v1478_v33 = vpack.c.bf16 %v1461_v31, %v1460_v14 }
 0x1ed   : > { %v1966_v51 = vrot.slane %v10830_v29, 1  ;;  %v1965_v39 = vrot.slane %v10844_v49, 1  ;;  %v1593_v34 = vshrl.u32 %v1479_v22, 16  ;;  %v1596_v41 = vshll.u32 %v1479_v22, 16 }
 0x1ee   : > { %v1586_v61 = vshrl.u32 %v1478_v33, 16  ;;  %v1589_v9 = vshll.u32 %v1478_v33, 16  ;;  %v1769_v14 = vshll.u32 %v10679_v52, 16 }
 0x1ef   : > { %v10849_v10 = vsel %vm962_vm2, %v1965_v39, %v1966_v51  ;;  %v1595_v19 = vrot.slane %v1593_v34, 7  ;;  %v1774_v39 = vshll.u32 %v10661_v40, 16  ;;  %v1757_v34 = vshll.u32 %v10684_v55, 16 }
 0x1f0   : > { %1984 = vrot.lane.b32.xlu1 %v10650_v21, %s12684_s26  ;;  %2125 = vrot.lane.b32.xlu0 %v10826_v45, %s9999_s25  ;;  %v10852_v21 = vsel %vm962_vm2, %v1968_v56, %v1969_v36  ;;  %v1588_v60 = vrot.slane %v1586_v61, 7  ;;  %v1767_v56 = vshrl.u32 %v10679_v52, 16  ;;  %v1771_v33 = vrot.slane %v1769_v14, 1 }
 0x1f1   : > { %9322 = vmatmul.mubr.msk.bf16.gmra.mrb[52].mxu0 %vm2151_vm0, %v10849_v10  ;;  %v1598_v3 = vor.u32 %v1596_v41, %v1595_v19  ;;  %v10862_v12 = vsel %vm10449_vm15, %v1595_v19, 0  ;;  %v1776_v40 = vrot.slane %v1774_v39, 1  ;;  %v1755_v19 = vshrl.u32 %v10684_v55, 16 }
 0x1f2   : > { %9325 = vmatprep.mubr.msk.bf16.mxu0 %vm2151_vm0, %v10852_v21  ;;  %v1591_v18 = vor.u32 %v1589_v9, %v1588_v60  ;;  %v10869_v23 = vsel %vm10449_vm15, %v1588_v60, 0  ;;  %v2053_v31 = vrot.slane %v10862_v12, 1  ;;  %v1772_v9 = vor.u32 %v1771_v33, %v1767_v56 }
 0x1f3   : > { %v10873_v42 = vsel %vm10449_vm15, 0, %v1598_v3  ;;  %v1972_v20 = vrot.slane %v10869_v23, 1  ;;  %v1759_v60 = vrot.slane %v1757_v34, 1  ;;  %v1762_v3 = vshll.u32 %v10669_v46, 16 }
 0x1f4   : > { %1874 = vrot.lane.b32.xlu1 %v10813_v47, %s12685_s20  ;;  %2099 = vrot.lane.b32.xlu0 %v10679_v52, %s12684_s26  ;;  %v10883_v51 = vsel %vm10449_vm15, 0, %v1591_v18  ;;  %v2052_v36 = vrot.slane %v10873_v42, 1  ;;  %v10911_v14 = vsel %vm737_vm3, %v1772_v9, %v1776_v40  ;;  %v1786_v34 = vshll.u32 %v10730_v57, 16 }
 0x1f5   : > { %v1971_v22 = vrot.slane %v10883_v51, 1  ;;  %v1760_v18 = vor.u32 %v1759_v60, %v1755_v19 }
 0x1f6   : > { %v10894_v61 = vsel %vm962_vm2, %v2052_v36, %v2053_v31  ;;  %v1798_v31 = vshll.u32 %v10726_v54, 16  ;;  %v1781_v36 = vshll.u32 %v10740_v62, 16  ;;  %v1863_v54 = vpop.permute.xlu1 %1862  ;;  %v1788_v19 = vrot.slane %v1786_v34, 1 }
 0x1f7   : > { %v10891_v41 = vsel %vm962_vm2, %v1971_v22, %v1972_v20  ;;  %v1764_v20 = vrot.slane %v1762_v3, 1  ;;  %v1779_v22 = vshrl.u32 %v10740_v62, 16  ;;  %vm2184_vm2 = vcmask 523264  }
 0x1f8   : > { %1872 = vrot.lane.b32.xlu1 %v10826_v45, %s12685_s20  ;;  %2097 = vrot.lane.b32.xlu0 %v10684_v55, %s12684_s26  ;;  %v1800_v33 = vrot.slane %v1798_v31, 1  ;;  %v1783_v39 = vrot.slane %v1781_v36, 1  ;;  %v1805_v31 = vshll.u32 %v10782_v7, 16  ;;  %v2153_v36 = vsel %vm2151_vm0, %v10455_v16, %v1863_v54 }
 0x1f9   : > { %9326 = vmatmul.mubr.msk.bf16.gmra.mrb[56].mxu0 %vm2151_vm0, %v10891_v41  ;;  %v10920_v46 = vsel %vm737_vm3, %v1760_v18, %v1764_v20  ;;  %v1817_v18 = vshll.u32 %v10776_v53, 16  ;;  %v1803_v34 = vshrl.u32 %v10782_v7, 16 }
 0x1fa   : > { %9329 = vmatprep.mubr.msk.bf16.mxu0 %vm2151_vm0, %v10894_v61  ;;  %v1784_v40 = vor.u32 %v1783_v39, %v1779_v22  ;;  %v1975_v60 = vpop.permute.xlu1 %1974 }
 0x1fb   : > { %v2186_v54 = vsel %vm2184_vm2, %v2153_v36, %v1975_v60 }
 0x1fc   : > { %2021 = vrot.lane.b32.xlu1 %v10679_v52, %s9999_s25  ;;  %2069 = vrot.lane.b32.xlu0 %v10695_v0, %s12685_s20  ;;  %v10956_v57 = vsel %vm737_vm3, %v1784_v40, %v1788_v19  ;;  %v1807_v40 = vrot.slane %v1805_v31, 1  ;;  %v1810_v19 = vshll.u32 %v10772_v50, 16 }
 0x1fe   : > { %v1812_v50 = vrot.slane %v1810_v19, 1  ;;  %v1829_v19 = vshll.u32 %v10844_v49, 16 }
 0x200   : > { %2019 = vrot.lane.b32.xlu1 %v10684_v55, %s9999_s25  ;;  %2067 = vrot.lane.b32.xlu0 %v10698_v5, %s12685_s20 }
 0x201   : > { %9330 = vmatmul.mubr.msk.bf16.gmra.mrb[60].mxu0 %vm2151_vm0, %v10468_v38  ;;  %v1791_v38 = vshrl.u32 %v10734_v59, 16 }
 0x204   : > { %1990 = vrot.lane.b32.xlu1 %v10695_v0, %s12684_s26  ;;  %2131 = vrot.lane.b32.xlu0 %v10911_v14, %s9999_s25  ;;  %v1793_v0 = vshll.u32 %v10734_v59, 16 }
 0x208   : > { %1988 = vrot.lane.b32.xlu1 %v10698_v5, %s12684_s26  ;;  %2129 = vrot.lane.b32.xlu0 %v10920_v46, %s9999_s25  ;;  %v1795_v5 = vrot.slane %v1793_v0, 1  ;;  %v1815_v0 = vshrl.u32 %v10776_v53, 16 }
 0x20a   : > { %v1796_v56 = vor.u32 %v1795_v5, %v1791_v38  ;;  %v1819_v38 = vrot.slane %v1817_v18, 1  ;;  %v1822_v5 = vshll.u32 %v10764_v43, 16 }
 0x20c   : > { %1878 = vrot.lane.b32.xlu1 %v10911_v14, %s12685_s20  ;;  %2103 = vrot.lane.b32.xlu0 %v10734_v59, %s12684_s26  ;;  %v10949_v9 = vsel %vm737_vm3, %v1796_v56, %v1800_v33  ;;  %v1820_v33 = vor.u32 %v1819_v38, %v1815_v0  ;;  %v1824_v39 = vrot.slane %v1822_v5, 1  ;;  %v1808_v5 = vor.u32 %v1807_v40, %v1803_v34 }
 0x20d   : > { %v1846_v40 = vshll.u32 %v10823_v32, 16  ;;  %v1834_v32 = vshll.u32 %v10830_v29, 16 }
 0x20f   : > { %v1836_v26 = vrot.slane %v1834_v32, 1 }
 0x210   : > { %1876 = vrot.lane.b32.xlu1 %v10920_v46, %s12685_s20  ;;  %2101 = vrot.lane.b32.xlu0 %v10740_v62, %s12684_s26 }
 0x214   : > { %2025 = vrot.lane.b32.xlu1 %v10734_v59, %s9999_s25  ;;  %2073 = vrot.lane.b32.xlu0 %v10753_v25, %s12685_s20 }
 0x218   : > { %2023 = vrot.lane.b32.xlu1 %v10740_v62, %s9999_s25  ;;  %2071 = vrot.lane.b32.xlu0 %v10750_v11, %s12685_s20 }
 0x21c   : > { %1994 = vrot.lane.b32.xlu1 %v10753_v25, %s12684_s26  ;;  %2135 = vrot.lane.b32.xlu0 %v10949_v9, %s9999_s25 }
 0x220   : > { %1992 = vrot.lane.b32.xlu1 %v10750_v11, %s12684_s26  ;;  %2133 = vrot.lane.b32.xlu0 %v10956_v57, %s9999_s25 }
 0x224   : > { %1882 = vrot.lane.b32.xlu1 %v10949_v9, %s12685_s20  ;;  %2107 = vrot.lane.b32.xlu0 %v10776_v53, %s12684_s26 }
 0x226   : > { %v10966_v25 = vpop.permute.xlu1 %2009  ;;  %v2088_v3 = vpop.permute.xlu0 %2087 }
 0x228   : > { %1880 = vrot.lane.b32.xlu1 %v10956_v57, %s12685_s20  ;;  %2105 = vrot.lane.b32.xlu0 %v10782_v7, %s12684_s26 }
 0x22a   : > { %v2008_v11 = vpop.permute.xlu1 %2007  ;;  %v10973_v20 = vpop.permute.xlu0 %2057 }
 0x22b   : > { %v2219_v60 = vsel %vm2217_vm4, %v2186_v54, %v2008_v11  ;;  %v2271_v8 = vsel %vm2151_vm0, %v10596_v27, %v10973_v20 }
 0x22c   : > { %2029 = vrot.lane.b32.xlu1 %v10776_v53, %s9999_s25  ;;  %2077 = vrot.lane.b32.xlu0 %v10798_v30, %s12685_s20 }
 0x22e   : > { %v10984_v22 = vpop.permute.xlu1 %1978  ;;  %v2056_v56 = vpop.permute.xlu0 %2055 }
 0x22f   : > { %v2268_v43 = vsel %vm2151_vm0, %v10639_v6, %v2056_v56  ;;  %v10997_v6 = vsel %vm737_vm3, %v1820_v33, %v1824_v39  ;;  %v1841_v33 = vshll.u32 %v10834_v35, 16 }
 0x230   : > { %2027 = vrot.lane.b32.xlu1 %v10782_v7, %s9999_s25  ;;  %2075 = vrot.lane.b32.xlu0 %v10795_v58, %s12685_s20  ;;  %v2315_v0 = vsel %vm2184_vm2, %v2268_v43, %v2088_v3  ;;  %v11006_v3 = vsel %vm737_vm3, %v1808_v5, %v1812_v50  ;;  %v1839_v43 = vshrl.u32 %v10834_v35, 16  ;;  %v1827_v5 = vshrl.u32 %v10844_v49, 16 }
 0x231   : > { %v1843_v34 = vrot.slane %v1841_v33, 1  ;;  %v1831_v33 = vrot.slane %v1829_v19, 1 }
 0x232   : > { %v1977_v18 = vpop.permute.xlu1 %1976  ;;  %v2120_v24 = vpop.permute.xlu0 %2119 }
 0x233   : > { %v2347_v38 = vsel %vm2217_vm4, %v2315_v0, %v2120_v24  ;;  %v1832_v4 = vor.u32 %v1831_v33, %v1827_v5  ;;  %v1858_v5 = vshll.u32 %v10869_v23, 16 }
 0x234   : > { %1998 = vrot.lane.b32.xlu1 %v10798_v30, %s12684_s26  ;;  %2139 = vrot.lane.b32.xlu0 %v10997_v6, %s9999_s25 }
 0x235   : > { %2618 = vmatprep.mubr.bf16.mxu1 %v2347_v38  ;;  %v1844_v38 = vor.u32 %v1843_v34, %v1839_v43  ;;  %v1860_v32 = vrot.slane %v1858_v5, 1 }
 0x236   : > { %2619 = vmatmul.mubr.bf16.vlgmr.msra.gmra.mrb[0].mxu1 %v2219_v60  ;;  %v1867_v31 = vpop.permute.xlu1 %1866  ;;  %v2092_v36 = vpop.permute.xlu0 %2091  ;;  %v1848_v60 = vrot.slane %v1846_v40, 1 }
 0x238   : > { %1996 = vrot.lane.b32.xlu1 %v10795_v58, %s12684_s26  ;;  %2137 = vrot.lane.b32.xlu0 %v11006_v3, %s9999_s25  ;;  %v11050_v29 = vsel %vm737_vm3, %v1844_v38, %v1848_v60 }
 0x23a   : > { %v1865_v24 = vpop.permute.xlu1 %1864  ;;  %v2090_v30 = vpop.permute.xlu0 %2089 }
 0x23b   : > { %v2155_v50 = vsel %vm2151_vm0, %v10556_v44, %v1865_v24  ;;  %v2317_v43 = vsel %vm2184_vm2, %v2271_v8, %v2090_v30  ;;  %v11062_v30 = vsel %vm737_vm3, %v1832_v4, %v1836_v26 }
 0x23c   : > { %1886 = vrot.lane.b32.xlu1 %v10997_v6, %s12685_s20  ;;  %2111 = vrot.lane.b32.xlu0 %v10834_v35, %s12684_s26  ;;  %v2188_v40 = vsel %vm2184_vm2, %v2155_v50, %v1977_v18  ;;  %v2042_v50 = vshll.u32 %v10873_v42, 16 }
 0x23d   : > { %v2222_v8 = vsel %vm2217_vm4, %v2188_v40, %v10966_v25 }
 0x23e   : > { %v11016_v11 = vpop.permute.xlu1 %2013  ;;  %v11018_v56 = vpop.permute.xlu0 %2061 }
 0x240   : > { %1884 = vrot.lane.b32.xlu1 %v11006_v3, %s12685_s20  ;;  %2109 = vrot.lane.b32.xlu0 %v10844_v49, %s12684_s26 }
 0x242   : > { %v2012_v58 = vpop.permute.xlu1 %2011  ;;  %v2060_v39 = vpop.permute.xlu0 %2059 }
 0x243   : > { %v2274_v34 = vsel %vm2151_vm0, %v10717_v48, %v2060_v39  ;;  %v1853_v39 = vshll.u32 %v10883_v51, 16 }
 0x244   : > { %2033 = vrot.lane.b32.xlu1 %v10834_v35, %s9999_s25  ;;  %2081 = vrot.lane.b32.xlu0 %v10852_v21, %s12685_s20  ;;  %v2319_v27 = vsel %vm2184_vm2, %v2274_v34, %v2092_v36  ;;  %v2047_v34 = vshll.u32 %v10862_v12, 16  ;;  %v2277_v12 = vsel %vm2151_vm0, %v10703_v15, %v11018_v56 }
 0x246   : > { %v11032_v54 = vpop.permute.xlu1 %1982  ;;  %v2124_v0 = vpop.permute.xlu0 %2123 }
 0x247   : > { %v2353_v20 = vsel %vm2217_vm4, %v2319_v27, %v2124_v0 }
 0x248   : > { %2031 = vrot.lane.b32.xlu1 %v10844_v49, %s9999_s25  ;;  %2079 = vrot.lane.b32.xlu0 %v10849_v10, %s12685_s20 }
 0x24a   : > { %v1981_v44 = vpop.permute.xlu1 %1980  ;;  %v2122_v24 = vpop.permute.xlu0 %2121 }
 0x24b   : > { %v2350_v19 = vsel %vm2217_vm4, %v2317_v43, %v2122_v24  ;;  %v2044_v43 = vrot.slane %v2042_v50, 1 }
 0x24c   : > { %2000 = vrot.lane.b32.xlu1 %v10849_v10, %s12684_s26  ;;  %2143 = vrot.lane.b32.xlu0 %v11050_v29, %s9999_s25  ;;  %v2157_v10 = vsel %vm2151_vm0, %v10543_v37, %v1867_v31  ;;  %v1851_v37 = vshrl.u32 %v10883_v51, 16  ;;  %v1855_v31 = vrot.slane %v1853_v39, 1 }
 0x24d   : > { %2626 = vmatprep.mubr.bf16.mxu1 %v2350_v19  ;;  %v2190_v4 = vsel %vm2184_vm2, %v2157_v10, %v10984_v22 }
 0x24e   : > { %2627 = vmatmul.mubr.bf16.gmra.mrb[4].mxu1 %v2222_v8  ;;  %v1871_v48 = vpop.permute.xlu1 %1870  ;;  %v2096_v18 = vpop.permute.xlu0 %2095  ;;  %v2225_v26 = vsel %vm2217_vm4, %v2190_v4, %v2012_v58  ;;  %v2040_v58 = vshrl.u32 %v10873_v42, 16  ;;  %v1856_v33 = vor.u32 %v1855_v31, %v1851_v37  ;;  %v2049_v8 = vrot.slane %v2047_v34, 1 }
 0x24f   : > { %2634 = vmatprep.mubr.bf16.mxu1 %v2353_v20  ;;  %v2161_v4 = vsel %vm2151_vm0, %v10583_v13, %v1871_v48 }
 0x250   : > { %1890 = vrot.lane.b32.xlu1 %v11050_v29, %s12685_s20  ;;  %2141 = vrot.lane.b32.xlu0 %v11062_v30, %s9999_s25  ;;  %v11096_v40 = vsel %vm737_vm3, %v1856_v33, %v1860_v32  ;;  %v2045_v19 = vor.u32 %v2044_v43, %v2040_v58 }
 0x252   : > { %v1869_v25 = vpop.permute.xlu1 %1868  ;;  %v2094_v36 = vpop.permute.xlu0 %2093  ;;  %v11110_v39 = vsel %vm737_vm3, %v2045_v19, %v2049_v8  ;;  %vm4743_vm3 = vsmask.f32 4352 }
 0x253   : > { %v2159_v24 = vsel %vm2151_vm0, %v10587_v17, %v1869_v25  ;;  %v2321_v27 = vsel %vm2184_vm2, %v2277_v12, %v2094_v36  ;;  %vm11312_vm5 = vmand %vm1265_vm1, %vm4743_vm3 }
 0x254   : > { %1888 = vrot.lane.b32.xlu1 %v11062_v30, %s12685_s20  ;;  %2115 = vrot.lane.b32.xlu0 %v10873_v42, %s12684_s26  ;;  %v2192_v25 = vsel %vm2184_vm2, %v2159_v24, %v1981_v44 }
 0x255   : > { %v2228_v15 = vsel %vm2217_vm4, %v2192_v25, %v11016_v11  ;;  %v2194_v11 = vsel %vm2184_vm2, %v2161_v4, %v11032_v54 }
 0x256   : > { %2635 = vmatmul.mubr.bf16.gmra.mrb[8].mxu1 %v2225_v26  ;;  %v11078_v0 = vpop.permute.xlu1 %2017  ;;  %v2066_v38 = vpop.permute.xlu0 %2065 }
 0x258   : > { %2002 = vrot.lane.b32.xlu1 %v10852_v21, %s12684_s26  ;;  %2113 = vrot.lane.b32.xlu0 %v10883_v51, %s12684_s26 }
 0x25a   : > { %v2016_v22 = vpop.permute.xlu1 %2015  ;;  %v2064_v60 = vpop.permute.xlu0 %2063 }
 0x25b   : > { %v2280_v17 = vsel %vm2151_vm0, %v10826_v45, %v2064_v60  ;;  %v2283_v60 = vsel %vm2151_vm0, %v10813_v47, %v2066_v38 }
 0x25c   : > { %2035 = vrot.lane.b32.xlu1 %v10883_v51, %s9999_s25  ;;  %2083 = vrot.lane.b32.xlu0 %v10891_v41, %s12685_s20  ;;  %v2323_v45 = vsel %vm2184_vm2, %v2280_v17, %v2096_v18  ;;  %v2231_v18 = vsel %vm2217_vm4, %v2194_v11, %v2016_v22 }
 0x25e   : > { %v1987_v23 = vpop.permute.xlu1 %1986  ;;  %v2128_v21 = vpop.permute.xlu0 %2127 }
 0x25f   : > { %v2359_v44 = vsel %vm2217_vm4, %v2323_v45, %v2128_v21 }
 0x260   : > { %2004 = vrot.lane.b32.xlu1 %v10891_v41, %s12684_s26  ;;  %2145 = vrot.lane.b32.xlu0 %v11096_v40, %s9999_s25 }
 0x262   : > { %v1985_v20 = vpop.permute.xlu1 %1984  ;;  %v2126_v10 = vpop.permute.xlu0 %2125 }
 0x263   : > { %v2356_v41 = vsel %vm2217_vm4, %v2321_v27, %v2126_v10 }
 0x264   : > { %1892 = vrot.lane.b32.xlu1 %v11096_v40, %s12685_s20  ;;  %2147 = vrot.lane.b32.xlu0 %v11110_v39, %s9999_s25 }
 0x265   : > { %2642 = vmatprep.mubr.bf16.mxu1 %v2356_v41 }
 0x266   : > { %2643 = vmatmul.mubr.bf16.gmra.mrb[12].mxu1 %v2228_v15  ;;  %v1875_v56 = vpop.permute.xlu1 %1874  ;;  %v2100_v36 = vpop.permute.xlu0 %2099 }
 0x267   : > { %2650 = vmatprep.mubr.bf16.mxu1 %v2359_v44  ;;  %v2165_v34 = vsel %vm2151_vm0, %v10627_v63, %v1875_v56 }
 0x268   : > { %2037 = vrot.lane.b32.xlu1 %v10873_v42, %s9999_s25  ;;  %2085 = vrot.lane.b32.xlu0 %v10894_v61, %s12685_s20  ;;  %v2198_v19 = vsel %vm2184_vm2, %v2165_v34, %v1987_v23  ;;  %s10003_s20 = smov [#allocation5]  }
 0x269   : > { %s9928_s27 = sshll.u32 %s10003_s20, 4  ;;  %s9929_s27 = int_to_ptr.vmem [resolvable:$false] %s9928_s27 }
 0x26a   : > { %v1873_v26 = vpop.permute.xlu1 %1872  ;;  %v2098_v37 = vpop.permute.xlu0 %2097  ;;  %p9931_p2 = scmp.lt.s32.totalorder %s12583_s30, %s9929_s27 }
 0x26b   : > { %v2163_v13 = vsel %vm2151_vm0, %v10636_v2, %v1873_v26  ;;  %v2325_v58 = vsel %vm2184_vm2, %v2283_v60, %v2098_v37 }
 0x26c   : > { %2117 = vrot.lane.b32.xlu0 %v10455_v16, %s12684_s26  ;;  %v2196_v22 = vsel %vm2184_vm2, %v2163_v13, %v1985_v20 }
 0x26d   : > { %v2234_v2 = vsel %vm2217_vm4, %v2196_v22, %v11078_v0 }
 0x26e   : > { %2651 = vmatmul.mubr.bf16.gmra.mrb[16].mxu1 %v2231_v18  ;;  %v2022_v31 = vpop.permute.xlu1 %2021  ;;  %v2070_v5 = vpop.permute.xlu0 %2069 }
 0x26f   : > { %v2289_v63 = vsel %vm2151_vm0, %v10911_v14, %v2070_v5 }
 0x270   : > { %2149 = vrot.lane.b32.xlu0 %v10462_v28, %s9999_s25  ;;  %s8297_s25 = scalar_lea.sflag [#allocation4], %s511_s24 }
 0x272   : > { %v2020_v42 = vpop.permute.xlu1 %2019  ;;  %v2068_v61 = vpop.permute.xlu0 %2067 }
 0x273   : > { %v2286_v54 = vsel %vm2151_vm0, %v10920_v46, %v2068_v61  ;;  %v2237_v8 = vsel %vm2217_vm4, %v2198_v19, %v2020_v42 }
 0x274   : > { %v2327_v43 = vsel %vm2184_vm2, %v2286_v54, %v2100_v36 }
 0x276   : > { %v1991_v48 = vpop.permute.xlu1 %1990  ;;  %v2132_v50 = vpop.permute.xlu0 %2131 }
 0x277   : > { %v2365_v47 = vsel %vm2217_vm4, %v2327_v43, %v2132_v50 }
 0x27a   : > { %v1989_v33 = vpop.permute.xlu1 %1988  ;;  %v2130_v32 = vpop.permute.xlu0 %2129 }
 0x27b   : > { %v2362_v28 = vsel %vm2217_vm4, %v2325_v58, %v2130_v32 }
 0x27c   : > { %2658 = vmatprep.mubr.bf16.mxu1 %v2362_v28 }
 0x27d   : > { %2659 = vmatmul.mubr.bf16.gmra.mrb[20].mxu1 %v2234_v2 }
 0x27e   : > { %v1879_v38 = vpop.permute.xlu1 %1878  ;;  %2666 = vmatprep.mubr.bf16.mxu1 %v2365_v47  ;;  %v2104_v46 = vpop.permute.xlu0 %2103 }
 0x27f   : > { %v2169_v5 = vsel %vm2151_vm0, %v10679_v52, %v1879_v38 }
 0x282   : > { %v1877_v21 = vpop.permute.xlu1 %1876  ;;  %v2102_v24 = vpop.permute.xlu0 %2101 }
 0x283   : > { %v2167_v20 = vsel %vm2151_vm0, %v10684_v55, %v1877_v21  ;;  %v2329_v15 = vsel %vm2184_vm2, %v2289_v63, %v2102_v24 }
 0x284   : > { %v2200_v23 = vsel %vm2184_vm2, %v2167_v20, %v1989_v33 }
 0x285   : > { %2667 = vmatmul.mubr.bf16.gmra.mrb[24].mxu1 %v2237_v8  ;;  %v2240_v55 = vsel %vm2217_vm4, %v2200_v23, %v2022_v31  ;;  %v2202_v31 = vsel %vm2184_vm2, %v2169_v5, %v1991_v48 }
 0x286   : > { %v2026_v12 = vpop.permute.xlu1 %2025  ;;  %v2074_v0 = vpop.permute.xlu0 %2073 }
 0x287   : > { %v2295_v34 = vsel %vm2151_vm0, %v10949_v9, %v2074_v0 }
 0x28a   : > { %v2024_v27 = vpop.permute.xlu1 %2023  ;;  %v2072_v17 = vpop.permute.xlu0 %2071 }
 0x28b   : > { %v2292_v41 = vsel %vm2151_vm0, %v10956_v57, %v2072_v17  ;;  %v2243_v13 = vsel %vm2217_vm4, %v2202_v31, %v2024_v27 }
 0x28c   : > { %v2331_v4 = vsel %vm2184_vm2, %v2292_v41, %v2104_v46 }
 0x28e   : > { %v11153_v10 = vpop.permute.xlu1 %1994  ;;  %v2136_v25 = vpop.permute.xlu0 %2135 }
 0x28f   : > { %v2371_v14 = vsel %vm2217_vm4, %v2331_v4, %v2136_v25 }
 0x292   : > { %v1993_v45 = vpop.permute.xlu1 %1992  ;;  %v2134_v56 = vpop.permute.xlu0 %2133 }
 0x293   : > { %v2368_v44 = vsel %vm2217_vm4, %v2329_v15, %v2134_v56 }
 0x294   : > { %v11162_v36 = vpop.f32.mrb[32].mxu0  ;;  %2674 = vmatprep.mubr.bf16.mxu1 %v2368_v44 }
 0x295   : > { %v11166_v26 = vpop.f32.mrb[33].mxu0  ;;  %2675 = vmatmul.mubr.bf16.gmra.mrb[28].mxu1 %v2240_v55 }
 0x296   : > { %v11169_v57 = vpop.f32.mrb[34].mxu0  ;;  %v1883_v37 = vpop.permute.xlu1 %1882  ;;  %2682 = vmatprep.mubr.bf16.mxu1 %v2371_v14 }
 0x297   : > { %v11171_v11 = vpop.f32.mrb[35].mxu0  ;;  %v2108_v18 = vpop.permute.xlu0 %2107 }
 0x29a   : > { %v1881_v42 = vpop.permute.xlu1 %1880 }
 0x29b   : > { %v2106_v61 = vpop.permute.xlu0 %2105  ;;  %v2171_v43 = vsel %vm2151_vm0, %v10740_v62, %v1881_v42 }
 0x29c   : > { %v2204_v19 = vsel %vm2184_vm2, %v2171_v43, %v1993_v45  ;;  %v2333_v8 = vsel %vm2184_vm2, %v2295_v34, %v2106_v61 }
 0x29d   : > { %v11177_v50 = vpop.f32.mrb[36].mxu0  ;;  %2683 = vmatmul.mubr.bf16.gmra.mrb[32].mxu1 %v2243_v13  ;;  %v2246_v62 = vsel %vm2217_vm4, %v2204_v19, %v2026_v12 }
 0x29e   : > { %v11179_v60 = vpop.f32.mrb[37].mxu0  ;;  %v2030_v54 = vpop.permute.xlu1 %2029 }
 0x29f   : > { %v11181_v22 = vpop.f32.mrb[38].mxu0  ;;  %v2078_v58 = vpop.permute.xlu0 %2077 }
 0x2a0   : > { %v11183_v33 = vpop.f32.mrb[39].mxu0  ;;  %v2301_v13 = vsel %vm2151_vm0, %v10997_v6, %v2078_v58 }
 0x2a2   : > { %v2028_v32 = vpop.permute.xlu1 %2027 }
 0x2a3   : > { %v2076_v28 = vpop.permute.xlu0 %2075 }
 0x2a4   : > { %v2298_v21 = vsel %vm2151_vm0, %v11006_v3, %v2076_v28  ;;  %v2173_v3 = vsel %vm2151_vm0, %v10734_v59, %v1883_v37 }
 0x2a5   : > { %v11185_v52 = vpop.f32.mrb[40].mxu0  ;;  %v2335_v20 = vsel %vm2184_vm2, %v2298_v21, %v2108_v18  ;;  %v2206_v12 = vsel %vm2184_vm2, %v2173_v3, %v11153_v10 }
 0x2a6   : > { %v11187_v2 = vpop.permute.xlu1 %1998  ;;  %v11189_v48 = vpop.f32.mrb[41].mxu0  ;;  %v2249_v56 = vsel %vm2217_vm4, %v2206_v12, %v2028_v32 }
 0x2a7   : > { %v2140_v47 = vpop.permute.xlu0 %2139  ;;  %v11193_v38 = vpop.f32.mrb[42].mxu0 }
 0x2a8   : > { %v11195_v46 = vpop.f32.mrb[43].mxu0  ;;  %v2377_v9 = vsel %vm2217_vm4, %v2335_v20, %v2140_v47 }
 0x2aa   : > { %v1997_v24 = vpop.permute.xlu1 %1996 }
 0x2ab   : > { %v2138_v27 = vpop.permute.xlu0 %2137 }
 0x2ac   : > { %v2374_v17 = vsel %vm2217_vm4, %v2333_v8, %v2138_v27 }
 0x2ad   : > { %2690 = vmatprep.mubr.bf16.mxu1 %v2374_v17 }
 0x2ae   : > { %2691 = vmatmul.mubr.bf16.gmra.mrb[36].mxu1 %v2246_v62  ;;  %v1887_v25 = vpop.permute.xlu1 %1886 }
 0x2af   : > { %2698 = vmatprep.mubr.bf16.mxu1 %v2377_v9  ;;  %v2112_v0 = vpop.permute.xlu0 %2111 }
 0x2b1   : > { %v11209_v41 = vpop.f32.mrb[44].mxu0 }
 0x2b2   : > { %v1885_v63 = vpop.permute.xlu1 %1884  ;;  %v11211_v15 = vpop.f32.mrb[45].mxu0 }
 0x2b3   : > { %v2110_v23 = vpop.permute.xlu0 %2109  ;;  %v11215_v45 = vpop.f32.mrb[46].mxu0  ;;  %v2175_v61 = vsel %vm2151_vm0, %v10782_v7, %v1885_v63 }
 0x2b4   : > { %v11218_v44 = vpop.f32.mrb[47].mxu0  ;;  %v2208_v43 = vsel %vm2184_vm2, %v2175_v61, %v1997_v24  ;;  %v2337_v47 = vsel %vm2184_vm2, %v2301_v13, %v2110_v23  ;;  %v2177_v24 = vsel %vm2151_vm0, %v10776_v53, %v1887_v25 }
 0x2b5   : > { %v2252_v19 = vsel %vm2217_vm4, %v2208_v43, %v2030_v54  ;;  %v2210_v9 = vsel %vm2184_vm2, %v2177_v24, %v11187_v2 }
 0x2b6   : > { %2699 = vmatmul.mubr.bf16.gmra.mrb[40].mxu1 %v2249_v56  ;;  %v2034_v55 = vpop.permute.xlu1 %2033 }
 0x2b7   : > { %v2082_v4 = vpop.permute.xlu0 %2081 }
 0x2b8   : > { %v2307_v12 = vsel %vm2151_vm0, %v11050_v29, %v2082_v4 }
 0x2b9   : > { %v11220_v59 = vpop.f32.mrb[48].mxu0 }
 0x2ba   : > { %v2032_v14 = vpop.permute.xlu1 %2031  ;;  %12686 = vst [vmem:[#allocation16_spill] sm:$0xff] %v11220_v59  ;;  %v11222_v18 = vpop.f32.mrb[49].mxu0 }
 0x2bb   : > { %v2080_v37 = vpop.permute.xlu0 %2079  ;;  %12687 = vst [vmem:[#allocation17_spill] sm:$0xff] %v11222_v18  ;;  %v11224_v5 = vpop.f32.mrb[50].mxu0 }
 0x2bc   : > { %12688 = vst [vmem:[#allocation18_spill] sm:$0xff] %v11224_v5  ;;  %v11226_v42 = vpop.f32.mrb[51].mxu0  ;;  %v2304_v32 = vsel %vm2151_vm0, %v11062_v30, %v2080_v37 }
 0x2bd   : > { %12689 = vst [vmem:[#allocation19_spill] sm:$0xff] %v11226_v42  ;;  %v2339_v7 = vsel %vm2184_vm2, %v2304_v32, %v2112_v0  ;;  %v2255_v0 = vsel %vm2217_vm4, %v2210_v9, %v2032_v14 }
 0x2be   : > { %v2001_v10 = vpop.permute.xlu1 %2000 }
 0x2bf   : > { %v2144_v31 = vpop.permute.xlu0 %2143 }
 0x2c0   : > { %v2383_v6 = vsel %vm2217_vm4, %v2339_v7, %v2144_v31 }
 0x2c2   : > { %v1891_v28 = vpop.permute.xlu1 %1890 }
 0x2c3   : > { %v2142_v34 = vpop.permute.xlu0 %2141  ;;  %v2181_v43 = vsel %vm2151_vm0, %v10834_v35, %v1891_v28 }
 0x2c4   : > { %v2380_v21 = vsel %vm2217_vm4, %v2337_v47, %v2142_v34  ;;  %v11240_v30 = vpop.f32.mrb[52].mxu0 }
 0x2c5   : > { %2706 = vmatprep.mubr.bf16.mxu1 %v2380_v21  ;;  %12690 = vst [vmem:[#allocation20_spill] sm:$0xff] %v11240_v30  ;;  %v11244_v27 = vpop.f32.mrb[53].mxu0 }
 0x2c6   : > { %2707 = vmatmul.mubr.bf16.gmra.mrb[44].mxu1 %v2252_v19  ;;  %v1889_v8 = vpop.permute.xlu1 %1888  ;;  %12691 = vst [vmem:[#allocation21_spill] sm:$0xff] %v11244_v27  ;;  %v11246_v62 = vpop.f32.mrb[54].mxu0 }
 0x2c7   : > { %2714 = vmatprep.mubr.bf16.mxu1 %v2383_v6  ;;  %v2116_v58 = vpop.permute.xlu0 %2115  ;;  %12692 = vst [vmem:[#allocation22_spill] sm:$0xff] %v11246_v62  ;;  %v11248_v54 = vpop.f32.mrb[55].mxu0  ;;  %v2179_v3 = vsel %vm2151_vm0, %v10844_v49, %v1889_v8 }
 0x2c8   : > { %12693 = vst [vmem:[#allocation23_spill] sm:$0xff] %v11248_v54  ;;  %v2212_v56 = vsel %vm2184_vm2, %v2179_v3, %v2001_v10 }
 0x2c9   : > { %v2258_v13 = vsel %vm2217_vm4, %v2212_v56, %v2034_v55 }
 0x2ca   : > { %v2003_v17 = vpop.permute.xlu1 %2002 }
 0x2cb   : > { %v2114_v20 = vpop.permute.xlu0 %2113  ;;  %v2214_v34 = vsel %vm2184_vm2, %v2181_v43, %v2003_v17 }
 0x2cc   : > { %v11255_v53 = vpop.f32.mrb[56].mxu0  ;;  %v2341_v2 = vsel %vm2184_vm2, %v2307_v12, %v2114_v20 }
 0x2cd   : > { %12694 = vst [vmem:[#allocation24_spill] sm:$0xff] %v11255_v53  ;;  %v11257_v25 = vpop.f32.mrb[57].mxu0 }
 0x2ce   : > { %2715 = vmatmul.mubr.bf16.gmra.mrb[48].mxu1 %v2255_v0  ;;  %v2036_v23 = vpop.permute.xlu1 %2035  ;;  %12695 = vst [vmem:[#allocation25_spill] sm:$0xff] %v11257_v25  ;;  %v11262_v37 = vpop.f32.mrb[58].mxu0 }
 0x2cf   : > { %v2084_v63 = vpop.permute.xlu0 %2083  ;;  %12696 = vst [vmem:[#allocation26_spill] sm:$0xff] %v11262_v37  ;;  %v11265_v61 = vpop.f32.mrb[59].mxu0  ;;  %v2261_v21 = vsel %vm2217_vm4, %v2214_v34, %v2036_v23  ;;  %v10000_v23 = vmov 1983009808  }
 0x2d0   : > { %12697 = vst [vmem:[#allocation27_spill] sm:$0xff] %v11265_v61  ;;  %v2310_v49 = vsel %vm2151_vm0, %v11096_v40, %v2084_v63  ;;  %v2942_v12 = vunpack.c.l.s4 %v10000_v23 }
 0x2d1   : > { %v2343_v4 = vsel %vm2184_vm2, %v2310_v49, %v2116_v58 }
 0x2d2   : > { %v2005_v32 = vpop.permute.xlu1 %2004  ;;  %v2943_v56 = vunpack.c.0.s8 %v2942_v12 }
 0x2d3   : > { %v2146_v14 = vpop.permute.xlu0 %2145 }
 0x2d4   : > { %v2386_v31 = vsel %vm2217_vm4, %v2341_v2, %v2146_v14  ;;  %v8572_v2 = vld [vmem:[%s12628_s5] ss:$0 sm:$0xff]  ;;  %v11291_v14 = vsub.s32 %v2943_v56, %v10171_v1 }
 0x2d5   : > { %2722 = vmatprep.mubr.bf16.mxu1 %v2386_v31  ;;  %v4194_v31 = vcombine.high %v8572_v2, %v8572_v2 }
 0x2d6   : > { %2723 = vmatmul.mubr.bf16.gmra.mrb[52].mxu1 %v2258_v13  ;;  %v1893_v40 = vpop.permute.xlu1 %1892 }
 0x2d7   : > { %v2148_v29 = vpop.permute.xlu0 %2147  ;;  %v2183_v55 = vsel %vm2151_vm0, %v10883_v51, %v1893_v40 }
 0x2d8   : > { %v2389_v10 = vsel %vm2217_vm4, %v2343_v4, %v2148_v29  ;;  %v2216_v28 = vsel %vm2184_vm2, %v2183_v55, %v2005_v32  ;;  %v11294_v32 = vrot.slane %v8572_v2, %v11291_v14  ;;  %v11299_v29 = vrot.slane %v4194_v31, %v11291_v14 }
 0x2d9   : > { %2730 = vmatprep.mubr.bf16.mxu1 %v2389_v10 }
 0x2da   : > { %v2038_v7 = vpop.permute.xlu1 %2037  ;;  %v11305_v1 = vcombine.high %v11294_v32, %v11294_v32  ;;  %v11309_v40 = vcombine.high %v11299_v29, %v11299_v29 }
 0x2db   : > { %v2086_v47 = vpop.permute.xlu0 %2085  ;;  %v2264_v24 = vsel %vm2217_vm4, %v2216_v28, %v2038_v7 }
 0x2dc   : > { %v2313_v8 = vsel %vm2151_vm0, %v11110_v39, %v2086_v47  ;;  %v11332_v23 = vrot.slane %v11309_v40, 1 }
 0x2de   : > { %2731 = vmatmul.mubr.bf16.gmra.mrb[56].mxu1 %v2261_v21 }
 0x2df   : > { %v2118_v19 = vpop.permute.xlu0 %2117 }
 0x2e0   : > { %v2345_v6 = vsel %vm2184_vm2, %v2313_v8, %v2118_v19  ;;  %v11317_v8 = vrot.slane %v11294_v32, 1 }
 0x2e3   : > { %v2150_v58 = vpop.permute.xlu0 %2149 }
 0x2e4   : > { %v2392_v35 = vsel %vm2217_vm4, %v2345_v6, %v2150_v58  ;;  %v11320_v6 = vrot.slane %v11305_v1, 1 }
 0x2e5   : > { %2738 = vmatprep.mubr.bf16.mxu1 %v2392_v35 }
 0x2e6   : > { %2739 = vmatmul.mubr.bf16.gmra.mrb[60].mxu1 %v2264_v24  ;;  %v11323_v24 = vrot.slane %v11299_v29, 1 }
 0x309   : > { %v9037_v17 = vpop.f32.mrb[0].mxu1 }
 0x30a   : > { %v9038_v20 = vpop.f32.mrb[1].mxu1 }
 0x30b   : > { %v9039_v9 = vadd.f32 %v9038_v20, %v9037_v17  ;;  %v9040_v0 = vpop.f32.mrb[2].mxu1  ;;  %v11328_v17 = vsel %vm11312_vm5, %v10455_v16, 0 }
 0x30c   : > { %v9041_v51 = vpop.f32.mrb[3].mxu1  ;;  %12700 = vst [vmem:[#allocation28_spill] sm:$0xff] %v11328_v17 }
 0x30d   : > { %v2782_v3 = vadd.f32 %v9039_v9, %v11166_v26  ;;  %v9042_v63 = vadd.f32 %v9041_v51, %v9040_v0 }
 0x30f   : > { %v2785_v39 = vadd.f32 %v9042_v63, %v11171_v11  ;;  %v2940_v49 = vcombine.high %v2782_v3, %v2782_v3  ;;  %v2947_v26 = vrot.slane %v2782_v3, %v11291_v14 }
 0x311   : > { %v2957_v13 = vcombine.high %v2785_v39, %v2785_v39  ;;  %v2954_v11 = vrot.slane %v2940_v49, %v11291_v14  ;;  %v2964_v4 = vrot.slane %v2785_v39, %v11291_v14  ;;  %v2955_v43 = vcombine.high %v2947_v26, %v2947_v26 }
 0x312   : > { %v8444_v58 = vrot.slane %v2947_v26, 9 }
 0x313   : > { %v2971_v10 = vrot.slane %v2957_v13, %v11291_v14  ;;  %v2956_v47 = vcombine.high %v2954_v11, %v2954_v11  ;;  %v2972_v19 = vcombine.high %v2964_v4, %v2964_v4  ;;  %v8445_v20 = vrot.slane %v2955_v43, 9 }
 0x314   : > { %v8446_v9 = vrot.slane %v2954_v11, 9  ;;  %v8448_v51 = vrot.slane %v2964_v4, 9  ;;  %v3996_v16 = vmax.f32 %v2947_v26, %v8444_v58 }
 0x315   : > { %v2973_v55 = vcombine.high %v2971_v10, %v2971_v10  ;;  %v8447_v0 = vrot.slane %v2956_v47, 9  ;;  %v8449_v56 = vrot.slane %v2972_v19, 9  ;;  %v8450_v2 = vrot.slane %v2971_v10, 9 }
 0x316   : > { %v3997_v37 = vmax.f32 %v2955_v43, %v8445_v20  ;;  %v3998_v53 = vmax.f32 %v2954_v11, %v8446_v9 }
 0x317   : > { %v8451_v49 = vrot.slane %v2973_v55, 9  ;;  %v4001_v62 = vmax.f32 %v2972_v19, %v8449_v56  ;;  %v4002_v30 = vmax.f32 %v2971_v10, %v8450_v2 }
 0x319   : > { %v4003_v54 = vmax.f32 %v2973_v55, %v8451_v49 }
 0x321   : > { %v9043_v34 = vpop.f32.mrb[4].mxu1 }
 0x322   : > { %v9044_v7 = vpop.f32.mrb[5].mxu1 }
 0x323   : > { %v9045_v35 = vadd.f32 %v9044_v7, %v9043_v34  ;;  %v9046_v28 = vpop.f32.mrb[6].mxu1 }
 0x324   : > { %v9047_v3 = vpop.f32.mrb[7].mxu1 }
 0x325   : > { %v2790_v63 = vadd.f32 %v11162_v36, %v9045_v35  ;;  %v9048_v39 = vadd.f32 %v9047_v3, %v9046_v28  ;;  %v3999_v36 = vmax.f32 %v2956_v47, %v8447_v0  ;;  %v4000_v35 = vmax.f32 %v2964_v4, %v8448_v51 }
 0x327   : > { %v2974_v13 = vcombine.high %v2790_v63, %v2790_v63  ;;  %v2981_v34 = vrot.slane %v2790_v63, %v11291_v14  ;;  %v2793_v7 = vadd.f32 %v11169_v57, %v9048_v39 }
 0x329   : > { %v2988_v28 = vrot.slane %v2974_v13, %v11291_v14  ;;  %v2989_v3 = vcombine.high %v2981_v34, %v2981_v34  ;;  %v8452_v61 = vrot.slane %v2981_v34, 9  ;;  %v2991_v12 = vcombine.high %v2793_v7, %v2793_v7  ;;  %v9049_v25 = vpop.f32.mrb[8].mxu1 }
 0x32a   : > { %v2998_v26 = vrot.slane %v2793_v7, %v11291_v14  ;;  %v9050_v58 = vpop.f32.mrb[9].mxu1 }
 0x32b   : > { %v2990_v31 = vcombine.high %v2988_v28, %v2988_v28  ;;  %v8453_v63 = vrot.slane %v2989_v3, 9  ;;  %v8454_v27 = vrot.slane %v2988_v28, 9  ;;  %v4004_v57 = vmax.f32 %v2981_v34, %v8452_v61  ;;  %v11340_v43 = vpop.f32.mrb[10].mxu1 }
 0x32c   : > { %v3005_v11 = vrot.slane %v2991_v12, %v11291_v14  ;;  %v3006_v4 = vcombine.high %v2998_v26, %v2998_v26  ;;  %v8456_v47 = vrot.slane %v2998_v26, 9  ;;  %v9051_v20 = vadd.f32 %v9050_v58, %v9049_v25  ;;  %v11343_v9 = vpop.f32.mrb[11].mxu1 }
 0x32d   : > { %v8455_v0 = vrot.slane %v2990_v31, 9  ;;  %v4005_v19 = vmax.f32 %v2989_v3, %v8453_v63  ;;  %v4006_v10 = vmax.f32 %v2988_v28, %v8454_v27  ;;  %v4124_v55 = vmax.f32 %v3996_v16, %v4004_v57 }
 0x32e   : > { %v3007_v51 = vcombine.high %v3005_v11, %v3005_v11  ;;  %v8457_v39 = vrot.slane %v3006_v4, 9  ;;  %v8458_v56 = vrot.slane %v3005_v11, 9  ;;  %v4008_v2 = vmax.f32 %v2998_v26, %v8456_v47 }
 0x32f   : > { %v4007_v49 = vmax.f32 %v2990_v31, %v8455_v0  ;;  %v4125_v13 = vmax.f32 %v3997_v37, %v4005_v19  ;;  %v4126_v61 = vmax.f32 %v3998_v53, %v4006_v10  ;;  %v4223_v34 = vadd.f32 %v11294_v32, %v4124_v55 }
 0x330   : > { %v8459_v12 = vrot.slane %v3007_v51, 9  ;;  %v4009_v7 = vmax.f32 %v3006_v4, %v8457_v39  ;;  %v4010_v5 = vmax.f32 %v3005_v11, %v8458_v56  ;;  %v4128_v25 = vmax.f32 %v4000_v35, %v4008_v2 }
 0x331   : > { %v4127_v58 = vmax.f32 %v3999_v36, %v4007_v49  ;;  %v4224_v59 = vadd.f32 %v11317_v8, %v4125_v13  ;;  %v4225_v27 = vadd.f32 %v11305_v1, %v4126_v61  ;;  %v4287_v16 = vmax.f32 %v4223_v34, 0.0 }
 0x332   : > { %v4011_v28 = vmax.f32 %v3007_v51, %v8459_v12  ;;  %v4129_v3 = vmax.f32 %v4001_v62, %v4009_v7  ;;  %v4130_v26 = vmax.f32 %v4002_v30, %v4010_v5  ;;  %v4227_v37 = vadd.f32 %v11299_v29, %v4128_v25 }
 0x333   : > { %v4226_v53 = vadd.f32 %v11320_v6, %v4127_v58  ;;  %v4288_v31 = vmax.f32 %v4224_v59, 0.0  ;;  %v4289_v63 = vmax.f32 %v4225_v27, 0.0  ;;  %v4351_v57 = vpack.c.bf16 %v4287_v16, %v4287_v16 }
 0x334   : > { %v4131_v11 = vmax.f32 %v4003_v54, %v4011_v28  ;;  %v4228_v36 = vadd.f32 %v11323_v24, %v4129_v3  ;;  %v4229_v35 = vadd.f32 %v11309_v40, %v4130_v26  ;;  %v4291_v4 = vmax.f32 %v4227_v37, 0.0 }
 0x335   : > { %v4290_v47 = vmax.f32 %v4226_v53, 0.0  ;;  %v4352_v0 = vpack.c.bf16 %v4288_v31, %v4288_v31  ;;  %v4353_v19 = vpack.c.bf16 %v4289_v63, %v4289_v63  ;;  %v12701_v62 = vshll.u32 %v11328_v17, 16 }
 0x336   : > { %v4230_v30 = vadd.f32 %v11332_v23, %v4131_v11  ;;  %v4292_v10 = vmax.f32 %v4228_v36, 0.0  ;;  %v4293_v55 = vmax.f32 %v4229_v35, 0.0  ;;  %v4355_v51 = vpack.c.bf16 %v4291_v4, %v4291_v4 }
 0x337   : > { %v4759_v5 = vrot.slane %v12701_v62, 1  ;;  %v4354_v59 = vpack.c.bf16 %v4290_v47, %v4290_v47  ;;  %v4480_v39 = vunpack.c.l.b16 %v4352_v0  ;;  %v4481_v56 = vunpack.c.l.b16 %v4353_v19 }
 0x338   : > { %v2798_v54 = vadd.f32 %v9051_v20, %v11179_v60  ;;  %v4479_v2 = vunpack.c.l.b16 %v4351_v57  ;;  %v4294_v49 = vmax.f32 %v4230_v30, 0.0  ;;  %v11356_v13 = vpack.c.bf16 %v4292_v10, %v4292_v10 }
 0x339   : > { %v4483_v61 = vunpack.c.l.b16 %v4355_v51  ;;  %v4482_v34 = vunpack.c.l.b16 %v4354_v59  ;;  %v4543_v12 = vrot.slane %v4480_v39, 7  ;;  %v4546_v7 = vrot.slane %v4481_v56, 6  ;;  %v9055_v58 = vpop.f32.mrb[12].mxu1 }
 0x33a   : > { %v3008_v25 = vcombine.high %v2798_v54, %v2798_v54  ;;  %v11358_v27 = vpack.c.bf16 %v4293_v55, %v4293_v55  ;;  %v11360_v16 = vpack.c.bf16 %v4294_v49, %v4294_v49  ;;  %v9056_v28 = vpop.f32.mrb[13].mxu1  ;;  %v12702_v3 = vshrl.u32 %v11328_v17, 16 }
 0x33b   : > { %v4545_v60 = vsel %vm4544_vm6, %v4543_v12, %v4479_v2  ;;  %v4549_v20 = vrot.slane %v4482_v34, 5  ;;  %v3015_v37 = vrot.slane %v2798_v54, %v11291_v14  ;;  %v9058_v31 = vpop.f32.mrb[14].mxu1  ;;  %v4552_v11 = vrot.slane %v4483_v61, 4 }
 0x33c   : > { %v11364_v26 = vor.u32 %v4759_v5, %v12702_v3  ;;  %v3022_v53 = vrot.slane %v3008_v25, %v11291_v14  ;;  %v4548_v63 = vsel %vm4547_vm7, %v4546_v7, %v4545_v60  ;;  %v9054_v36 = vadd.f32 %v11343_v9, %v11340_v43  ;;  %v9059_v35 = vpop.f32.mrb[15].mxu1 }
 0x33d   : > { %v4551_v4 = vsel %vm4550_vm8, %v4549_v20, %v4548_v63  ;;  %v3023_v47 = vcombine.high %v3015_v37, %v3015_v37  ;;  %v8460_v19 = vrot.slane %v3015_v37, 9  ;;  %v9057_v10 = vadd.f32 %v9056_v28, %v9055_v58 }
 0x33e   : > { %v3024_v0 = vcombine.high %v3022_v53, %v3022_v53  ;;  %v11375_v62 = vsel %vm4553_vm9, %v4552_v11, %v4551_v4  ;;  %v8462_v5 = vrot.slane %v3022_v53, 9  ;;  %v2801_v30 = vadd.f32 %v9054_v36, %v11183_v33 }
 0x33f   : > { %v8461_v51 = vrot.slane %v3023_v47, 9  ;;  %v9060_v39 = vadd.f32 %v9059_v35, %v9058_v31  ;;  %v4012_v56 = vmax.f32 %v3015_v37, %v8460_v19  ;;  %v2806_v54 = vadd.f32 %v11177_v50, %v9057_v10 }
 0x340   : > { %v8463_v59 = vrot.slane %v3024_v0, 9  ;;  %v3025_v43 = vcombine.high %v2801_v30, %v2801_v30  ;;  %v3032_v9 = vrot.slane %v2801_v30, %v11291_v14  ;;  %v4014_v49 = vmax.f32 %v3022_v53, %v8462_v5 }
 0x341   : > { %v4013_v2 = vmax.f32 %v3023_v47, %v8461_v51  ;;  %v2809_v34 = vadd.f32 %v11181_v22, %v9060_v39  ;;  %v9061_v12 = vpop.f32.mrb[16].mxu1  ;;  %v3042_v58 = vcombine.high %v2806_v54, %v2806_v54  ;;  %v3049_v3 = vrot.slane %v2806_v54, %v11291_v14 }
 0x342   : > { %v4015_v61 = vmax.f32 %v3024_v0, %v8463_v59  ;;  %v3039_v33 = vrot.slane %v3025_v43, %v11291_v14  ;;  %v3040_v7 = vcombine.high %v3032_v9, %v3032_v9  ;;  %v8464_v25 = vrot.slane %v3032_v9, 9  ;;  %v9062_v28 = vpop.f32.mrb[17].mxu1 }
 0x343   : > { %v3059_v60 = vcombine.high %v2809_v34, %v2809_v34  ;;  %v3066_v20 = vrot.slane %v2809_v34, %v11291_v14  ;;  %v11385_v37 = vadd.f32 %v9062_v28, %v9061_v12  ;;  %v11387_v50 = vpop.f32.mrb[18].mxu1  ;;  %v3056_v36 = vrot.slane %v3042_v58, %v11291_v14 }
 0x344   : > { %v3041_v53 = vcombine.high %v3039_v33, %v3039_v33  ;;  %v8465_v31 = vrot.slane %v3040_v7, 9  ;;  %v8466_v63 = vrot.slane %v3039_v33, 9  ;;  %v4016_v22 = vmax.f32 %v3032_v9, %v8464_v25  ;;  %v11389_v11 = vpop.f32.mrb[19].mxu1 }
 0x345   : > { %v3057_v35 = vcombine.high %v3049_v3, %v3049_v3  ;;  %v8468_v4 = vrot.slane %v3049_v3, 9  ;;  %v3073_v47 = vrot.slane %v3059_v60, %v11291_v14  ;;  %v3074_v30 = vcombine.high %v3066_v20, %v3066_v20 }
 0x346   : > { %v8467_v0 = vrot.slane %v3041_v53, 9  ;;  %v4017_v19 = vmax.f32 %v3040_v7, %v8465_v31  ;;  %v4018_v5 = vmax.f32 %v3039_v33, %v8466_v63  ;;  %v3058_v10 = vcombine.high %v3056_v36, %v3056_v36 }
 0x347   : > { %v8469_v51 = vrot.slane %v3057_v35, 9  ;;  %v8470_v59 = vrot.slane %v3056_v36, 9  ;;  %v4020_v39 = vmax.f32 %v3049_v3, %v8468_v4  ;;  %v3075_v54 = vcombine.high %v3073_v47, %v3073_v47 }
 0x348   : > { %v4019_v43 = vmax.f32 %v3041_v53, %v8467_v0  ;;  %v8472_v34 = vrot.slane %v3066_v20, 9  ;;  %v8473_v9 = vrot.slane %v3074_v30, 9  ;;  %v8471_v12 = vrot.slane %v3058_v10, 9 }
 0x349   : > { %v4021_v25 = vmax.f32 %v3057_v35, %v8469_v51  ;;  %v4022_v28 = vmax.f32 %v3056_v36, %v8470_v59  ;;  %v4132_v58 = vmax.f32 %v4012_v56, %v4020_v39  ;;  %v8474_v55 = vrot.slane %v3073_v47, 9 }
 0x34a   : > { %v8475_v57 = vrot.slane %v3075_v54, 9  ;;  %v4024_v17 = vmax.f32 %v3066_v20, %v8472_v34  ;;  %v4025_v60 = vmax.f32 %v3074_v30, %v8473_v9  ;;  %v4023_v42 = vmax.f32 %v3058_v10, %v8471_v12 }
 0x34b   : > { %v4133_v7 = vmax.f32 %v4013_v2, %v4021_v25  ;;  %v4134_v33 = vmax.f32 %v4014_v49, %v4022_v28  ;;  %v4231_v31 = vadd.f32 %v11294_v32, %v4132_v58  ;;  %v4026_v63 = vmax.f32 %v3073_v47, %v8474_v55 }
 0x34c   : > { %v4027_v18 = vmax.f32 %v3075_v54, %v8475_v57  ;;  %v4136_v3 = vmax.f32 %v4016_v22, %v4024_v17  ;;  %v4137_v53 = vmax.f32 %v4017_v19, %v4025_v60  ;;  %v4135_v4 = vmax.f32 %v4015_v61, %v4023_v42 }
 0x34d   : > { %v4232_v0 = vadd.f32 %v11317_v8, %v4133_v7  ;;  %v4233_v35 = vadd.f32 %v11305_v1, %v4134_v33  ;;  %v4295_v36 = vmax.f32 %v4231_v31, 0.0  ;;  %v4138_v56 = vmax.f32 %v4018_v5, %v4026_v63 }
 0x34e   : > { %v4139_v51 = vmax.f32 %v4019_v43, %v4027_v18  ;;  %v4235_v20 = vadd.f32 %v11299_v29, %v4136_v3  ;;  %v4236_v30 = vadd.f32 %v11323_v24, %v4137_v53  ;;  %v4234_v2 = vadd.f32 %v11320_v6, %v4135_v4 }
 0x34f   : > { %v4296_v49 = vmax.f32 %v4232_v0, 0.0  ;;  %v4297_v10 = vmax.f32 %v4233_v35, 0.0  ;;  %v4359_v55 = vpack.c.bf16 %v4295_v36, %v4295_v36  ;;  %v4237_v17 = vadd.f32 %v11309_v40, %v4138_v56 }
 0x350   : > { %v4238_v42 = vadd.f32 %v11332_v23, %v4139_v51  ;;  %v4299_v57 = vmax.f32 %v4235_v20, 0.0  ;;  %v4300_v61 = vmax.f32 %v4236_v30, 0.0  ;;  %v9067_v22 = vpop.f32.mrb[20].mxu1  ;;  %v12703_v47 = vunpack.c.l.b16 %v11356_v13 }
 0x351   : > { %v4298_v19 = vmax.f32 %v4234_v2, 0.0  ;;  %v4360_v5 = vpack.c.bf16 %v4296_v49, %v4296_v49  ;;  %v4361_v59 = vpack.c.bf16 %v4297_v10, %v4297_v10  ;;  %v9068_v39 = vpop.f32.mrb[21].mxu1  ;;  %v4301_v43 = vmax.f32 %v4237_v17, 0.0 }
 0x352   : > { %v4555_v18 = vrot.slane %v12703_v47, 3  ;;  %v4302_v54 = vmax.f32 %v4238_v42, 0.0  ;;  %v4363_v34 = vpack.c.bf16 %v4299_v57, %v4299_v57  ;;  %v11403_v9 = vpack.c.bf16 %v4300_v61, %v4300_v61  ;;  %v9070_v12 = vpop.f32.mrb[22].mxu1 }
 0x353   : > { %v4362_v25 = vpack.c.bf16 %v4298_v19, %v4298_v19  ;;  %v4488_v28 = vunpack.c.l.b16 %v4360_v5  ;;  %v4489_v58 = vunpack.c.l.b16 %v4361_v59  ;;  %v2814_v60 = vadd.f32 %v11385_v37, %v11189_v48  ;;  %v9071_v13 = vpop.f32.mrb[23].mxu1 }
 0x354   : > { %v12704_v7 = vunpack.c.l.b16 %v11358_v27  ;;  %v4487_v31 = vunpack.c.l.b16 %v4359_v55  ;;  %v4491_v63 = vunpack.c.l.b16 %v4363_v34  ;;  %v4486_v3 = vunpack.c.l.b16 %v11360_v16 }
 0x355   : > { %v4490_v53 = vunpack.c.l.b16 %v4362_v25  ;;  %v4564_v4 = vrot.slane %v4488_v28, 7  ;;  %v4566_v0 = vrot.slane %v4489_v58, 6  ;;  %v3076_v35 = vcombine.high %v2814_v60, %v2814_v60 }
 0x356   : > { %v4558_v33 = vrot.slane %v12704_v7, 2  ;;  %v11410_v36 = vpack.c.bf16 %v4301_v43, %v4301_v43  ;;  %v11412_v56 = vpack.c.bf16 %v4302_v54, %v4302_v54  ;;  %v4492_v51 = vunpack.c.l.b16 %v11403_v9 }
 0x357   : > { %v3083_v48 = vrot.slane %v2814_v60, %v11291_v14  ;;  %v4565_v37 = vsel %vm4544_vm6, %v4564_v4, %v4487_v31  ;;  %v4568_v27 = vrot.slane %v4490_v53, 5  ;;  %v3090_v20 = vrot.slane %v3076_v35, %v11291_v14 }
 0x358   : > { %v9066_v16 = vadd.f32 %v11389_v11, %v11387_v50  ;;  %v4567_v30 = vsel %vm4547_vm7, %v4566_v0, %v4565_v37  ;;  %v4570_v2 = vrot.slane %v4491_v63, 4  ;;  %v9073_v55 = vpop.f32.mrb[24].mxu1  ;;  %v4557_v50 = vsel %vm4556_vm10, %v4555_v18, %v11375_v62 }
 0x359   : > { %v3091_v49 = vcombine.high %v3083_v48, %v3083_v48  ;;  %v8476_v10 = vrot.slane %v3083_v48, 9  ;;  %v4569_v17 = vsel %vm4550_vm8, %v4568_v27, %v4567_v30  ;;  %v3092_v42 = vcombine.high %v3090_v20, %v3090_v20  ;;  %v9074_v47 = vpop.f32.mrb[25].mxu1 }
 0x35a   : > { %v8478_v57 = vrot.slane %v3090_v20, 9  ;;  %v2817_v61 = vadd.f32 %v9066_v16, %v11195_v46  ;;  %v11424_v19 = vsel %vm4553_vm9, %v4570_v2, %v4569_v17  ;;  %v11430_v11 = vpop.f32.mrb[26].mxu1  ;;  %v4560_v58 = vsel %vm4559_vm11, %v4558_v33, %v4557_v50 }
 0x35b   : > { %v8477_v5 = vrot.slane %v3091_v49, 9  ;;  %v11426_v59 = vmax.f32 %v3083_v48, %v8476_v10  ;;  %v8479_v43 = vrot.slane %v3092_v42, 9  ;;  %v11435_v28 = vpop.f32.mrb[27].mxu1  ;;  %v4561_v60 = vrot.slane %v4486_v3, 1 }
 0x35c   : > { %v11432_v54 = vmax.f32 %v3090_v20, %v8478_v57  ;;  %v3093_v34 = vcombine.high %v2817_v61, %v2817_v61  ;;  %v3100_v25 = vrot.slane %v2817_v61, %v11291_v14  ;;  %v9069_v7 = vadd.f32 %v9068_v39, %v9067_v22 }
 0x35d   : > { %v4029_v46 = vmax.f32 %v3091_v49, %v8477_v5  ;;  %v11438_v31 = vmax.f32 %v3092_v42, %v8479_v43  ;;  %v4563_v53 = vsel %vm4562_vm12, %v4561_v60, %v4560_v58  ;;  %v9072_v0 = vadd.f32 %v9071_v13, %v9070_v12 }
 0x35e   : > { %v3107_v63 = vrot.slane %v3093_v34, %v11291_v14  ;;  %v3108_v62 = vcombine.high %v3100_v25, %v3100_v25  ;;  %v8480_v18 = vrot.slane %v3100_v25, 9  ;;  %v2822_v4 = vadd.f32 %v11185_v52, %v9069_v7 }
 0x35f   : > { %v9075_v35 = vadd.f32 %v9074_v47, %v9073_v55  ;;  %v4662_v16 = vpack.c.b16 %v4563_v53, %v4563_v53  ;;  %v2825_v39 = vadd.f32 %v11193_v38, %v9072_v0 }
 0x360   : > { %v3109_v48 = vcombine.high %v3107_v63, %v3107_v63  ;;  %v8481_v37 = vrot.slane %v3108_v62, 9  ;;  %v8482_v27 = vrot.slane %v3107_v63, 9  ;;  %v4032_v20 = vmax.f32 %v3100_v25, %v8480_v18 }
 0x361   : > { %v3110_v33 = vcombine.high %v2822_v4, %v2822_v4  ;;  %v3117_v22 = vrot.slane %v2822_v4, %v11291_v14  ;;  %v11446_v49 = vadd.f32 %v9075_v35, %v11211_v15  ;;  %v4671_v10 = vshrl.u32 %v4662_v16, 16 }
 0x362   : > { %v8483_v3 = vrot.slane %v3109_v48, 9  ;;  %v4033_v30 = vmax.f32 %v3108_v62, %v8481_v37  ;;  %v4034_v2 = vmax.f32 %v3107_v63, %v8482_v27  ;;  %v4674_v52 = vshll.u32 %v4662_v16, 16 }
 0x363   : > { %v3124_v12 = vrot.slane %v3110_v33, %v11291_v14  ;;  %v3125_v13 = vcombine.high %v3117_v22, %v3117_v22  ;;  %v8484_v17 = vrot.slane %v3117_v22, 9  ;;  %v3127_v42 = vcombine.high %v2825_v39, %v2825_v39 }
 0x364   : > { %v4035_v55 = vmax.f32 %v3109_v48, %v8483_v3  ;;  %v3134_v57 = vrot.slane %v2825_v39, %v11291_v14  ;;  %v4673_v61 = vrot.slane %v4671_v10, 7 }
 0x365   : > { %v3126_v47 = vcombine.high %v3124_v12, %v3124_v12  ;;  %v8485_v5 = vrot.slane %v3125_v13, 9  ;;  %v8486_v38 = vrot.slane %v3124_v12, 9  ;;  %v4036_v50 = vmax.f32 %v3117_v22, %v8484_v17 }
 0x366   : > { %v3141_v43 = vrot.slane %v3127_v42, %v11291_v14  ;;  %v3142_v34 = vcombine.high %v3134_v57, %v3134_v57  ;;  %v8488_v15 = vrot.slane %v3134_v57, 9  ;;  %v4676_v25 = vor.u32 %v4674_v52, %v4673_v61 }
 0x367   : > { %v8487_v58 = vrot.slane %v3126_v47, 9  ;;  %v4037_v60 = vmax.f32 %v3125_v13, %v8485_v5  ;;  %v4038_v7 = vmax.f32 %v3124_v12, %v8486_v38  ;;  %v4140_v63 = vmax.f32 %v11426_v59, %v4036_v50 }
 0x368   : > { %v3143_v62 = vcombine.high %v3141_v43, %v3141_v43  ;;  %v8489_v18 = vrot.slane %v3142_v34, 9  ;;  %v8490_v53 = vrot.slane %v3141_v43, 9  ;;  %v4734_v0 = vsel %vm10449_vm15, 0, %v4676_v25  ;;  %v11455_v27 = vpop.f32.mrb[28].mxu1 }
 0x369   : > { %v4039_v35 = vmax.f32 %v3126_v47, %v8487_v58  ;;  %v4141_v48 = vmax.f32 %v4029_v46, %v4037_v60  ;;  %v4142_v37 = vmax.f32 %v11432_v54, %v4038_v7  ;;  %v11459_v16 = vsel %vm11312_vm5, %v4734_v0, 0  ;;  %v11462_v39 = vpop.f32.mrb[29].mxu1 }
 0x36a   : > { %12706 = vst [vmem:[#allocation15_spill] sm:$0xff] %v11459_v16  ;;  %v4239_v33 = vadd.f32 %v11294_v32, %v4140_v63  ;;  %v8491_v22 = vrot.slane %v3143_v62, 9  ;;  %v4040_v59 = vmax.f32 %v3134_v57, %v8488_v15  ;;  %4843 = vrot.lane.b32.xlu0 %v11459_v16, %s12684_s26  ;;  %v4041_v10 = vmax.f32 %v3142_v34, %v8489_v18  ;;  %v11469_v52 = vpop.f32.mrb[30].mxu1 }
 0x36b   : > { %v4143_v3 = vmax.f32 %v11438_v31, %v4039_v35  ;;  %v4240_v46 = vadd.f32 %v11317_v8, %v4141_v48  ;;  %v4241_v54 = vadd.f32 %v11305_v1, %v4142_v37  ;;  %v4042_v13 = vmax.f32 %v3141_v43, %v8490_v53  ;;  %v11471_v61 = vpop.f32.mrb[31].mxu1 }
 0x36c   : > { %v4303_v12 = vmax.f32 %v4239_v33, 0.0  ;;  %v4043_v17 = vmax.f32 %v3143_v62, %v8491_v22  ;;  %v4144_v42 = vmax.f32 %v4032_v20, %v4040_v59  ;;  %v4145_v38 = vmax.f32 %v4033_v30, %v4041_v10 }
 0x36d   : > { %v4242_v57 = vadd.f32 %v11320_v6, %v4143_v3  ;;  %v4304_v47 = vmax.f32 %v4240_v46, 0.0  ;;  %v4305_v5 = vmax.f32 %v4241_v54, 0.0  ;;  %v4146_v31 = vmax.f32 %v4034_v2, %v4042_v13 }
 0x36e   : > { %v4367_v50 = vpack.c.bf16 %v4303_v12, %v4303_v12  ;;  %v4147_v15 = vmax.f32 %v4035_v55, %v4043_v17  ;;  %v4243_v25 = vadd.f32 %v11299_v29, %v4144_v42  ;;  %v4244_v7 = vadd.f32 %v11323_v24, %v4145_v38  ;;  %4810 = vrot.lane.b32.xlu0 %v11364_v26, %s12684_s26 }
 0x36f   : > { %v4306_v58 = vmax.f32 %v4242_v57, 0.0  ;;  %v4368_v34 = vpack.c.bf16 %v4304_v47, %v4304_v47  ;;  %v4369_v60 = vpack.c.bf16 %v4305_v5, %v4305_v5  ;;  %v4493_v20 = vunpack.c.l.b16 %v11410_v36 }
 0x370   : > { %v4245_v43 = vadd.f32 %v11309_v40, %v4146_v31  ;;  %v4246_v63 = vadd.f32 %v11332_v23, %v4147_v15  ;;  %v4307_v30 = vmax.f32 %v4243_v25, 0.0  ;;  %v4308_v18 = vmax.f32 %v4244_v7, 0.0  ;;  %v9085_v53 = vpop.f32.mrb[32].mxu1  ;;  %v11501_v7 = vpop.f32.mrb[60].mxu0 }
 0x371   : > { %v4370_v62 = vpack.c.bf16 %v4306_v58, %v4306_v58  ;;  %v4496_v2 = vunpack.c.l.b16 %v4368_v34  ;;  %v4497_v55 = vunpack.c.l.b16 %v4369_v60  ;;  %v4495_v0 = vunpack.c.l.b16 %v4367_v50  ;;  %v9086_v33 = vpop.f32.mrb[33].mxu1  ;;  %12707 = vst [vmem:[#allocation29_spill] sm:$0xff] %v11501_v7 }
 0x372   : > { %v4309_v35 = vmax.f32 %v4245_v43, 0.0  ;;  %v4371_v48 = vpack.c.bf16 %v4307_v30, %v4307_v30  ;;  %v3144_v37 = vcombine.high %v11446_v49, %v11446_v49  ;;  %v4310_v59 = vmax.f32 %v4246_v63, 0.0  ;;  %v9088_v3 = vpop.f32.mrb[34].mxu1 }
 0x373   : > { %v4498_v26 = vunpack.c.l.b16 %v4370_v62  ;;  %v4578_v22 = vrot.slane %v4496_v2, 7  ;;  %v4580_v36 = vrot.slane %v4497_v55, 6  ;;  %v4572_v46 = vrot.slane %v4492_v51, 3  ;;  %v9089_v13 = vpop.f32.mrb[35].mxu1  ;;  %v11508_v62 = vpop.f32.mrb[61].mxu0 }
 0x374   : > { %v11485_v54 = vpack.c.bf16 %v4308_v18, %v4308_v18  ;;  %v4499_v10 = vunpack.c.l.b16 %v4371_v48  ;;  %v3151_v12 = vrot.slane %v11446_v49, %v11291_v14  ;;  %v4574_v17 = vrot.slane %v4493_v20, 2 }
 0x375   : > { %v4579_v42 = vsel %vm4544_vm6, %v4578_v22, %v4495_v0  ;;  %v4582_v57 = vrot.slane %v4498_v26, 5  ;;  %v3158_v47 = vrot.slane %v3144_v37, %v11291_v14  ;;  %v11492_v38 = vpack.c.bf16 %v4309_v35, %v4309_v35  ;;  %v11517_v35 = vpop.f32.mrb[62].mxu0 }
 0x376   : > { %v4581_v5 = vsel %vm4547_vm7, %v4580_v36, %v4579_v42  ;;  %v4584_v50 = vrot.slane %v4499_v10, 4  ;;  %v3159_v9 = vcombine.high %v3151_v12, %v3151_v12  ;;  %v11494_v51 = vpack.c.bf16 %v4310_v59, %v4310_v59  ;;  %12708 = vst [vmem:[#allocation30_spill] sm:$0xff] %v11517_v35 }
 0x377   : > { %v4583_v31 = vsel %vm4550_vm8, %v4582_v57, %v4581_v5  ;;  %v3160_v15 = vcombine.high %v3158_v47, %v3158_v47  ;;  %v8492_v25 = vrot.slane %v3151_v12, 9  ;;  %v4500_v49 = vunpack.c.l.b16 %v11485_v54  ;;  %v12709_v5 = vld [vmem:[#allocation17_spill] sm:$0xff] }
 0x378   : > { %v11499_v58 = vsel %vm4553_vm9, %v4584_v50, %v4583_v31  ;;  %v8493_v34 = vrot.slane %v3159_v9, 9  ;;  %v8494_v60 = vrot.slane %v3158_v47, 9  ;;  %v9078_v63 = vadd.f32 %v11435_v28, %v11430_v11  ;;  %v11523_v28 = vpop.f32.mrb[63].mxu0 }
 0x379   : > { %v8495_v20 = vrot.slane %v3160_v15, 9  ;;  %v11503_v43 = vmax.f32 %v3151_v12, %v8492_v25  ;;  %v4494_v30 = vunpack.c.l.b16 %v11412_v56  ;;  %v4573_v18 = vsel %vm4556_vm10, %v4572_v46, %v11424_v19 }
 0x37a   : > { %v11510_v2 = vmax.f32 %v3159_v9, %v8493_v34  ;;  %v11512_v55 = vmax.f32 %v3158_v47, %v8494_v60  ;;  %v4762_v0 = vshrl.u32 %v11459_v16, 16  ;;  %v2833_v37 = vadd.f32 %v9078_v63, %v11218_v44 }
 0x37b   : > { %v11519_v48 = vmax.f32 %v3160_v15, %v8495_v20  ;;  %v4575_v11 = vsel %vm4559_vm11, %v4574_v17, %v4573_v18  ;;  %v4576_v56 = vrot.slane %v4494_v30, 1  ;;  %v4764_v26 = vshll.u32 %v11459_v16, 16 }
 0x37c   : > { %v9081_v22 = vadd.f32 %v11462_v39, %v11455_v27  ;;  %v9084_v19 = vadd.f32 %v11471_v61, %v11469_v52  ;;  %v9087_v36 = vadd.f32 %v9086_v33, %v9085_v53  ;;  %v3161_v59 = vcombine.high %v2833_v37, %v2833_v37 }
 0x37d   : > { %v3168_v46 = vrot.slane %v2833_v37, %v11291_v14  ;;  %v4577_v10 = vsel %vm4562_vm12, %v4576_v56, %v4575_v11  ;;  %v11532_v44 = vadd.f32 %v9089_v13, %v9088_v3  ;;  %v4766_v17 = vrot.slane %v4764_v26, 1 }
 0x37e   : > { %v4663_v12 = vpack.c.b16 %v4577_v10, %v4577_v10  ;;  %v2838_v42 = vadd.f32 %v11209_v41, %v9081_v22  ;;  %v2841_v57 = vadd.f32 %v11215_v45, %v9084_v19  ;;  %v3175_v47 = vrot.slane %v3161_v59, %v11291_v14 }
 0x37f   : > { %v3176_v27 = vcombine.high %v3168_v46, %v3168_v46  ;;  %v8496_v39 = vrot.slane %v3168_v46, 9  ;;  %v11538_v52 = vadd.f32 %v9087_v36, %v12709_v5  ;;  %v11540_v33 = vor.u32 %v4766_v17, %v4762_v0 }
 0x380   : > { %v4678_v61 = vshrl.u32 %v4663_v12, 16  ;;  %v4681_v53 = vshll.u32 %v4663_v12, 16  ;;  %v3178_v50 = vcombine.high %v2838_v42, %v2838_v42  ;;  %v3177_v3 = vcombine.high %v3175_v47, %v3175_v47 }
 0x381   : > { %12710 = vst [vmem:[#allocation17_spill] sm:$0xff] %v11540_v33  ;;  %v8497_v13 = vrot.slane %v3176_v27, 9  ;;  %v8498_v9 = vrot.slane %v3175_v47, 9  ;;  %v4048_v31 = vmax.f32 %v3168_v46, %v8496_v39  ;;  %v3185_v41 = vrot.slane %v2838_v42, %v11291_v14  ;;  %v11544_v34 = vpop.f32.mrb[36].mxu1 }
 0x382   : > { %v4680_v15 = vrot.slane %v4678_v61, 7  ;;  %v3192_v45 = vrot.slane %v3178_v50, %v11291_v14  ;;  %v3195_v25 = vcombine.high %v2841_v57, %v2841_v57  ;;  %v8499_v60 = vrot.slane %v3177_v3, 9  ;;  %v11547_v18 = vpop.f32.mrb[37].mxu1 }
 0x383   : > { %v4049_v20 = vmax.f32 %v3176_v27, %v8497_v13  ;;  %v4050_v63 = vmax.f32 %v3175_v47, %v8498_v9  ;;  %v3202_v30 = vrot.slane %v2841_v57, %v11291_v14  ;;  %v3193_v37 = vcombine.high %v3185_v41, %v3185_v41  ;;  %v11549_v26 = vpop.f32.mrb[38].mxu1 }
 0x384   : > { %v4683_v0 = vor.u32 %v4681_v53, %v4680_v15  ;;  %v3194_v11 = vcombine.high %v3192_v45, %v3192_v45  ;;  %v8500_v56 = vrot.slane %v3185_v41, 9  ;;  %v4051_v22 = vmax.f32 %v3177_v3, %v8499_v60  ;;  %v11552_v46 = vpop.f32.mrb[39].mxu1 }
 0x385   : > { %v8502_v19 = vrot.slane %v3192_v45, 9  ;;  %v3209_v36 = vrot.slane %v3195_v25, %v11291_v14  ;;  %v3210_v59 = vcombine.high %v3202_v30, %v3202_v30  ;;  %v8501_v12 = vrot.slane %v3193_v37, 9 }
 0x386   : > { %v4735_v10 = vsel %vm10449_vm15, 0, %v4683_v0  ;;  %v8503_v17 = vrot.slane %v3194_v11, 9  ;;  %v4052_v42 = vmax.f32 %v3185_v41, %v8500_v56  ;;  %v8504_v39 = vrot.slane %v3202_v30, 9 }
 0x387   : > { %v11558_v57 = vsel %vm11312_vm5, %v4735_v10, 0  ;;  %v4054_v47 = vmax.f32 %v3192_v45, %v8502_v19  ;;  %v3211_v27 = vcombine.high %v3209_v36, %v3209_v36  ;;  %v4053_v5 = vmax.f32 %v3193_v37, %v8501_v12 }
 0x388   : > { %12711 = vst [vmem:[#allocation31_spill] sm:$0xff] %v11558_v57  ;;  %4845 = vrot.lane.b32.xlu1 %v11558_v57, %s12684_s26  ;;  %v4055_v61 = vmax.f32 %v3194_v11, %v8503_v17  ;;  %v4148_v53 = vmax.f32 %v11503_v43, %v4052_v42  ;;  %v8505_v50 = vrot.slane %v3210_v59, 9  ;;  %v8506_v13 = vrot.slane %v3209_v36, 9 }
 0x389   : > { %v4150_v3 = vmax.f32 %v11512_v55, %v4054_v47  ;;  %v8507_v9 = vrot.slane %v3211_v27, 9  ;;  %v4056_v15 = vmax.f32 %v3202_v30, %v8504_v39  ;;  %v4149_v41 = vmax.f32 %v11510_v2, %v4053_v5  ;;  %v11567_v0 = vpop.f32.mrb[40].mxu1 }
 0x38a   : > { %v4151_v25 = vmax.f32 %v11519_v48, %v4055_v61  ;;  %v4247_v45 = vadd.f32 %v11294_v32, %v4148_v53  ;;  %v4057_v60 = vmax.f32 %v3210_v59, %v8505_v50  ;;  %v4058_v11 = vmax.f32 %v3209_v36, %v8506_v13  ;;  %v11570_v19 = vpop.f32.mrb[41].mxu1 }
 0x38b   : > { %v4249_v37 = vadd.f32 %v11305_v1, %v4150_v3  ;;  %v4059_v56 = vmax.f32 %v3211_v27, %v8507_v9  ;;  %v4152_v43 = vmax.f32 %v4048_v31, %v4056_v15  ;;  %v4248_v55 = vadd.f32 %v11317_v8, %v4149_v41  ;;  %v11576_v10 = vpop.f32.mrb[42].mxu1 }
 0x38c   : > { %4812 = vrot.lane.b32.xlu1 %v11540_v33, %s12684_s26  ;;  %v4250_v2 = vadd.f32 %v11320_v6, %v4151_v25  ;;  %v4311_v48 = vmax.f32 %v4247_v45, 0.0  ;;  %v4153_v30 = vmax.f32 %v4049_v20, %v4057_v60  ;;  %v4154_v12 = vmax.f32 %v4050_v63, %v4058_v11  ;;  %v11579_v42 = vpop.f32.mrb[43].mxu1  ;;  %v9435_v25 = vld [vmem:[%s12629_s6 + $0x40] sm:$0xff]  }
 0x38d   : > { %v4313_v59 = vmax.f32 %v4249_v37, 0.0  ;;  %v4155_v17 = vmax.f32 %v4051_v22, %v4059_v56  ;;  %v4251_v36 = vadd.f32 %v11299_v29, %v4152_v43  ;;  %v4312_v31 = vmax.f32 %v4248_v55, 0.0  ;;  %v9437_v56 = vld [vmem:[%s12629_s6 + $0x48] sm:$0xff]   ;;  %9151 = vmatprep.subr.bf16.mxu0 %v9435_v25 }
 0x38e   : > { %v4314_v47 = vmax.f32 %v4250_v2, 0.0  ;;  %v4375_v27 = vpack.c.bf16 %v4311_v48, %v4311_v48  ;;  %v4252_v39 = vadd.f32 %v11323_v24, %v4153_v30  ;;  %v4253_v61 = vadd.f32 %v11309_v40, %v4154_v12 }
 0x38f   : > { %v4377_v5 = vpack.c.bf16 %v4313_v59, %v4313_v59  ;;  %v4254_v53 = vadd.f32 %v11332_v23, %v4155_v17  ;;  %v4315_v20 = vmax.f32 %v4251_v36, 0.0  ;;  %v4501_v50 = vunpack.c.l.b16 %v11492_v38  ;;  %v9436_v38 = vld [vmem:[%s12629_s6] sm:$0xff]   ;;  %v9438_v36 = vld [vmem:[%s12629_s6 + $0x8] sm:$0xff]  }
 0x390   : > { %v4376_v3 = vpack.c.bf16 %v4312_v31, %v4312_v31  ;;  %v4378_v63 = vpack.c.bf16 %v4314_v47, %v4314_v47  ;;  %v4316_v22 = vmax.f32 %v4252_v39, 0.0  ;;  %v4317_v9 = vmax.f32 %v4253_v61, 0.0  ;;  %9152 = vmatpush3.bf16.msra.mxu0 %v9436_v38 }
 0x391   : > { %v4505_v13 = vunpack.c.l.b16 %v4377_v5  ;;  %v4318_v15 = vmax.f32 %v4254_v53, 0.0  ;;  %v4379_v41 = vpack.c.bf16 %v4315_v20, %v4315_v20  ;;  %v3212_v11 = vcombine.high %v11538_v52, %v11538_v52  ;;  %9153 = vmatprep.subr.bf16.mxu0 %v9437_v56 }
 0x392   : > { %v4504_v45 = vunpack.c.l.b16 %v4376_v3  ;;  %v4506_v60 = vunpack.c.l.b16 %v4378_v63  ;;  %v11588_v37 = vpack.c.bf16 %v4316_v22, %v4316_v22  ;;  %v4586_v43 = vrot.slane %v4500_v49, 3  ;;  %v12712_v49 = vld [vmem:[#allocation19_spill] sm:$0xff] }
 0x393   : > { %v4503_v55 = vunpack.c.l.b16 %v4375_v27  ;;  %v4594_v2 = vrot.slane %v4505_v13, 6  ;;  %v4507_v48 = vunpack.c.l.b16 %v4379_v41  ;;  %v11600_v12 = vpack.c.bf16 %v4317_v9, %v4317_v9 }
 0x394   : > { %v4592_v30 = vrot.slane %v4504_v45, 7  ;;  %v4596_v59 = vrot.slane %v4506_v60, 5  ;;  %v3219_v17 = vrot.slane %v11538_v52, %v11291_v14  ;;  %v4588_v31 = vrot.slane %v4501_v50, 2  ;;  %9154 = vmatpush3.bf16.msra.mxu0 %v9438_v36  ;;  %v9439_v45 = vld [vmem:[%s12629_s6 + $0x50] sm:$0xff]  }
 0x395   : > { %v11607_v47 = vpack.c.bf16 %v4318_v15, %v4318_v15  ;;  %v3226_v54 = vrot.slane %v3212_v11, %v11291_v14  ;;  %v2849_v27 = vadd.f32 %v11532_v44, %v12712_v49  ;;  %v4598_v20 = vrot.slane %v4507_v48, 4  ;;  %v9440_v60 = vld [vmem:[%s12629_s6 + $0x10] sm:$0xff]   ;;  %9155 = vmatprep.subr.bf16.mxu0 %v9439_v45  ;;  %v12713_v45 = vld [vmem:[#allocation16_spill] sm:$0xff] }
 0x396   : > { %v4593_v39 = vsel %vm4544_vm6, %v4592_v30, %v4503_v55  ;;  %v3227_v61 = vcombine.high %v3219_v17, %v3219_v17  ;;  %v8508_v52 = vrot.slane %v3219_v17, 9  ;;  %v4502_v56 = vunpack.c.l.b16 %v11494_v51 }
 0x397   : > { %v4595_v53 = vsel %vm4547_vm7, %v4594_v2, %v4593_v39  ;;  %v3228_v3 = vcombine.high %v3226_v54, %v3226_v54  ;;  %v8510_v63 = vrot.slane %v3226_v54, 9  ;;  %v3229_v9 = vcombine.high %v2849_v27, %v2849_v27 }
 0x398   : > { %v4597_v22 = vsel %vm4550_vm8, %v4596_v59, %v4595_v53  ;;  %v8509_v13 = vrot.slane %v3227_v61, 9  ;;  %v11620_v41 = vmax.f32 %v3219_v17, %v8508_v52  ;;  %v3236_v25 = vrot.slane %v2849_v27, %v11291_v14  ;;  %9156 = vmatpush3.bf16.msra.mxu0 %v9440_v60  ;;  %v9441_v53 = vld [vmem:[%s12629_s6 + $0x58] sm:$0xff]  }
 0x399   : > { %v11618_v44 = vsel %vm4553_vm9, %v4598_v20, %v4597_v22  ;;  %v8511_v15 = vrot.slane %v3228_v3, 9  ;;  %v11629_v11 = vmax.f32 %v3226_v54, %v8510_v63  ;;  %v3243_v38 = vrot.slane %v3229_v9, %v11291_v14  ;;  %v11635_v2 = vpop.f32.mrb[44].mxu1  ;;  %v9442_v20 = vld [vmem:[%s12629_s6 + $0x18] sm:$0xff]   ;;  %9157 = vmatprep.subr.bf16.mxu0 %v9441_v53 }
 0x39a   : > { %v4587_v55 = vsel %vm4556_vm10, %v4586_v43, %v11499_v58  ;;  %v11637_v48 = vmax.f32 %v3227_v61, %v8509_v13  ;;  %v3244_v30 = vcombine.high %v3236_v25, %v3236_v25  ;;  %v8512_v59 = vrot.slane %v3236_v25, 9  ;;  %v11640_v36 = vpop.f32.mrb[45].mxu1  ;;  %v12717_v53 = vld [vmem:[#allocation23_spill] sm:$0xff] }
 0x39b   : > { %v4589_v17 = vsel %vm4559_vm11, %v4588_v31, %v4587_v55  ;;  %v3245_v54 = vcombine.high %v3243_v38, %v3243_v38  ;;  %v8514_v49 = vrot.slane %v3243_v38, 9  ;;  %v4590_v27 = vrot.slane %v4502_v56, 1  ;;  %v11643_v51 = vpop.f32.mrb[46].mxu1  ;;  %v12714_v55 = vld [vmem:[#allocation18_spill] sm:$0xff] }
 0x39c   : > { %v4769_v39 = vshrl.u32 %v11558_v57, 16  ;;  %v11645_v58 = vmax.f32 %v3228_v3, %v8511_v15  ;;  %v8513_v43 = vrot.slane %v3244_v30, 9  ;;  %v4771_v61 = vshll.u32 %v11558_v57, 16  ;;  %v11650_v31 = vpop.f32.mrb[47].mxu1  ;;  %v9443_v3 = vld [vmem:[%s12629_s6 + $0x60] sm:$0xff]   ;;  %9158 = vmatpush3.bf16.msra.mxu0 %v9442_v20 }
 0x39d   : > { %v9093_v52 = vadd.f32 %v11547_v18, %v11544_v34  ;;  %v8515_v63 = vrot.slane %v3245_v54, 9  ;;  %v11661_v22 = vmax.f32 %v3236_v25, %v8512_v59  ;;  %v4591_v13 = vsel %vm4562_vm12, %v4590_v27, %v4589_v17  ;;  %9159 = vmatprep.subr.bf16.mxu0 %v9443_v3 }
 0x39e   : > { %v9096_v34 = vadd.f32 %v11552_v46, %v11549_v26  ;;  %v11666_v18 = vmax.f32 %v3243_v38, %v8514_v49  ;;  %v4664_v9 = vpack.c.b16 %v4591_v13, %v4591_v13  ;;  %v4773_v15 = vrot.slane %v4771_v61, 1  ;;  %v9444_v26 = vld [vmem:[%s12629_s6 + $0x20] sm:$0xff]  }
 0x39f   : > { %v2854_v60 = vadd.f32 %v12713_v45, %v9093_v52  ;;  %v11669_v56 = vmax.f32 %v3244_v30, %v8513_v43  ;;  %v9099_v25 = vadd.f32 %v11570_v19, %v11567_v0  ;;  %v9102_v59 = vadd.f32 %v11579_v42, %v11576_v10  ;;  %v9445_v30 = vld [vmem:[%s12629_s6 + $0x68] sm:$0xff]  }
 0x3a0   : > { %v2857_v50 = vadd.f32 %v12714_v55, %v9096_v34  ;;  %v11679_v46 = vmax.f32 %v3245_v54, %v8515_v63  ;;  %v4685_v38 = vshrl.u32 %v4664_v9, 16  ;;  %v4688_v17 = vshll.u32 %v4664_v9, 16  ;;  %v12715_v42 = vld [vmem:[#allocation21_spill] sm:$0xff]  ;;  %9160 = vmatpush3.bf16.msra.mxu0 %v9444_v26 }
 0x3a1   : > { %v3246_v49 = vcombine.high %v2854_v60, %v2854_v60  ;;  %v3253_v0 = vrot.slane %v2854_v60, %v11291_v14  ;;  %v11687_v27 = vadd.f32 %v9099_v25, %v12715_v42  ;;  %v11689_v43 = vpop.f32.mrb[48].mxu1  ;;  %v11691_v61 = vor.u32 %v4773_v15, %v4769_v39  ;;  %v9446_v39 = vld [vmem:[%s12629_s6 + $0x28] sm:$0xff]   ;;  %9161 = vmatprep.subr.bf16.mxu0 %v9445_v30 }
 0x3a2   : > { %v3263_v19 = vcombine.high %v2857_v50, %v2857_v50  ;;  %v3270_v10 = vrot.slane %v2857_v50, %v11291_v14  ;;  %v4687_v54 = vrot.slane %v4685_v38, 7  ;;  %v11695_v20 = vadd.f32 %v9102_v59, %v12717_v53  ;;  %v11697_v3 = vpop.f32.mrb[49].mxu1 }
 0x3a3   : > { %12716 = vst [vmem:[#allocation19_spill] sm:$0xff] %v11691_v61  ;;  %v3260_v52 = vrot.slane %v3246_v49, %v11291_v14  ;;  %v3261_v63 = vcombine.high %v3253_v0, %v3253_v0  ;;  %v8516_v13 = vrot.slane %v3253_v0, 9  ;;  %v11700_v9 = vpop.f32.mrb[50].mxu1 }
 0x3a4   : > { %v3277_v34 = vrot.slane %v3263_v19, %v11291_v14  ;;  %v3278_v50 = vcombine.high %v3270_v10, %v3270_v10  ;;  %v4690_v15 = vor.u32 %v4688_v17, %v4687_v54  ;;  %v8520_v55 = vrot.slane %v3270_v10, 9  ;;  %v11705_v25 = vpop.f32.mrb[51].mxu1  ;;  %v9447_v19 = vld [vmem:[%s12629_s6 + $0x70] sm:$0xff]   ;;  %9162 = vmatpush3.bf16.msra.mxu0 %v9446_v39 }
 0x3a5   : > { %v3262_v45 = vcombine.high %v3260_v52, %v3260_v52  ;;  %v8518_v60 = vrot.slane %v3260_v52, 9  ;;  %v8517_v59 = vrot.slane %v3261_v63, 9  ;;  %v4068_v38 = vmax.f32 %v3253_v0, %v8516_v13  ;;  %v9448_v13 = vld [vmem:[%s12629_s6 + $0x30] sm:$0xff]   ;;  %9163 = vmatprep.subr.bf16.mxu0 %v9447_v19 }
 0x3a6   : > { %v3279_v49 = vcombine.high %v3277_v34, %v3277_v34  ;;  %v8521_v42 = vrot.slane %v3278_v50, 9  ;;  %v4736_v26 = vsel %vm10449_vm15, 0, %v4690_v15  ;;  %v8522_v17 = vrot.slane %v3277_v34, 9 }
 0x3a7   : > { %v8519_v53 = vrot.slane %v3262_v45, 9  ;;  %v4070_v5 = vmax.f32 %v3260_v52, %v8518_v60  ;;  %v11714_v54 = vsel %vm11312_vm5, %v4736_v26, 0  ;;  %v4069_v33 = vmax.f32 %v3261_v63, %v8517_v59  ;;  %v9449_v63 = vld [vmem:[%s12629_s6 + $0x78] sm:$0xff]  }
 0x3a8   : > { %12718 = vst [vmem:[#allocation16_spill] sm:$0xff] %v11714_v54  ;;  %v4156_v30 = vmax.f32 %v11620_v41, %v4068_v38  ;;  %v8523_v0 = vrot.slane %v3279_v49, 9  ;;  %4847 = vrot.lane.b32.xlu0 %v11714_v54, %s12684_s26  ;;  %v4072_v60 = vmax.f32 %v3270_v10, %v8520_v55  ;;  %v4073_v57 = vmax.f32 %v3278_v50, %v8521_v42 }
 0x3a9   : > { %v4071_v15 = vmax.f32 %v3262_v45, %v8519_v53  ;;  %v4158_v52 = vmax.f32 %v11629_v11, %v4070_v5  ;;  %v4157_v41 = vmax.f32 %v11637_v48, %v4069_v33  ;;  %v4074_v59 = vmax.f32 %v3277_v34, %v8522_v17  ;;  %v11728_v26 = vpop.f32.mrb[52].mxu1  ;;  %9164 = vmatpush3.bf16.msra.mxu0 %v9448_v13 }
 0x3aa   : > { %v4255_v39 = vadd.f32 %v11294_v32, %v4156_v30  ;;  %v4075_v38 = vmax.f32 %v3279_v49, %v8523_v0  ;;  %v4160_v5 = vmax.f32 %v11661_v22, %v4072_v60  ;;  %v4161_v11 = vmax.f32 %v11669_v56, %v4073_v57  ;;  %v11734_v10 = vpop.f32.mrb[53].mxu1  ;;  %9165 = vmatprep.subr.bf16.mxu0 %v9449_v63 }
 0x3ab   : > { %v4159_v16 = vmax.f32 %v11645_v58, %v4071_v15  ;;  %v4257_v45 = vadd.f32 %v11305_v1, %v4158_v52  ;;  %v4256_v50 = vadd.f32 %v11317_v8, %v4157_v41  ;;  %v4162_v48 = vmax.f32 %v11666_v18, %v4074_v59  ;;  %v11739_v55 = vpop.f32.mrb[54].mxu1  ;;  %v9450_v58 = vld [vmem:[%s12629_s6 + $0x38] sm:$0xff]  }
 0x3ac   : > { %v4319_v33 = vmax.f32 %v4255_v39, 0.0  ;;  %v4163_v34 = vmax.f32 %v11679_v46, %v4075_v38  ;;  %4814 = vrot.lane.b32.xlu0 %v11691_v61, %s12684_s26  ;;  %v4259_v56 = vadd.f32 %v11299_v29, %v4160_v5  ;;  %v4260_v49 = vadd.f32 %v11323_v24, %v4161_v11  ;;  %v11749_v18 = vpop.f32.mrb[55].mxu1 }
 0x3ad   : > { %v4258_v57 = vadd.f32 %v11320_v6, %v4159_v16  ;;  %v4321_v22 = vmax.f32 %v4257_v45, 0.0  ;;  %v4320_v46 = vmax.f32 %v4256_v50, 0.0  ;;  %v4261_v19 = vadd.f32 %v11309_v40, %v4162_v48  ;;  %9166 = vmatpush3.bf16.msra.mxu0 %v9450_v58 }
 0x3ae   : > { %v4383_v42 = vpack.c.bf16 %v4319_v33, %v4319_v33  ;;  %v4262_v53 = vadd.f32 %v11332_v23, %v4163_v34  ;;  %v4323_v0 = vmax.f32 %v4259_v56, 0.0  ;;  %v4324_v13 = vmax.f32 %v4260_v49, 0.0 }
 0x3af   : > { %v4322_v17 = vmax.f32 %v4258_v57, 0.0  ;;  %v4385_v30 = vpack.c.bf16 %v4321_v22, %v4321_v22  ;;  %v12719_v16 = vunpack.c.l.b16 %v11588_v37  ;;  %v4384_v52 = vpack.c.bf16 %v4320_v46, %v4320_v46 }
 0x3b0   : > { %v4325_v60 = vmax.f32 %v4261_v19, 0.0  ;;  %v4326_v41 = vmax.f32 %v4262_v53, 0.0  ;;  %v4387_v63 = vpack.c.bf16 %v4323_v0, %v4323_v0  ;;  %v4388_v38 = vpack.c.bf16 %v4324_v13, %v4324_v13 }
 0x3b1   : > { %v4600_v15 = vrot.slane %v12719_v16, 3  ;;  %v4386_v39 = vpack.c.bf16 %v4322_v17, %v4322_v17  ;;  %v4513_v59 = vunpack.c.l.b16 %v4385_v30  ;;  %v12720_v45 = vunpack.c.l.b16 %v11600_v12  ;;  %v11760_v48 = vpop.f32.mrb[56].mxu1 }
 0x3b2   : > { %v4512_v11 = vunpack.c.l.b16 %v4384_v52  ;;  %v3280_v50 = vcombine.high %v11687_v27, %v11687_v27  ;;  %v4510_v33 = vunpack.c.l.b16 %v11607_v47  ;;  %v4511_v37 = vunpack.c.l.b16 %v4383_v42  ;;  %v11762_v58 = vpop.f32.mrb[57].mxu1 }
 0x3b3   : > { %v4602_v5 = vrot.slane %v12720_v45, 2  ;;  %v4514_v34 = vunpack.c.l.b16 %v4386_v39  ;;  %v4608_v57 = vrot.slane %v4513_v59, 6  ;;  %v4515_v22 = vunpack.c.l.b16 %v4387_v63  ;;  %v11769_v19 = vpop.f32.mrb[58].mxu1 }
 0x3b4   : > { %v4606_v56 = vrot.slane %v4512_v11, 7  ;;  %v11764_v49 = vpack.c.bf16 %v4325_v60, %v4325_v60  ;;  %v3287_v12 = vrot.slane %v11687_v27, %v11291_v14  ;;  %v3294_v46 = vrot.slane %v3280_v50, %v11291_v14  ;;  %v11775_v30 = vpop.f32.mrb[59].mxu1 }
 0x3b5   : > { %v4610_v53 = vrot.slane %v4514_v34, 5  ;;  %v11771_v47 = vpack.c.bf16 %v4326_v41, %v4326_v41  ;;  %v4516_v17 = vunpack.c.l.b16 %v4388_v38  ;;  %v3297_v42 = vcombine.high %v11695_v20, %v11695_v20 }
 0x3b6   : > { %v4607_v0 = vsel %vm4544_vm6, %v4606_v56, %v4511_v37  ;;  %v4612_v13 = vrot.slane %v4515_v22, 4  ;;  %v3295_v16 = vcombine.high %v3287_v12, %v3287_v12  ;;  %v3296_v52 = vcombine.high %v3294_v46, %v3294_v46 }
 0x3b7   : > { %v4609_v27 = vsel %vm4547_vm7, %v4608_v57, %v4607_v0  ;;  %v8524_v60 = vrot.slane %v3287_v12, 9  ;;  %v8526_v39 = vrot.slane %v3294_v46, 9  ;;  %v3304_v59 = vrot.slane %v11695_v20, %v11291_v14 }
 0x3b8   : > { %v4611_v41 = vsel %vm4550_vm8, %v4610_v53, %v4609_v27  ;;  %v8525_v63 = vrot.slane %v3295_v16, 9  ;;  %v8527_v38 = vrot.slane %v3296_v52, 9  ;;  %v3311_v45 = vrot.slane %v3297_v42, %v11291_v14 }
 0x3b9   : > { %v11785_v50 = vsel %vm4553_vm9, %v4612_v13, %v4611_v41  ;;  %v11787_v37 = vrot.slane %v4516_v17, 3  ;;  %v3312_v34 = vcombine.high %v3304_v59, %v3304_v59  ;;  %v11789_v57 = vmax.f32 %v3287_v12, %v8524_v60  ;;  %v11793_v0 = vpop.f32.mrb[60].mxu1 }
 0x3ba   : > { %v11791_v22 = vmax.f32 %v3294_v46, %v8526_v39  ;;  %v3313_v56 = vcombine.high %v3311_v45, %v3311_v45  ;;  %v8528_v20 = vrot.slane %v3304_v59, 9  ;;  %12721 = vst [vmem:[#allocation18_spill] sm:$0xff] %v11793_v0  ;;  %v11795_v53 = vmax.f32 %v3295_v16, %v8525_v63  ;;  %v11799_v13 = vpop.f32.mrb[61].mxu1 }
 0x3bb   : > { %v8529_v27 = vrot.slane %v3312_v34, 9  ;;  %v4601_v42 = vsel %vm4556_vm10, %v4600_v15, %v11618_v44  ;;  %v4604_v11 = vrot.slane %v4510_v33, 1  ;;  %12722 = vst [vmem:[#allocation21_spill] sm:$0xff] %v11799_v13  ;;  %v11801_v17 = vmax.f32 %v3296_v52, %v8527_v38  ;;  %v11804_v60 = vpop.f32.mrb[62].mxu1 }
 0x3bc   : > { %v8530_v41 = vrot.slane %v3311_v45, 9  ;;  %v8531_v12 = vrot.slane %v3313_v56, 9  ;;  %v4603_v46 = vsel %vm4559_vm11, %v4602_v5, %v4601_v42  ;;  %12723 = vst [vmem:[#allocation23_spill] sm:$0xff] %v11804_v60  ;;  %v11806_v39 = vmax.f32 %v3304_v59, %v8528_v20  ;;  %v11811_v44 = vpop.f32.mrb[63].mxu1 }
 0x3bd   : > { %v4605_v16 = vsel %vm4562_vm12, %v4604_v11, %v4603_v46  ;;  %v4776_v63 = vshrl.u32 %v11714_v54, 16  ;;  %v4778_v61 = vshll.u32 %v11714_v54, 16  ;;  %12724 = vst [vmem:[#allocation32_spill] sm:$0xff] %v11811_v44  ;;  %v11813_v15 = vmax.f32 %v3312_v34, %v8529_v27  ;;  %v12725_v27 = vld [vmem:[#allocation20_spill] sm:$0xff]  ;;  %v12727_v54 = vld [vmem:[#allocation25_spill] sm:$0xff] }
 0x3be   : > { %v4665_v33 = vpack.c.b16 %v4605_v16, %v4605_v16  ;;  %v9105_v52 = vadd.f32 %v11640_v36, %v11635_v2  ;;  %v9108_v5 = vadd.f32 %v11650_v31, %v11643_v51  ;;  %v9111_v59 = vadd.f32 %v11697_v3, %v11689_v43  ;;  %v12726_v16 = vld [vmem:[#allocation22_spill] sm:$0xff]  ;;  %v12728_v31 = vld [vmem:[#allocation27_spill] sm:$0xff]  ;;  %v12729_v43 = vld [vmem:[#allocation24_spill] sm:$0xff] }
 0x3bf   : > { %v4780_v38 = vrot.slane %v4778_v61, 1  ;;  %v9114_v11 = vadd.f32 %v11705_v25, %v11700_v9  ;;  %v9117_v20 = vadd.f32 %v11734_v10, %v11728_v26  ;;  %v11825_v42 = vmax.f32 %v3311_v45, %v8530_v41  ;;  %v9451_v45 = vld [vmem:[%s12629_s6 + $0xc0] sm:$0xff]  }
 0x3c0   : > { %v4692_v34 = vshrl.u32 %v4665_v33, 16  ;;  %v2870_v46 = vadd.f32 %v12725_v27, %v9105_v52  ;;  %v2873_v2 = vadd.f32 %v12726_v16, %v9108_v5  ;;  %v4695_v36 = vshll.u32 %v4665_v33, 16  ;;  %9191 = vmatprep.subr.bf16.mxu1 %v9451_v45 }
 0x3c1   : > { %v11830_v51 = vadd.f32 %v9111_v59, %v12727_v54  ;;  %v11833_v61 = vadd.f32 %v9114_v11, %v12728_v31  ;;  %v11836_v3 = vadd.f32 %v12729_v43, %v9117_v20  ;;  %v9452_v54 = vld [vmem:[%s12629_s6 + $0x80] sm:$0xff]   ;;  %v4083_v41 = vmax.f32 %v3313_v56, %v8531_v12 }
 0x3c2   : > { %v4694_v9 = vrot.slane %v4692_v34, 7  ;;  %v3314_v25 = vcombine.high %v2870_v46, %v2870_v46  ;;  %v3321_v26 = vrot.slane %v2870_v46, %v11291_v14  ;;  %v3331_v10 = vcombine.high %v2873_v2, %v2873_v2  ;;  %9192 = vmatpush3.bf16.msra.mxu1 %v9452_v54 }
 0x3c3   : > { %v11845_v33 = vor.u32 %v4780_v38, %v4776_v63  ;;  %v3338_v52 = vrot.slane %v2873_v2, %v11291_v14  ;;  %v3348_v5 = vcombine.high %v11830_v51, %v11830_v51  ;;  %v11854_v56 = vrot.slane %v11830_v51, %v11291_v14 }
 0x3c4   : > { %v4697_v59 = vor.u32 %v4695_v36, %v4694_v9  ;;  %v3328_v11 = vrot.slane %v3314_v25, %v11291_v14  ;;  %v3329_v20 = vcombine.high %v3321_v26, %v3321_v26  ;;  %v8532_v34 = vrot.slane %v3321_v26, 9 }
 0x3c5   : > { %v3345_v27 = vrot.slane %v3331_v10, %v11291_v14  ;;  %v3346_v46 = vcombine.high %v3338_v52, %v3338_v52  ;;  %v8536_v16 = vrot.slane %v3338_v52, 9 }
 0x3c6   : > { %v4737_v12 = vsel %vm10449_vm15, 0, %v4697_v59  ;;  %v3330_v63 = vcombine.high %v3328_v11, %v3328_v11  ;;  %v8533_v38 = vrot.slane %v3329_v20, 9  ;;  %v8534_v2 = vrot.slane %v3328_v11, 9 }
 0x3c7   : > { %v11860_v36 = vsel %vm11312_vm5, %v4737_v12, 0  ;;  %v4084_v31 = vmax.f32 %v3321_v26, %v8532_v34  ;;  %v3347_v43 = vcombine.high %v3345_v27, %v3345_v27  ;;  %v8537_v9 = vrot.slane %v3346_v46, 9 }
 0x3c8   : > { %4849 = vrot.lane.b32.xlu1 %v11860_v36, %s12684_s26  ;;  %v8535_v25 = vrot.slane %v3330_v63, 9  ;;  %v4085_v51 = vmax.f32 %v3329_v20, %v8533_v38  ;;  %v4086_v10 = vmax.f32 %v3328_v11, %v8534_v2  ;;  %v8538_v45 = vrot.slane %v3345_v27, 9 }
 0x3c9   : > { %v4164_v54 = vmax.f32 %v11789_v57, %v4084_v31  ;;  %v8539_v59 = vrot.slane %v3347_v43, 9  ;;  %v4088_v35 = vmax.f32 %v3338_v52, %v8536_v16  ;;  %v4089_v44 = vmax.f32 %v3346_v46, %v8537_v9 }
 0x3ca   : > { %v4087_v60 = vmax.f32 %v3330_v63, %v8535_v25  ;;  %v4165_v7 = vmax.f32 %v11795_v53, %v4085_v51  ;;  %v4166_v12 = vmax.f32 %v11791_v22, %v4086_v10  ;;  %v4090_v26 = vmax.f32 %v3345_v27, %v8538_v45 }
 0x3cb   : > { %v4263_v34 = vadd.f32 %v11294_v32, %v4164_v54  ;;  %v4091_v13 = vmax.f32 %v3347_v43, %v8539_v59  ;;  %v4168_v0 = vmax.f32 %v11806_v39, %v4088_v35  ;;  %v4169_v20 = vmax.f32 %v11813_v15, %v4089_v44 }
 0x3cc   : > { %4816 = vrot.lane.b32.xlu1 %v11845_v33, %s12684_s26  ;;  %v4167_v57 = vmax.f32 %v11801_v17, %v4087_v60  ;;  %v4264_v52 = vadd.f32 %v11317_v8, %v4165_v7  ;;  %v4265_v11 = vadd.f32 %v11305_v1, %v4166_v12  ;;  %v4170_v53 = vmax.f32 %v11825_v42, %v4090_v26 }
 0x3cd   : > { %v4327_v22 = vmax.f32 %v4263_v34, 0.0  ;;  %v4171_v27 = vmax.f32 %v4083_v41, %v4091_v13  ;;  %v4267_v46 = vadd.f32 %v11299_v29, %v4168_v0  ;;  %v4268_v16 = vadd.f32 %v11323_v24, %v4169_v20 }
 0x3ce   : > { %v4266_v35 = vadd.f32 %v11320_v6, %v4167_v57  ;;  %v4328_v39 = vmax.f32 %v4264_v52, 0.0  ;;  %v4329_v44 = vmax.f32 %v4265_v11, 0.0  ;;  %v4269_v15 = vadd.f32 %v11309_v40, %v4170_v53 }
 0x3cf   : > { %v4391_v63 = vpack.c.bf16 %v4327_v22, %v4327_v22  ;;  %v11881_v17 = vadd.f32 %v11332_v23, %v4171_v27  ;;  %v4331_v7 = vmax.f32 %v4267_v46, 0.0  ;;  %v4332_v60 = vmax.f32 %v4268_v16, 0.0 }
 0x3d0   : > { %v4330_v38 = vmax.f32 %v4266_v35, 0.0  ;;  %v4392_v42 = vpack.c.bf16 %v4328_v39, %v4328_v39  ;;  %v4393_v2 = vpack.c.bf16 %v4329_v44, %v4329_v44  ;;  %v4333_v13 = vmax.f32 %v4269_v15, 0.0 }
 0x3d1   : > { %v12730_v0 = vunpack.c.l.b16 %v11764_v49  ;;  %v4395_v31 = vpack.c.bf16 %v4331_v7, %v4331_v7  ;;  %v11885_v43 = vpack.c.bf16 %v4332_v60, %v4332_v60  ;;  %v3362_v9 = vrot.slane %v3348_v5, %v11291_v14 }
 0x3d2   : > { %v4394_v25 = vpack.c.bf16 %v4330_v38, %v4330_v38  ;;  %v4520_v51 = vunpack.c.l.b16 %v4392_v42  ;;  %v4521_v10 = vunpack.c.l.b16 %v4393_v2  ;;  %v11888_v45 = vpack.c.bf16 %v4333_v13, %v4333_v13 }
 0x3d3   : > { %v4616_v41 = vrot.slane %v12730_v0, 2  ;;  %v4519_v54 = vunpack.c.l.b16 %v4391_v63  ;;  %v4523_v59 = vunpack.c.l.b16 %v4395_v31  ;;  %v3363_v12 = vcombine.high %v11854_v56, %v11854_v56 }
 0x3d4   : > { %v3365_v26 = vcombine.high %v11833_v61, %v11833_v61  ;;  %v4522_v49 = vunpack.c.l.b16 %v4394_v25  ;;  %v4620_v34 = vrot.slane %v4520_v51, 7  ;;  %v4622_v20 = vrot.slane %v4521_v10, 6 }
 0x3d5   : > { %v4334_v57 = vmax.f32 %v11881_v17, 0.0  ;;  %v4524_v5 = vunpack.c.l.b16 %v11885_v43  ;;  %v4525_v52 = vunpack.c.l.b16 %v11888_v45  ;;  %v3364_v11 = vcombine.high %v3362_v9, %v3362_v9 }
 0x3d6   : > { %v8540_v53 = vrot.slane %v11854_v56, 9  ;;  %v4621_v22 = vsel %vm4544_vm6, %v4620_v34, %v4519_v54  ;;  %v4624_v27 = vrot.slane %v4522_v49, 5  ;;  %v4626_v46 = vrot.slane %v4523_v59, 4 }
 0x3d7   : > { %v8541_v16 = vrot.slane %v3363_v12, 9  ;;  %v4623_v35 = vsel %vm4547_vm7, %v4622_v20, %v4621_v22  ;;  %v8542_v39 = vrot.slane %v3362_v9, 9  ;;  %v8543_v44 = vrot.slane %v3364_v11, 9 }
 0x3d8   : > { %v4092_v15 = vmax.f32 %v11854_v56, %v8540_v53  ;;  %v4625_v63 = vsel %vm4550_vm8, %v4624_v27, %v4623_v35  ;;  %v3372_v60 = vrot.slane %v11833_v61, %v11291_v14  ;;  %v3379_v38 = vrot.slane %v3365_v26, %v11291_v14 }
 0x3d9   : > { %v4093_v7 = vmax.f32 %v3363_v12, %v8541_v16  ;;  %v11906_v42 = vsel %vm4553_vm9, %v4626_v46, %v4625_v63  ;;  %v4094_v2 = vmax.f32 %v3362_v9, %v8542_v39  ;;  %v4095_v13 = vmax.f32 %v3364_v11, %v8543_v44 }
 0x3da   : > { %v3382_v0 = vcombine.high %v11836_v3, %v11836_v3  ;;  %v3380_v31 = vcombine.high %v3372_v60, %v3372_v60  ;;  %v3381_v25 = vcombine.high %v3379_v38, %v3379_v38  ;;  %v8544_v51 = vrot.slane %v3372_v60, 9 }
 0x3db   : > { %v8546_v56 = vrot.slane %v3379_v38, 9  ;;  %v3389_v10 = vrot.slane %v11836_v3, %v11291_v14  ;;  %v4518_v61 = vunpack.c.l.b16 %v11771_v47  ;;  %v4615_v59 = vsel %vm4556_vm10, %v11787_v37, %v11785_v50 }
 0x3dc   : > { %v3396_v54 = vrot.slane %v3382_v0, %v11291_v14  ;;  %v8545_v9 = vrot.slane %v3380_v31, 9  ;;  %v8547_v12 = vrot.slane %v3381_v25, 9  ;;  %v11917_v26 = vmax.f32 %v3372_v60, %v8544_v51 }
 0x3dd   : > { %v11919_v49 = vmax.f32 %v3379_v38, %v8546_v56  ;;  %v3397_v34 = vcombine.high %v3389_v10, %v3389_v10  ;;  %v8548_v11 = vrot.slane %v3389_v10, 9  ;;  %v4617_v47 = vsel %vm4559_vm11, %v4616_v41, %v4615_v59  ;;  %v12731_v41 = vld [vmem:[#allocation26_spill] sm:$0xff] }
 0x3de   : > { %v3398_v20 = vcombine.high %v3396_v54, %v3396_v54  ;;  %v8550_v53 = vrot.slane %v3396_v54, 9  ;;  %v11921_v22 = vmax.f32 %v3380_v31, %v8545_v9  ;;  %v11923_v3 = vmax.f32 %v3381_v25, %v8547_v12 }
 0x3df   : > { %v4618_v27 = vrot.slane %v4518_v61, 1  ;;  %v8549_v46 = vrot.slane %v3397_v34, 9  ;;  %v4100_v50 = vmax.f32 %v3389_v10, %v8548_v11  ;;  %v9120_v39 = vadd.f32 %v11749_v18, %v11739_v55  ;;  %v9453_v18 = vld [vmem:[%s12629_s6 + $0xc8] sm:$0xff]  }
 0x3e0   : > { %v8551_v16 = vrot.slane %v3398_v20, 9  ;;  %v4102_v37 = vmax.f32 %v3396_v54, %v8550_v53  ;;  %v4783_v44 = vshrl.u32 %v11860_v36, 16  ;;  %v4785_v63 = vshll.u32 %v11860_v36, 16  ;;  %9193 = vmatprep.subr.bf16.mxu1 %v9453_v18 }
 0x3e1   : > { %v4619_v35 = vsel %vm4562_vm12, %v4618_v27, %v4617_v47  ;;  %v4101_v60 = vmax.f32 %v3397_v34, %v8549_v46  ;;  %v4172_v0 = vmax.f32 %v4092_v15, %v4100_v50  ;;  %v2889_v51 = vadd.f32 %v12731_v41, %v9120_v39  ;;  %v9454_v15 = vld [vmem:[%s12629_s6 + $0x88] sm:$0xff]  }
 0x3e2   : > { %v4103_v38 = vmax.f32 %v3398_v20, %v8551_v16  ;;  %v4174_v31 = vmax.f32 %v4094_v2, %v4102_v37  ;;  %v4666_v25 = vpack.c.b16 %v4619_v35, %v4619_v35  ;;  %v4787_v56 = vrot.slane %v4785_v63, 1  ;;  %9194 = vmatpush3.bf16.msra.mxu1 %v9454_v15 }
 0x3e3   : > { %v9123_v10 = vadd.f32 %v11762_v58, %v11760_v48  ;;  %v4173_v54 = vmax.f32 %v4093_v7, %v4101_v60  ;;  %v4271_v59 = vadd.f32 %v11294_v32, %v4172_v0  ;;  %v3399_v12 = vcombine.high %v2889_v51, %v2889_v51 }
 0x3e4   : > { %v4175_v61 = vmax.f32 %v4095_v13, %v4103_v38  ;;  %v4273_v55 = vadd.f32 %v11305_v1, %v4174_v31  ;;  %v4699_v2 = vshrl.u32 %v4666_v25, 16  ;;  %v4702_v9 = vshll.u32 %v4666_v25, 16 }
 0x3e5   : > { %v3406_v34 = vrot.slane %v2889_v51, %v11291_v14  ;;  %v4272_v48 = vadd.f32 %v11317_v8, %v4173_v54  ;;  %v4335_v7 = vmax.f32 %v4271_v59, 0.0  ;;  %v3413_v11 = vrot.slane %v3399_v12, %v11291_v14 }
 0x3e6   : > { %v4274_v58 = vadd.f32 %v11320_v6, %v4175_v61  ;;  %v4337_v13 = vmax.f32 %v4273_v55, 0.0  ;;  %v4701_v20 = vrot.slane %v4699_v2, 7 }
 0x3e7   : > { %v3414_v53 = vcombine.high %v3406_v34, %v3406_v34  ;;  %v8552_v47 = vrot.slane %v3406_v34, 9  ;;  %v4336_v27 = vmax.f32 %v4272_v48, 0.0  ;;  %v4399_v16 = vpack.c.bf16 %v4335_v7, %v4335_v7 }
 0x3e8   : > { %v4338_v46 = vmax.f32 %v4274_v58, 0.0  ;;  %v4401_v50 = vpack.c.bf16 %v4337_v13, %v4337_v13  ;;  %v4704_v37 = vor.u32 %v4702_v9, %v4701_v20  ;;  %v3415_v35 = vcombine.high %v3413_v11, %v3413_v11 }
 0x3e9   : > { %v8553_v39 = vrot.slane %v3414_v53, 9  ;;  %v8554_v63 = vrot.slane %v3413_v11, 9  ;;  %v4400_v60 = vpack.c.bf16 %v4336_v27, %v4336_v27  ;;  %v4527_v0 = vunpack.c.l.b16 %v4399_v16  ;;  %v12732_v27 = vld [vmem:[#allocation18_spill] sm:$0xff] }
 0x3ea   : > { %v4402_v38 = vpack.c.bf16 %v4338_v46, %v4338_v46  ;;  %v4529_v31 = vunpack.c.l.b16 %v4401_v50  ;;  %v4738_v25 = vsel %vm10449_vm15, 0, %v4704_v37  ;;  %v8555_v41 = vrot.slane %v3415_v35, 9 }
 0x3eb   : > { %v4104_v51 = vmax.f32 %v3406_v34, %v8552_v47  ;;  %v4105_v54 = vmax.f32 %v3414_v53, %v8553_v39  ;;  %v4528_v61 = vunpack.c.l.b16 %v4400_v60  ;;  %v11950_v18 = vsel %vm11312_vm5, %v4738_v25, 0 }
 0x3ec   : > { %v4530_v59 = vunpack.c.l.b16 %v4402_v38  ;;  %v4636_v55 = vrot.slane %v4529_v31, 6  ;;  %4851 = vrot.lane.b32.xlu0 %v11950_v18, %s12684_s26  ;;  %v4106_v15 = vmax.f32 %v3413_v11, %v8554_v63  ;;  %v4107_v2 = vmax.f32 %v3415_v35, %v8555_v41 }
 0x3ed   : > { %v4176_v9 = vmax.f32 %v11917_v26, %v4104_v51  ;;  %v4177_v12 = vmax.f32 %v11921_v22, %v4105_v54  ;;  %v4634_v48 = vrot.slane %v4528_v61, 7  ;;  %v11956_v34 = vor.u32 %v4787_v56, %v4783_v44  ;;  %v12733_v44 = vld [vmem:[#allocation21_spill] sm:$0xff] }
 0x3ee   : > { %v4638_v58 = vrot.slane %v4530_v59, 5  ;;  %v9126_v7 = vadd.f32 %v11775_v30, %v11769_v19  ;;  %v4178_v13 = vmax.f32 %v11919_v49, %v4106_v15  ;;  %v4179_v20 = vmax.f32 %v11923_v3, %v4107_v2 }
 0x3ef   : > { %v4275_v53 = vadd.f32 %v11299_v29, %v4176_v9  ;;  %v4276_v11 = vadd.f32 %v11323_v24, %v4177_v12  ;;  %v4635_v47 = vsel %vm4544_vm6, %v4634_v48, %v4527_v0  ;;  %v2894_v26 = vadd.f32 %v9123_v10, %v11508_v62 }
 0x3f0   : > { %v2897_v22 = vadd.f32 %v9126_v7, %v11523_v28  ;;  %v9129_v56 = vadd.f32 %v12733_v44, %v12732_v27  ;;  %v4637_v46 = vsel %vm4547_vm7, %v4636_v55, %v4635_v47  ;;  %v4277_v19 = vadd.f32 %v11309_v40, %v4178_v13  ;;  %4818 = vrot.lane.b32.xlu0 %v11956_v34, %s12684_s26  ;;  %v12736_v27 = vld [vmem:[#allocation32_spill] sm:$0xff] }
 0x3f1   : > { %v4278_v30 = vadd.f32 %v11332_v23, %v4179_v20  ;;  %v4339_v49 = vmax.f32 %v4275_v53, 0.0  ;;  %v4340_v3 = vmax.f32 %v4276_v11, 0.0  ;;  %v4639_v16 = vsel %vm4550_vm8, %v4638_v58, %v4637_v46  ;;  %v12734_v20 = vld [vmem:[#allocation29_spill] sm:$0xff] }
 0x3f2   : > { %v3416_v50 = vcombine.high %v2894_v26, %v2894_v26  ;;  %v3423_v62 = vrot.slane %v2894_v26, %v11291_v14  ;;  %v4341_v28 = vmax.f32 %v4277_v19, 0.0  ;;  %v3433_v35 = vcombine.high %v2897_v22, %v2897_v22 }
 0x3f3   : > { %v4342_v10 = vmax.f32 %v4278_v30, 0.0  ;;  %v4403_v37 = vpack.c.bf16 %v4339_v49, %v4339_v49  ;;  %v4404_v39 = vpack.c.bf16 %v4340_v3, %v4340_v3  ;;  %v11980_v0 = vpack.c.bf16 %v4334_v57, %v4334_v57  ;;  %v12737_v49 = vld [vmem:[#allocation28_spill] sm:$0xff] }
 0x3f4   : > { %v3430_v63 = vrot.slane %v3416_v50, %v11291_v14  ;;  %v3431_v60 = vcombine.high %v3423_v62, %v3423_v62  ;;  %v8556_v38 = vrot.slane %v3423_v62, 9  ;;  %v11982_v31 = vpack.c.bf16 %v4341_v28, %v4341_v28  ;;  %v12738_v28 = vld [vmem:[#allocation30_spill] sm:$0xff] }
 0x3f5   : > { %v4531_v25 = vunpack.c.l.b16 %v4403_v37  ;;  %v3440_v41 = vrot.slane %v2897_v22, %v11291_v14  ;;  %v4628_v51 = vrot.slane %v4524_v5, 3  ;;  %v4532_v54 = vunpack.c.l.b16 %v4404_v39  ;;  %v12735_v22 = vld [vmem:[#allocation23_spill] sm:$0xff] }
 0x3f6   : > { %v3432_v61 = vcombine.high %v3430_v63, %v3430_v63  ;;  %v8557_v59 = vrot.slane %v3431_v60, 9  ;;  %v4630_v55 = vrot.slane %v4525_v52, 2  ;;  %v8558_v2 = vrot.slane %v3430_v63, 9 }
 0x3f7   : > { %v4640_v15 = vrot.slane %v4531_v25, 4  ;;  %v3447_v17 = vrot.slane %v3433_v35, %v11291_v14  ;;  %v11990_v57 = vpack.c.bf16 %v4342_v10, %v4342_v10  ;;  %v4533_v9 = vunpack.c.l.b16 %v11982_v31 }
 0x3f8   : > { %v8559_v12 = vrot.slane %v3432_v61, 9  ;;  %v4108_v48 = vmax.f32 %v3423_v62, %v8556_v38  ;;  %v11996_v43 = vrot.slane %v4532_v54, 3  ;;  %v3448_v5 = vcombine.high %v3440_v41, %v3440_v41 }
 0x3f9   : > { %v11994_v58 = vsel %vm4553_vm9, %v4640_v15, %v4639_v16  ;;  %v3449_v7 = vcombine.high %v3447_v17, %v3447_v17  ;;  %v4109_v13 = vmax.f32 %v3431_v60, %v8557_v59  ;;  %v8560_v45 = vrot.slane %v3440_v41, 9 }
 0x3fa   : > { %v8562_v52 = vrot.slane %v3447_v17, 9  ;;  %v2902_v53 = vadd.f32 %v12734_v20, %v9129_v56  ;;  %v4110_v11 = vmax.f32 %v3430_v63, %v8558_v2  ;;  %v8561_v47 = vrot.slane %v3448_v5, 9 }
 0x3fb   : > { %v8563_v26 = vrot.slane %v3449_v7, 9  ;;  %v9132_v44 = vadd.f32 %v12736_v27, %v12735_v22  ;;  %v4111_v46 = vmax.f32 %v3432_v61, %v8559_v12  ;;  %v4834_v3 = vrot.slane %v12737_v49, 1 }
 0x3fc   : > { %v3450_v19 = vcombine.high %v2902_v53, %v2902_v53  ;;  %v3457_v30 = vrot.slane %v2902_v53, %v11291_v14  ;;  %v4112_v16 = vmax.f32 %v3440_v41, %v8560_v45  ;;  %v4113_v50 = vmax.f32 %v3448_v5, %v8561_v47 }
 0x3fd   : > { %v4114_v62 = vmax.f32 %v3447_v17, %v8562_v52  ;;  %v2905_v10 = vadd.f32 %v12738_v28, %v9132_v44  ;;  %v4115_v37 = vmax.f32 %v3449_v7, %v8563_v26  ;;  %v4526_v38 = vunpack.c.l.b16 %v11980_v0 }
 0x3fe   : > { %v3464_v56 = vrot.slane %v3450_v19, %v11291_v14  ;;  %v3465_v35 = vcombine.high %v3457_v30, %v3457_v30  ;;  %v8564_v39 = vrot.slane %v3457_v30, 9  ;;  %v4629_v25 = vsel %vm4556_vm10, %v4628_v51, %v11906_v42 }
 0x3ff   : > { %v3467_v63 = vcombine.high %v2905_v10, %v2905_v10  ;;  %v3474_v60 = vrot.slane %v2905_v10, %v11291_v14  ;;  %v4631_v12 = vsel %vm4559_vm11, %v4630_v55, %v4629_v25  ;;  %v4534_v31 = vunpack.c.l.b16 %v11990_v57 }
 0x400   : > { %v3466_v54 = vcombine.high %v3464_v56, %v3464_v56  ;;  %v8565_v61 = vrot.slane %v3465_v35, 9  ;;  %v8566_v41 = vrot.slane %v3464_v56, 9  ;;  %v4116_v59 = vmax.f32 %v3457_v30, %v8564_v39 }
 0x401   : > { %v3481_v15 = vrot.slane %v3467_v63, %v11291_v14  ;;  %v3482_v2 = vcombine.high %v3474_v60, %v3474_v60  ;;  %v8568_v17 = vrot.slane %v3474_v60, 9 }
 0x402   : > { %v8567_v5 = vrot.slane %v3466_v54, 9  ;;  %v4117_v7 = vmax.f32 %v3465_v35, %v8565_v61  ;;  %v4118_v45 = vmax.f32 %v3464_v56, %v8566_v41  ;;  %v4180_v52 = vmax.f32 %v4108_v48, %v4116_v59 }
 0x403   : > { %v3483_v20 = vcombine.high %v3481_v15, %v3481_v15  ;;  %v8569_v53 = vrot.slane %v3482_v2, 9  ;;  %v8570_v0 = vrot.slane %v3481_v15, 9  ;;  %v4120_v47 = vmax.f32 %v3474_v60, %v8568_v17 }
 0x404   : > { %v4119_v26 = vmax.f32 %v3466_v54, %v8567_v5  ;;  %v4181_v42 = vmax.f32 %v4109_v13, %v4117_v7  ;;  %v4182_v51 = vmax.f32 %v4110_v11, %v4118_v45  ;;  %v4279_v22 = vadd.f32 %v11294_v32, %v4180_v52  ;;  %v4844_v5 = vpop.permute.xlu0 %4843 }
 0x405   : > { %v8571_v27 = vrot.slane %v3483_v20, 9  ;;  %v4121_v44 = vmax.f32 %v3482_v2, %v8569_v53  ;;  %v4122_v19 = vmax.f32 %v3481_v15, %v8570_v0  ;;  %v4184_v30 = vmax.f32 %v4112_v16, %v4120_v47  ;;  %v4846_v15 = vpop.permute.xlu1 %4845  ;;  %v9456_v47 = vld [vmem:[%s12629_s6 + $0x90] sm:$0xff]  }
 0x406   : > { %v4183_v28 = vmax.f32 %v4111_v46, %v4119_v26  ;;  %v4280_v55 = vadd.f32 %v11317_v8, %v4181_v42  ;;  %v4281_v10 = vadd.f32 %v11305_v1, %v4182_v51  ;;  %v4343_v56 = vmax.f32 %v4279_v22, 0.0 }
 0x407   : > { %v4123_v48 = vmax.f32 %v3483_v20, %v8571_v27  ;;  %v4185_v35 = vmax.f32 %v4113_v50, %v4121_v44  ;;  %v4186_v39 = vmax.f32 %v4114_v62, %v4122_v19  ;;  %v4283_v63 = vadd.f32 %v11299_v29, %v4184_v30 }
 0x408   : > { %v4282_v13 = vadd.f32 %v11320_v6, %v4183_v28  ;;  %v4344_v11 = vmax.f32 %v4280_v55, 0.0  ;;  %v4345_v60 = vmax.f32 %v4281_v10, 0.0  ;;  %v4407_v32 = vpack.c.bf16 %v4343_v56, %v4343_v56 }
 0x409   : > { %v4187_v25 = vmax.f32 %v4115_v37, %v4123_v48  ;;  %v4284_v54 = vadd.f32 %v11323_v24, %v4185_v35  ;;  %v4285_v46 = vadd.f32 %v11309_v40, %v4186_v39  ;;  %v4347_v16 = vmax.f32 %v4283_v63, 0.0  ;;  %v4811_v35 = vpop.permute.xlu0 %4810 }
 0x40a   : > { %v4346_v8 = vmax.f32 %v4282_v13, 0.0  ;;  %v4408_v61 = vpack.c.bf16 %v4344_v11, %v4344_v11  ;;  %v4409_v1 = vpack.c.bf16 %v4345_v60, %v4345_v60  ;;  %v4535_v41 = vunpack.c.l.b16 %v4407_v32  ;;  %v12739_v11 = vld [vmem:[#allocation15_spill] sm:$0xff] }
 0x40b   : > { %v4286_v50 = vadd.f32 %v11332_v23, %v4187_v25  ;;  %v4348_v62 = vmax.f32 %v4284_v54, 0.0  ;;  %v4349_v59 = vmax.f32 %v4285_v46, 0.0  ;;  %v4411_v29 = vpack.c.bf16 %v4347_v16, %v4347_v16  ;;  %v9455_v23 = vld [vmem:[%s12629_s6 + $0xd0] sm:$0xff]   ;;  %v9457_v46 = vld [vmem:[%s12629_s6 + $0x100] sm:$0xff]   ;;  %v9458_v16 = vld [vmem:[%s12629_s6 + $0xd8] sm:$0xff]  }
 0x40c   : > { %v4410_v6 = vpack.c.bf16 %v4346_v8, %v4346_v8  ;;  %v4536_v2 = vunpack.c.l.b16 %v4408_v61  ;;  %v4537_v17 = vunpack.c.l.b16 %v4409_v1  ;;  %v4632_v37 = vrot.slane %v4526_v38, 1  ;;  %9195 = vmatprep.subr.bf16.mxu1 %v9455_v23  ;;  %v12740_v1 = vld [vmem:[#allocation16_spill] sm:$0xff]  ;;  %9333 = vmatprep.subr.bf16.mxu0 %v9457_v46 }
 0x40d   : > { %v4350_v7 = vmax.f32 %v4286_v50, 0.0  ;;  %v4412_v24 = vpack.c.bf16 %v4348_v62, %v4348_v62  ;;  %v4413_v45 = vpack.c.bf16 %v4349_v59, %v4349_v59  ;;  %v4539_v40 = vunpack.c.l.b16 %v4411_v29  ;;  %9196 = vmatpush3.bf16.msra.mxu1 %v9456_v47 }
 0x40e   : > { %v4538_v52 = vunpack.c.l.b16 %v4410_v6  ;;  %v4648_v20 = vrot.slane %v4536_v2, 7  ;;  %v4650_v53 = vrot.slane %v4537_v17, 6  ;;  %v4633_v0 = vsel %vm4562_vm12, %v4632_v37, %v4631_v12  ;;  %v12741_v17 = vld [vmem:[#allocation31_spill] sm:$0xff]  ;;  %9197 = vmatprep.subr.bf16.mxu1 %v9458_v16 }
 0x40f   : > { %v4644_v38 = vrot.slane %v4533_v9, 2  ;;  %v4540_v26 = vunpack.c.l.b16 %v4412_v24  ;;  %v4541_v42 = vunpack.c.l.b16 %v4413_v45  ;;  %v4903_v51 = vsel %vm2184_vm2, %v4834_v3, %v4844_v5  ;;  %v4813_v9 = vpop.permute.xlu1 %4812  ;;  %v9469_v16 = vld [vmem:[%s12629_s6 + $0xf8] sm:$0xff]  }
 0x410   : > { %v4649_v22 = vsel %vm4544_vm6, %v4648_v20, %v4535_v41  ;;  %v4652_v12 = vrot.slane %v4538_v52, 5  ;;  %v4414_v27 = vpack.c.bf16 %v4350_v7, %v4350_v7  ;;  %v4667_v44 = vpack.c.b16 %v4633_v0, %v4633_v0 }
 0x411   : > { %v4651_v19 = vsel %vm4547_vm7, %v4650_v53, %v4649_v22  ;;  %v4654_v30 = vrot.slane %v4539_v40, 4  ;;  %v4792_v28 = vshll.u32 %v11950_v18, 16  ;;  %v4656_v10 = vrot.slane %v4540_v26, 3  ;;  %v9461_v26 = vld [vmem:[%s12629_s6 + $0xe0] sm:$0xff]  }
 0x412   : > { %v4653_v55 = vsel %vm4550_vm8, %v4652_v12, %v4651_v19  ;;  %v4658_v56 = vrot.slane %v4541_v42, 2  ;;  %v4706_v48 = vshrl.u32 %v4667_v44, 16  ;;  %v4643_v63 = vsel %vm4556_vm10, %v11996_v43, %v11994_v58  ;;  %v9459_v58 = vld [vmem:[%s12629_s6 + $0x98] sm:$0xff]  }
 0x413   : > { %v4655_v39 = vsel %vm4553_vm9, %v4654_v30, %v4653_v55  ;;  %v4646_v13 = vrot.slane %v4534_v31, 1  ;;  %v4835_v60 = vrot.slane %v12739_v11, 1  ;;  %v4709_v25 = vshll.u32 %v4667_v44, 16  ;;  %9198 = vmatpush3.bf16.msra.mxu1 %v9459_v58  ;;  %v9462_v30 = vld [vmem:[%s12629_s6 + $0xa0] sm:$0xff]   ;;  %v9464_v31 = vld [vmem:[%s12629_s6 + $0xe8] sm:$0xff]  }
 0x414   : > { %v4708_v32 = vrot.slane %v4706_v48, 7  ;;  %v4645_v57 = vsel %vm4559_vm11, %v4644_v38, %v4643_v63  ;;  %v4888_v54 = vsel %vm2184_vm2, %v12739_v11, %v4813_v9  ;;  %v12059_v61 = vsel %vm2184_vm2, %v12737_v49, %v4811_v35  ;;  %9199 = vmatprep.subr.bf16.mxu1 %v9461_v26  ;;  %v9466_v63 = vld [vmem:[%s12629_s6 + $0xf0] sm:$0xff]   ;;  %v9470_v11 = vld [vmem:[%s12629_s6 + $0xb8] sm:$0xff]  }
 0x415   : > { %v4647_v43 = vsel %vm4562_vm12, %v4646_v13, %v4645_v57  ;;  %v4906_v8 = vsel %vm2184_vm2, %v4835_v60, %v4846_v15  ;;  %v12062_v41 = vrot.slane %v12740_v1, 1  ;;  %v8573_v29 = vcombine.low %v12059_v61, %v4888_v54  ;;  %v9460_v15 = vld [vmem:[%s12629_s6 + $0x108] sm:$0xff]   ;;  %v9467_v57 = vld [vmem:[%s12629_s6 + $0xb0] sm:$0xff]  }
 0x416   : > { %v4711_v50 = vor.u32 %v4709_v25, %v4708_v32  ;;  %v4668_v62 = vpack.c.b16 %v4647_v43, %v4647_v43  ;;  %v8574_v59 = vcombine.low %v4903_v51, %v4906_v8  ;;  %v4542_v6 = vunpack.c.l.b16 %v4414_v27 }
 0x417   : > { %v4657_v2 = vsel %vm4556_vm10, %v4656_v10, %v4655_v39  ;;  %v12067_v5 = vrot.slane %v12741_v17, 1  ;;  %v4794_v7 = vrot.slane %v4792_v28, 1  ;;  %v4790_v53 = vshrl.u32 %v11950_v18, 16  ;;  %v9463_v28 = vld [vmem:[%s12629_s6 + $0x110] sm:$0xff]   ;;  %9200 = vmatpush3.bf16.msra.mxu1 %v9462_v30  ;;  %v9465_v39 = vld [vmem:[%s12629_s6 + $0xa8] sm:$0xff]  }
 0x418   : > { %v4739_v37 = vsel %vm10449_vm15, 0, %v4711_v50  ;;  %v4713_v24 = vshrl.u32 %v4668_v62, 16  ;;  %5371 = vmatprep.mubr.bf16.mxu0 %v8574_v59  ;;  %v4659_v45 = vsel %vm4559_vm11, %v4658_v56, %v4657_v2  ;;  %v4660_v52 = vrot.slane %v4542_v6, 1  ;;  %9201 = vmatprep.subr.bf16.mxu1 %v9464_v31 }
 0x419   : > { %v12077_v40 = vsel %vm11312_vm5, %v4739_v37, 0  ;;  %5372 = vmatmul.mubr.bf16.vlgmr.msra.gmra.mrb[64].mxu0 %v8573_v29  ;;  %v8577_v20 = vcombine.low %v12067_v5, %v12062_v41  ;;  %v4716_v23 = vshll.u32 %v4668_v62, 16  ;;  %v12089_v42 = vor.u32 %v4794_v7, %v4790_v53 }
 0x41a   : > { %4853 = vrot.lane.b32.xlu1 %v12077_v40, %s12684_s26  ;;  %v4715_v0 = vrot.slane %v4713_v24, 7  ;;  %v4799_v47 = vshll.u32 %v12077_v40, 16  ;;  %9334 = vmatpush3.bf16.msra.mxu0 %v9457_v46  ;;  %v4661_v38 = vsel %vm4562_vm12, %v4660_v52, %v4659_v45  ;;  %v4797_v9 = vshrl.u32 %v12077_v40, 16  ;;  %v9468_v46 = vld [vmem:[%s12629_s6 + $0x118] sm:$0xff]  }
 0x41b   : > { %9335 = vmatprep.subr.bf16.mxu0 %v9460_v15  ;;  %v4669_v22 = vpack.c.b16 %v4661_v38, %v4661_v38  ;;  %9202 = vmatpush3.bf16.msra.mxu1 %v9465_v39  ;;  %v10001_v43 = vmov 0.0   ;;  %v12160_v50 = vrot.slane %v11950_v18, 1  ;;  %v4838_v29 = vrot.slane %v11860_v36, 1 }
 0x41c   : > { %v4718_v51 = vor.u32 %v4716_v23, %v4715_v0  ;;  %v4801_v27 = vrot.slane %v4799_v47, 1  ;;  %9203 = vmatprep.subr.bf16.mxu1 %v9466_v63  ;;  %v4840_v49 = vrot.slane %v12077_v40, 1  ;;  %v12742_v63 = vld [vmem:[#allocation17_spill] sm:$0xff] }
 0x41d   : > { %v4720_v44 = vshrl.u32 %v4669_v22, 16  ;;  %v4723_v10 = vshll.u32 %v4669_v22, 16 }
 0x41e   : > { %4820 = vrot.lane.b32.xlu1 %v12089_v42, %s12684_s26  ;;  %v4740_v12 = vsel %vm10449_vm15, 0, %v4718_v51  ;;  %9336 = vmatpush3.bf16.msra.mxu0 %v9460_v15  ;;  %v12112_v48 = vor.u32 %v4801_v27, %v4797_v9 }
 0x41f   : > { %v12097_v19 = vsel %vm11312_vm5, %v4740_v12, 0  ;;  %v4722_v55 = vrot.slane %v4720_v44, 7  ;;  %9337 = vmatprep.subr.bf16.mxu0 %v9463_v28  ;;  %9204 = vmatpush3.bf16.msra.mxu1 %v9467_v57 }
 0x420   : > { %4855 = vrot.lane.b32.xlu0 %v12097_v19, %s12684_s26  ;;  %v4806_v56 = vshll.u32 %v12097_v19, 16  ;;  %v4804_v54 = vshrl.u32 %v12097_v19, 16  ;;  %9205 = vmatprep.subr.bf16.mxu1 %v9469_v16  ;;  %v4841_v6 = vrot.slane %v12097_v19, 1 }
 0x421   : > { %v4725_v35 = vor.u32 %v4723_v10, %v4722_v55 }
 0x422   : > { %9338 = vmatpush3.bf16.msra.mxu0 %v9463_v28  ;;  %v4808_v32 = vrot.slane %v4806_v56, 1 }
 0x423   : > { %v4741_v13 = vsel %vm10449_vm15, 0, %v4725_v35  ;;  %9339 = vmatprep.subr.bf16.mxu0 %v9468_v46  ;;  %9206 = vmatpush3.bf16.msra.mxu1 %v9470_v11  ;;  %vm12422_vm15 = vmpackc.low %vm1633_vm13, %vm1633_vm13  ;;  %vm8294_vm13 = vcmask 16384  }
 0x424   : > { %4822 = vrot.lane.b32.xlu0 %v12112_v48, %s12684_s26  ;;  %v12126_v25 = vsel %vm11312_vm5, %v4741_v13, 0  ;;  %v12137_v4 = vor.u32 %v4808_v32, %v4804_v54  ;;  %v12743_v32 = vld [vmem:[#allocation19_spill] sm:$0xff] }
 0x425   : > { %4857 = vrot.lane.b32.xlu1 %v12126_v25, %s12684_s26  ;;  %v4862_v21 = vshll.u32 %v12126_v25, 16  ;;  %v4866_v58 = vrot.slane %v12126_v25, 1  ;;  %v4860_v62 = vshrl.u32 %v12126_v25, 16 }
 0x426   : > { %9340 = vmatpush3.bf16.msra.mxu0 %v9468_v46  ;;  %v8581_v46 = vcombine.low %v4838_v29, %v12160_v50 }
 0x427   : > { %9349 = vmatprep.subr.bf16.mxu0 %v10001_v43  ;;  %v12157_v8 = vcombine.low %v4866_v58, %v4834_v3  ;;  %v4848_v3 = vpop.permute.xlu0 %4847 }
 0x428   : > { %4867 = vrot.lane.b32.xlu0 %v4835_v60, %s12684_s26  ;;  %v4864_v60 = vrot.slane %v4862_v21, 1  ;;  %v4909_v15 = vsel %vm2184_vm2, %v12067_v5, %v4848_v3 }
 0x429   : > { %4824 = vrot.lane.b32.xlu1 %v12137_v4, %s12684_s26 }
 0x42a   : > { %v12167_v59 = vor.u32 %v4864_v60, %v4860_v62 }
 0x42b   : > { %v4815_v7 = vpop.permute.xlu0 %4814 }
 0x42c   : > { %4871 = vrot.lane.b32.xlu0 %v12062_v41, %s12684_s26  ;;  %v4890_v52 = vsel %vm2184_vm2, %v12741_v17, %v4815_v7  ;;  %v9477_v7 = vld [vmem:[#allocation2 + $0x14] ss:$8 sps:$4 sm:$0xff]  }
 0x42d   : > { %4869 = vrot.lane.b32.xlu1 %v12067_v5, %s12684_s26 }
 0x430   : > { %4875 = vrot.lane.b32.xlu0 %v12160_v50, %s12684_s26 }
 0x431   : > { %4873 = vrot.lane.b32.xlu1 %v4838_v29, %s12684_s26 }
 0x434   : > { %4883 = vrot.lane.b32.xlu0 %v12167_v59, %s12684_s26 }
 0x435   : > { %4877 = vrot.lane.b32.xlu1 %v4840_v49, %s12684_s26 }
 0x438   : > { %4881 = vrot.lane.b32.xlu0 %v4866_v58, %s12684_s26 }
 0x439   : > { %4879 = vrot.lane.b32.xlu1 %v4841_v6, %s12684_s26  ;;  %s9930_s26 = scalar_lea.vmem %s9929_s27, 32 }
 0x43a   : > { %v4850_v2 = vpop.permute.xlu1 %4849  ;;  %p9932_p3 = scmp.lt.s32.totalorder %s9930_s26, %s9924_s22 }
 0x43b   : > { %v4912_v37 = vsel %vm2184_vm2, %v12062_v41, %v4850_v2  ;;  %v8585_v41 = vcombine.low %v4840_v49, %v4841_v6 }
 0x43c   : > { %v8578_v24 = vcombine.low %v4909_v15, %v4912_v37  ;;  %v9472_v15 = vld [vmem:[#allocation2] ss:$8 sps:$4 sm:$0xff]   ;;  %v9474_v37 = vld [vmem:[#allocation2 + $0x4] ss:$8 sps:$4 sm:$0xff]   ;;  %p9933_p4 = por %p9932_p3, %p9931_p2 }
 0x43e   : > { %v4817_v45 = vpop.permute.xlu1 %4816  ;;  %5379 = vmatprep.mubr.bf16.mxu0 %v8578_v24  ;;  %p9934_p7 = pnand %p9933_p4, %p9927_p12 }
 0x43f   : > { %v4892_v53 = vsel %vm2184_vm2, %v12740_v1, %v4817_v45 }
 0x440   : > { %v8576_v0 = vcombine.low %v4890_v52, %v4892_v53  ;;  %v9475_v53 = vld [vmem:[#allocation2 + $0x10] ss:$8 sps:$4 sm:$0xff]  }
 0x442   : > { %5380 = vmatmul.mubr.bf16.gmra.mrb[68].mxu0 %v8576_v0  ;;  %5436 = vmatprep.mubr.bf16.mxu1 %v8576_v0  ;;  %v9480_v0 = vld [vmem:[#allocation2 + $0x24] ss:$8 sps:$4 sm:$0xff]  }
 0x45e   : > { %v4852_v23 = vpop.permute.xlu0 %4851 }
 0x45f   : > { %v4915_v38 = vsel %vm2184_vm2, %v4838_v29, %v4852_v23  ;;  %v5906_v29 = vld [vmem:[%s520_s23] sm:$0x1] }
 0x460   : > { %v5907_v2 = vpack.c.bf16 %v5906_v29, %v5906_v29  ;;  %v9534_v29 = vld [vmem:[#allocation2 + $0xd4] ss:$8 sps:$4 sm:$0xff]  }
 0x462   : > { %v4819_v51 = vpop.permute.xlu0 %4818 }
 0x463   : > { %v4894_v17 = vsel %vm2184_vm2, %v11860_v36, %v4819_v51  ;;  %v9499_v51 = vld [vmem:[%s12634_s11 + $0x10] ss:$8 sps:$4 sm:$0xff]  }
 0x48c   : > { %v4854_v47 = vpop.permute.xlu1 %4853 }
 0x48d   : > { %v4918_v26 = vsel %vm2184_vm2, %v12160_v50, %v4854_v47  ;;  %v9495_v47 = vld [vmem:[%s12634_s11 + $0x4] ss:$8 sps:$4 sm:$0xff]  }
 0x48e   : > { %v8582_v22 = vcombine.low %v4915_v38, %v4918_v26  ;;  %v9478_v38 = vld [vmem:[#allocation2 + $0x20] ss:$8 sps:$4 sm:$0xff]   ;;  %v9483_v26 = vld [vmem:[#allocation2 + $0x34] ss:$8 sps:$4 sm:$0xff]   ;;  %6458 = vmatprep.subr.bf16.mxu1 %v9495_v47 }
 0x490   : > { %v4821_v12 = vpop.permute.xlu1 %4820  ;;  %5387 = vmatprep.mubr.bf16.mxu0 %v8582_v22  ;;  %v9481_v22 = vld [vmem:[#allocation2 + $0x30] ss:$8 sps:$4 sm:$0xff]  }
 0x491   : > { %v4896_v1 = vsel %vm2184_vm2, %v11950_v18, %v4821_v12  ;;  %v9501_v12 = vld [vmem:[%s12634_s11 + $0x14] ss:$8 sps:$4 sm:$0xff]  }
 0x492   : > { %v8580_v27 = vcombine.low %v4894_v17, %v4896_v1  ;;  %v4856_v44 = vpop.permute.xlu0 %4855  ;;  %v9486_v17 = vld [vmem:[#allocation2 + $0x44] ss:$8 sps:$4 sm:$0xff]   ;;  %v9505_v1 = vld [vmem:[%s12634_s11 + $0x20] ss:$8 sps:$4 sm:$0xff]  }
 0x493   : > { %v4921_v31 = vsel %vm2184_vm2, %v4840_v49, %v4856_v44  ;;  %v9507_v44 = vld [vmem:[%s12634_s11 + $0x24] ss:$8 sps:$4 sm:$0xff]  }
 0x494   : > { %5388 = vmatmul.mubr.bf16.gmra.mrb[72].mxu0 %v8580_v27 }
 0x496   : > { %v4823_v30 = vpop.permute.xlu0 %4822 }
 0x497   : > { %v4858_v28 = vpop.permute.xlu1 %4857  ;;  %v4898_v56 = vsel %vm2184_vm2, %v12077_v40, %v4823_v30  ;;  %v9471_v40 = vld [vmem:[%s12631_s8] sm:$0x1f]   ;;  %v9489_v30 = vld [vmem:[#allocation2 + $0x54] ss:$8 sps:$4 sm:$0xff]  }
 0x498   : > { %v4924_v9 = vsel %vm2184_vm2, %v4841_v6, %v4858_v28  ;;  %v5921_v16 = vsel %vm1265_vm1, %v9471_v40, 0  ;;  %vm10002_vm1 = vmmov 0   ;;  %v9487_v28 = vld [vmem:[#allocation2 + $0x50] ss:$8 sps:$4 sm:$0xff]  }
 0x499   : > { %v8586_v55 = vcombine.low %v4921_v31, %v4924_v9  ;;  %v9492_v31 = vld [vmem:[#allocation2 + $0x64] ss:$8 sps:$4 sm:$0xff]   ;;  %v9490_v9 = vld [vmem:[#allocation2 + $0x60] ss:$8 sps:$4 sm:$0xff]  }
 0x49a   : > { %v4868_v35 = vpop.permute.xlu0 %4867 }
 0x49b   : > { %v4825_v10 = vpop.permute.xlu1 %4824  ;;  %5395 = vmatprep.mubr.bf16.mxu0 %v8586_v55  ;;  %v4927_v13 = vsel %vm2184_vm2, %v12742_v63, %v4868_v35  ;;  %v9498_v55 = vld [vmem:[#allocation2 + $0x74] ss:$8 sps:$4 sm:$0xff]   ;;  %v9511_v35 = vld [vmem:[%s12634_s11 + $0x30] ss:$8 sps:$4 sm:$0xff]  }
 0x49c   : > { %v4900_v36 = vsel %vm2184_vm2, %v12097_v19, %v4825_v10  ;;  %v9496_v10 = vld [vmem:[#allocation2 + $0x70] ss:$8 sps:$4 sm:$0xff]  }
 0x49d   : > { %v8584_v18 = vcombine.low %v4898_v56, %v4900_v36  ;;  %v9504_v56 = vld [vmem:[#allocation2 + $0x84] ss:$8 sps:$4 sm:$0xff]   ;;  %v9513_v36 = vld [vmem:[%s12634_s11 + $0x34] ss:$8 sps:$4 sm:$0xff]   ;;  %v9508_v63 = vld [vmem:[#allocation2 + $0x90] ss:$8 sps:$4 sm:$0xff]  }
 0x49e   : > { %v4872_v19 = vpop.permute.xlu0 %4871 }
 0x49f   : > { %v4870_v39 = vpop.permute.xlu1 %4869  ;;  %5396 = vmatmul.mubr.bf16.gmra.mrb[76].mxu0 %v8584_v18  ;;  %v4933_v5 = vsel %vm2184_vm2, %v11845_v33, %v4872_v19 }
 0x4a0   : > { %v4930_v57 = vsel %vm2184_vm2, %v12743_v32, %v4870_v39  ;;  %9341 = vmatprep.mubr.msk.bf16.mxu0 %vm2184_vm2, %v8577_v20  ;;  %v9510_v39 = vld [vmem:[#allocation2 + $0x94] ss:$8 sps:$4 sm:$0xff]   ;;  %v9514_v32 = vld [vmem:[#allocation2 + $0xa0] ss:$8 sps:$4 sm:$0xff]  }
 0x4a1   : > { %v8575_v54 = vcombine.low %v4927_v13, %v4930_v57  ;;  %v9516_v13 = vld [vmem:[#allocation2 + $0xa4] ss:$8 sps:$4 sm:$0xff]   ;;  %v9517_v57 = vld [vmem:[%s12634_s11 + $0x40] ss:$8 sps:$4 sm:$0xff]  }
 0x4a2   : > { %v4876_v20 = vpop.permute.xlu0 %4875 }
 0x4a3   : > { %v4874_v21 = vpop.permute.xlu1 %4873  ;;  %5437 = vmatmul.mubr.bf16.vlgmr.msra.gmra.mrb[64].mxu1 %v8575_v54  ;;  %v4939_v33 = vsel %vm2184_vm2, %v12089_v42, %v4876_v20  ;;  %v9519_v54 = vld [vmem:[%s12634_s11 + $0x44] ss:$8 sps:$4 sm:$0xff]   ;;  %v9523_v20 = vld [vmem:[%s12634_s11 + $0x50] ss:$8 sps:$4 sm:$0xff]  }
 0x4a4   : > { %5444 = vmatprep.mubr.bf16.mxu1 %v8580_v27  ;;  %v4936_v58 = vsel %vm2184_vm2, %v11956_v34, %v4874_v21  ;;  %v9484_v27 = vld [vmem:[#allocation2 + $0x40] ss:$8 sps:$4 sm:$0xff]  }
 0x4a5   : > { %v8579_v11 = vcombine.low %v4933_v5, %v4936_v58  ;;  %v9522_v5 = vld [vmem:[#allocation2 + $0xb4] ss:$8 sps:$4 sm:$0xff]  }
 0x4a6   : > { %v4884_v62 = vpop.permute.xlu0 %4883 }
 0x4a7   : > { %9342 = vmatmul.mubr.msk.bf16.vlgmr.msra.gmra.mrb[80].mxu0 %vm2184_vm2, %v8581_v46  ;;  %v4878_v60 = vpop.permute.xlu1 %4877  ;;  %v4950_v50 = vsel %vm2184_vm2, %v12126_v25, %v4884_v62  ;;  %v9531_v62 = vld [vmem:[%s12634_s11 + $0x64] ss:$8 sps:$4 sm:$0xff]  }
 0x4a8   : > { %9350 = vmatpush3.bf16.msra.mxu0 %v5921_v16  ;;  %9345 = vmatprep.mubr.msk.bf16.mxu0 %vm2184_vm2, %v8585_v41  ;;  %v4942_v34 = vsel %vm2184_vm2, %v12112_v48, %v4878_v60  ;;  %v8588_v3 = vcombine.low %v4950_v50, %v12059_v61  ;;  %v9520_v41 = vld [vmem:[#allocation2 + $0xb0] ss:$8 sps:$4 sm:$0xff]   ;;  %v9528_v60 = vld [vmem:[#allocation2 + $0xc4] ss:$8 sps:$4 sm:$0xff]   ;;  %v9529_v50 = vld [vmem:[%s12634_s11 + $0x60] ss:$8 sps:$4 sm:$0xff]  }
 0x4a9   : > { %v8583_v49 = vcombine.low %v4939_v33, %v4942_v34  ;;  %7779 = vmatprep.subr.bf16.mxu0 %v9474_v37  ;;  %v9526_v34 = vld [vmem:[#allocation2 + $0xc0] ss:$8 sps:$4 sm:$0xff]   ;;  %v9532_v33 = vld [vmem:[#allocation2 + $0xd0] ss:$8 sps:$4 sm:$0xff]  }
 0x4aa   : > { %v4882_v48 = vpop.permute.xlu0 %4881 }
 0x4ab   : > { %5445 = vmatmul.mubr.bf16.gmra.mrb[68].mxu1 %v8579_v11  ;;  %v4880_v6 = vpop.permute.xlu1 %4879  ;;  %v4948_v42 = vsel %vm2184_vm2, %v12167_v59, %v4882_v48  ;;  %v9493_v59 = vld [vmem:[%s12634_s11] ss:$8 sps:$4 sm:$0xff]   ;;  %v9525_v11 = vld [vmem:[%s12634_s11 + $0x54] ss:$8 sps:$4 sm:$0xff]  }
 0x4ac   : > { %5452 = vmatprep.mubr.bf16.mxu1 %v8584_v18  ;;  %v4945_v25 = vsel %vm2184_vm2, %v12137_v4, %v4880_v6  ;;  %6459 = vmatpush1.bf16.msra.mxu1 %v9493_v59  ;;  %v9502_v18 = vld [vmem:[#allocation2 + $0x80] ss:$8 sps:$4 sm:$0xff]   ;;  %v9540_v6 = vld [vmem:[#allocation2 + $0xe4] ss:$8 sps:$4 sm:$0xff]  }
 0x4ad   : > { %6460 = vmatprep.subr.bf16.mxu1 %v9501_v12  ;;  %v9538_v48 = vld [vmem:[#allocation2 + $0xe0] ss:$8 sps:$4 sm:$0xff]  }
 0x4af   : > { %9346 = vmatmul.mubr.msk.bf16.gmra.mrb[84].mxu0 %vm2184_vm2, %v12157_v8  ;;  %v8587_v8 = vcombine.low %v4945_v25, %v4948_v42  ;;  %v9544_v25 = vld [vmem:[#allocation2 + $0xf0] ss:$8 sps:$4 sm:$0xff]   ;;  %v9546_v42 = vld [vmem:[#allocation2 + $0xf4] ss:$8 sps:$4 sm:$0xff]  }
 0x4b0   : > { %9351 = vmatprep.mubr.msk.bf16.mxu0 %vm10002_vm1, %v10001_v43  ;;  %v12744_v43 = vmov 0   ;;  %6461 = vmatpush1.bf16.msra.mxu1 %v9499_v51  ;;  %v8662_v51 = vld [vmem:[%s12630_s7] ss:$0 sm:$0xff] }
 0x4b1   : > { %6462 = vmatprep.subr.bf16.mxu1 %v9507_v44 }
 0x4b3   : > { %5453 = vmatmul.mubr.bf16.gmra.mrb[72].mxu1 %v8583_v49  ;;  %v9535_v49 = vld [vmem:[%s12634_s11 + $0x70] ss:$8 sps:$4 sm:$0xff]  }
 0x4b4   : > { %5460 = vmatprep.mubr.bf16.mxu1 %v8588_v3  ;;  %6463 = vmatpush1.bf16.msra.mxu1 %v9505_v1  ;;  %v9537_v3 = vld [vmem:[%s12634_s11 + $0x74] ss:$8 sps:$4 sm:$0xff]  }
 0x4b5   : > { %6464 = vmatprep.subr.bf16.mxu1 %v9513_v36 }
 0x4b7   : > { %9352 = vmatmul.mubr.msk.bf16.vlgmr.msra.gmra.mrb[88].mxu0 %vm5916_vm14, %v5907_v2  ;;  %v9543_v2 = vld [vmem:[#allocation2 + $0x104] ss:$8 sps:$4 sm:$0xff]  }
 0x4b8   : > { %7780 = vmatpush1.bf16.msra.mxu0 %v9472_v15  ;;  %6465 = vmatpush1.bf16.msra.mxu1 %v9511_v35 }
 0x4b9   : > { %7781 = vmatprep.subr.bf16.mxu0 %v9477_v7  ;;  %6466 = vmatprep.subr.bf16.mxu1 %v9519_v54 }
 0x4bb   : > { %5461 = vmatmul.mubr.bf16.gmra.mrb[76].mxu1 %v8587_v8  ;;  %v9552_v8 = vld [vmem:[#allocation2 + $0x204] ss:$8 sps:$4 sm:$0xff]  }
 0x4bc   : > { %6490 = vmatprep.mubr.bf16.mxu1 %v12744_v43  ;;  %7782 = vmatpush1.bf16.msra.mxu0 %v9475_v53 }
 0x4bd   : > { %7783 = vmatprep.subr.bf16.mxu0 %v9480_v0  ;;  %6467 = vmatpush1.bf16.msra.mxu1 %v9517_v57 }
 0x4be   : > { %6468 = vmatprep.subr.bf16.mxu1 %v9525_v11 }
 0x4c0   : > { %7784 = vmatpush1.bf16.msra.mxu0 %v9478_v38 }
 0x4c1   : > { %7785 = vmatprep.subr.bf16.mxu0 %v9483_v26  ;;  %6469 = vmatpush1.bf16.msra.mxu1 %v9523_v20 }
 0x4c2   : > { %6470 = vmatprep.subr.bf16.mxu1 %v9531_v62 }
 0x4c4   : > { %7786 = vmatpush1.bf16.msra.mxu0 %v9481_v22 }
 0x4c5   : > { %7787 = vmatprep.subr.bf16.mxu0 %v9486_v17  ;;  %6471 = vmatpush1.bf16.msra.mxu1 %v9529_v50 }
 0x4c6   : > { %6472 = vmatprep.subr.bf16.mxu1 %v9537_v3 }
 0x4c8   : > { %7788 = vmatpush1.bf16.msra.mxu0 %v9484_v27 }
 0x4c9   : > { %7789 = vmatprep.subr.bf16.mxu0 %v9489_v30  ;;  %6473 = vmatpush1.bf16.msra.mxu1 %v9535_v49  ;;  %v12306_v30 = vrot.slane %v8662_v51, %v11291_v14 }
 0x4ca   : > { %7820 = vmatprep.subr.bf16.mxu1 %v9543_v2 }
 0x4cc   : > { %7790 = vmatpush1.bf16.msra.mxu0 %v9487_v28 }
 0x4cd   : > { %7791 = vmatprep.subr.bf16.mxu0 %v9492_v31 }
 0x4d0   : > { %7792 = vmatpush1.bf16.msra.mxu0 %v9490_v9 }
 0x4d1   : > { %7793 = vmatprep.subr.bf16.mxu0 %v9498_v55 }
 0x4d4   : > { %7794 = vmatpush1.bf16.msra.mxu0 %v9496_v10 }
 0x4d5   : > { %7795 = vmatprep.subr.bf16.mxu0 %v9504_v56 }
 0x4d8   : > { %7796 = vmatpush1.bf16.msra.mxu0 %v9502_v18  ;;  %v12312_v18 = vcombine.high %v12306_v30, %v12306_v30 }
 0x4d9   : > { %7797 = vmatprep.subr.bf16.mxu0 %v9510_v39 }
 0x4da   : > { %v12320_v20 = vrot.slane %v12312_v18, 1 }
 0x4dc   : > { %7798 = vmatpush1.bf16.msra.mxu0 %v9508_v63 }
 0x4dd   : > { %7799 = vmatprep.subr.bf16.mxu0 %v9516_v13 }
 0x4e0   : > { %7800 = vmatpush1.bf16.msra.mxu0 %v9514_v32 }
 0x4e1   : > { %7801 = vmatprep.subr.bf16.mxu0 %v9522_v5 }
 0x4e4   : > { %7802 = vmatpush1.bf16.msra.mxu0 %v9520_v41 }
 0x4e5   : > { %7803 = vmatprep.subr.bf16.mxu0 %v9528_v60 }
 0x4e8   : > { %7804 = vmatpush1.bf16.msra.mxu0 %v9526_v34 }
 0x4e9   : > { %7805 = vmatprep.subr.bf16.mxu0 %v9534_v29 }
 0x4ec   : > { %v9167_v61 = vpop.f32.mrb[64].mxu0  ;;  %7806 = vmatpush1.bf16.msra.mxu0 %v9532_v33 }
 0x4ed   : > { %v9168_v24 = vpop.f32.mrb[65].mxu0  ;;  %7807 = vmatprep.subr.bf16.mxu0 %v9540_v6 }
 0x4ee   : > { %v12237_v45 = vadd.f32 %v9168_v24, %v9167_v61  ;;  %v9170_v52 = vpop.f32.mrb[66].mxu0 }
 0x4ef   : > { %v9171_v4 = vpop.f32.mrb[67].mxu0 }
 0x4f0   : > { %v12239_v23 = vadd.f32 %v9171_v4, %v9170_v52  ;;  %7808 = vmatpush1.bf16.msra.mxu0 %v9538_v48 }
 0x4f1   : > { %7809 = vmatprep.subr.bf16.mxu0 %v9546_v42 }
 0x4f4   : > { %7810 = vmatpush1.bf16.msra.mxu0 %v9544_v25 }
 0x4f5   : > { %7861 = vmatprep.subr.bf16.mxu0 %v9552_v8 }
 0x515   : > { %v9173_v40 = vpop.f32.mrb[68].mxu0 }
 0x516   : > { %v9174_v19 = vpop.f32.mrb[69].mxu0 }
 0x517   : > { %v12271_v21 = vadd.f32 %v9174_v19, %v9173_v40  ;;  %v9176_v46 = vpop.f32.mrb[70].mxu0 }
 0x518   : > { %v9177_v16 = vpop.f32.mrb[71].mxu0 }
 0x519   : > { %v12273_v58 = vadd.f32 %v9177_v16, %v9176_v46 }
 0x567   : > { %v9179_v43 = vpop.f32.mrb[72].mxu0 }
 0x568   : > { %v9180_v15 = vpop.f32.mrb[73].mxu0 }
 0x569   : > { %v12293_v37 = vadd.f32 %v9180_v15, %v9179_v43  ;;  %v9182_v61 = vpop.f32.mrb[74].mxu0 }
 0x56a   : > { %v9183_v7 = vpop.f32.mrb[75].mxu0 }
 0x56b   : > { %v12295_v24 = vadd.f32 %v9183_v7, %v9182_v61 }
 0x572   : > { %v9185_v52 = vpop.f32.mrb[76].mxu0 }
 0x573   : > { %v9186_v53 = vpop.f32.mrb[77].mxu0 }
 0x574   : > { %v12297_v4 = vadd.f32 %v9186_v53, %v9185_v52  ;;  %v9188_v0 = vpop.f32.mrb[78].mxu0 }
 0x575   : > { %v9189_v59 = vpop.f32.mrb[79].mxu0 }
 0x576   : > { %v12299_v47 = vadd.f32 %v9189_v59, %v9188_v0  ;;  %v9207_v38 = vpop.f32.mrb[64].mxu1 }
 0x577   : > { %v9208_v26 = vpop.f32.mrb[65].mxu1 }
 0x578   : > { %v9209_v22 = vadd.f32 %v9208_v26, %v9207_v38  ;;  %v9210_v12 = vpop.f32.mrb[66].mxu1 }
 0x579   : > { %v9211_v17 = vpop.f32.mrb[67].mxu1 }
 0x57a   : > { %v9212_v1 = vadd.f32 %v9211_v17, %v9210_v12  ;;  %v9343_v27 = vpop.f32.mrb[80].mxu0  ;;  %v5439_v44 = vadd.f32 %v9209_v22, %v12237_v45 }
 0x57b   : > { %v5503_v28 = vpop.f32.mrb[81].mxu0 }
 0x57c   : > { %v5504_v31 = vadd.f32 %v5503_v28, %v5439_v44  ;;  %v9344_v9 = vpop.f32.mrb[82].mxu0  ;;  %v5442_v55 = vadd.f32 %v9212_v1, %v12239_v23  ;;  %v12317_v23 = vrot.slane %v12306_v30, 1 }
 0x57d   : > { %v5506_v10 = vpop.f32.mrb[83].mxu0 }
 0x57e   : > { %v5542_v56 = vcombine.high %v5504_v31, %v5504_v31  ;;  %v5549_v35 = vrot.slane %v5504_v31, %v11291_v14  ;;  %v5507_v36 = vadd.f32 %v5506_v10, %v5442_v55  ;;  %v9213_v39 = vpop.f32.mrb[68].mxu1 }
 0x57f   : > { %v9214_v63 = vpop.f32.mrb[69].mxu1 }
 0x580   : > { %v5556_v45 = vrot.slane %v5542_v56, %v11291_v14  ;;  %v5557_v13 = vcombine.high %v5549_v35, %v5549_v35  ;;  %v8630_v32 = vrot.slane %v5549_v35, 9  ;;  %v5559_v57 = vcombine.high %v5507_v36, %v5507_v36  ;;  %v9216_v54 = vpop.f32.mrb[70].mxu1 }
 0x581   : > { %v5566_v40 = vrot.slane %v5507_v36, %v11291_v14  ;;  %v9215_v19 = vadd.f32 %v9214_v63, %v9213_v39  ;;  %v9217_v46 = vpop.f32.mrb[71].mxu1 }
 0x582   : > { %v5558_v16 = vcombine.high %v5556_v45, %v5556_v45  ;;  %v8631_v41 = vrot.slane %v5557_v13, 9  ;;  %v8632_v5 = vrot.slane %v5556_v45, 9  ;;  %v12322_v11 = vpop.f32.mrb[84].mxu0  ;;  %v5573_v60 = vrot.slane %v5559_v57, %v11291_v14 }
 0x583   : > { %v5574_v62 = vcombine.high %v5566_v40, %v5566_v40  ;;  %v8634_v34 = vrot.slane %v5566_v40, 9  ;;  %v5447_v50 = vadd.f32 %v9215_v19, %v12271_v21  ;;  %v12326_v33 = vpop.f32.mrb[85].mxu0  ;;  %v5806_v49 = vmax.f32 %v5549_v35, %v8630_v32 }
 0x584   : > { %v8633_v29 = vrot.slane %v5558_v16, 9  ;;  %v5807_v3 = vmax.f32 %v5557_v13, %v8631_v41  ;;  %v9218_v6 = vadd.f32 %v9217_v46, %v9216_v54  ;;  %v12328_v2 = vpop.f32.mrb[86].mxu0  ;;  %v5575_v48 = vcombine.high %v5573_v60, %v5573_v60 }
 0x585   : > { %v8635_v25 = vrot.slane %v5574_v62, 9  ;;  %v8636_v42 = vrot.slane %v5573_v60, 9  ;;  %v5810_v8 = vmax.f32 %v5566_v40, %v8634_v34  ;;  %v12330_v43 = vpop.f32.mrb[87].mxu0  ;;  %v5808_v15 = vmax.f32 %v5556_v45, %v8632_v5  ;;  %v12745_v5 = vld [vmem:[#allocation13_spill] sm:$0xff] }
 0x586   : > { %v5809_v61 = vmax.f32 %v5558_v16, %v8633_v29  ;;  %v5512_v7 = vadd.f32 %v9343_v27, %v5447_v50  ;;  %v5450_v52 = vadd.f32 %v9218_v6, %v12273_v58  ;;  %v9219_v21 = vpop.f32.mrb[72].mxu1  ;;  %v8637_v53 = vrot.slane %v5575_v48, 9 }
 0x587   : > { %v5811_v0 = vmax.f32 %v5574_v62, %v8635_v25  ;;  %v5812_v59 = vmax.f32 %v5573_v60, %v8636_v42  ;;  %v5838_v38 = vmax.f32 %v5806_v49, %v5810_v8  ;;  %v9220_v26 = vpop.f32.mrb[73].mxu1 }
 0x588   : > { %v5576_v51 = vcombine.high %v5512_v7, %v5512_v7  ;;  %v5583_v22 = vrot.slane %v5512_v7, %v11291_v14  ;;  %v5515_v12 = vadd.f32 %v9344_v9, %v5450_v52  ;;  %v9221_v17 = vadd.f32 %v9220_v26, %v9219_v21  ;;  %v9222_v1 = vpop.f32.mrb[74].mxu1 }
 0x589   : > { %v5813_v44 = vmax.f32 %v5575_v48, %v8637_v53  ;;  %v5839_v28 = vmax.f32 %v5807_v3, %v5811_v0  ;;  %v5840_v31 = vmax.f32 %v5808_v15, %v5812_v59  ;;  %v5874_v55 = vadd.f32 %v12306_v30, %v5838_v38  ;;  %v9223_v27 = vpop.f32.mrb[75].mxu1  ;;  %v5910_v3 = vld [vmem:[%s12632_s9] sm:$0x1] }
 0x58a   : > { %v5590_v58 = vrot.slane %v5576_v51, %v11291_v14  ;;  %v5591_v10 = vcombine.high %v5583_v22, %v5583_v22  ;;  %v8638_v56 = vrot.slane %v5583_v22, 9  ;;  %v5593_v35 = vcombine.high %v5515_v12, %v5515_v12  ;;  %v5957_v36 = vpop.f32.mrb[88].mxu0 }
 0x58b   : > { %v5841_v39 = vmax.f32 %v5809_v61, %v5813_v44  ;;  %v5875_v63 = vadd.f32 %v12317_v23, %v5839_v28  ;;  %v5876_v45 = vadd.f32 %v12312_v18, %v5840_v31  ;;  %v5890_v9 = vmax.f32 %v5874_v55, 0.0  ;;  %v9353_v13 = vpop.f32.mrb[89].mxu0 }
 0x58c   : > { %v5592_v32 = vcombine.high %v5590_v58, %v5590_v58  ;;  %v8639_v57 = vrot.slane %v5591_v10, 9  ;;  %v8640_v54 = vrot.slane %v5590_v58, 9  ;;  %v5814_v40 = vmax.f32 %v5583_v22, %v8638_v56  ;;  %v5960_v19 = vpop.f32.mrb[90].mxu0 }
 0x58d   : > { %v12339_v46 = vadd.f32 %v12320_v20, %v5841_v39  ;;  %v5891_v16 = vmax.f32 %v5875_v63, 0.0  ;;  %v5892_v41 = vmax.f32 %v5876_v45, 0.0  ;;  %v12342_v60 = vrot.slane %v5890_v9, %v12745_v5  ;;  %v9354_v62 = vpop.f32.mrb[91].mxu0  ;;  %v9549_v45 = vld [vmem:[#allocation2 + $0x114] ss:$8 sps:$4 sm:$0xff]  }
 0x58e   : > { %v8641_v34 = vrot.slane %v5592_v32, 9  ;;  %v5815_v50 = vmax.f32 %v5591_v10, %v8639_v57  ;;  %v5816_v29 = vmax.f32 %v5590_v58, %v8640_v54  ;;  %v5600_v49 = vrot.slane %v5515_v12, %v11291_v14  ;;  %v9225_v6 = vpop.f32.mrb[76].mxu1  ;;  %v9547_v62 = vld [vmem:[#allocation2 + $0x110] ss:$8 sps:$4 sm:$0xff]  }
 0x58f   : > { %v5893_v48 = vmax.f32 %v12339_v46, 0.0  ;;  %v12350_v25 = vrot.slane %v5891_v16, %v12745_v5  ;;  %v12353_v42 = vrot.slane %v5892_v41, %v12745_v5  ;;  %v5607_v8 = vrot.slane %v5593_v35, %v11291_v14  ;;  %v9226_v15 = vpop.f32.mrb[77].mxu1 }
 0x590   : > { %v12356_v61 = vmax.f32 %v5592_v32, %v8641_v34  ;;  %v5608_v7 = vcombine.high %v5600_v49, %v5600_v49  ;;  %v8642_v52 = vrot.slane %v5600_v49, 9  ;;  %v5455_v21 = vadd.f32 %v9221_v17, %v12293_v37  ;;  %v9228_v53 = vpop.f32.mrb[78].mxu1  ;;  %v9541_v17 = vld [vmem:[#allocation2 + $0x100] ss:$8 sps:$4 sm:$0xff]  }
 0x591   : > { %v5609_v0 = vcombine.high %v5607_v8, %v5607_v8  ;;  %v8644_v59 = vrot.slane %v5607_v8, 9  ;;  %v9224_v38 = vadd.f32 %v9223_v27, %v9222_v1  ;;  %v5958_v26 = vadd.f32 %v5957_v36, %v5910_v3  ;;  %v9229_v51 = vpop.f32.mrb[79].mxu1  ;;  %v9555_v3 = vld [vmem:[#allocation2 + $0x124] ss:$8 sps:$4 sm:$0xff]  }
 0x592   : > { %v8643_v22 = vrot.slane %v5608_v7, 9  ;;  %v5818_v12 = vmax.f32 %v5600_v49, %v8642_v52  ;;  %v5520_v44 = vadd.f32 %v12326_v33, %v5455_v21  ;;  %v9227_v28 = vadd.f32 %v9226_v15, %v9225_v6 }
 0x593   : > { %v8645_v31 = vrot.slane %v5609_v0, 9  ;;  %v5820_v55 = vmax.f32 %v5607_v8, %v8644_v59  ;;  %v5458_v58 = vadd.f32 %v9224_v38, %v12295_v24  ;;  %v5963_v10 = vmax.f32 %v5958_v26, 0.0 }
 0x594   : > { %v5819_v56 = vmax.f32 %v5608_v7, %v8643_v22  ;;  %v5842_v35 = vmax.f32 %v5814_v40, %v5818_v12  ;;  %v5610_v39 = vcombine.high %v5520_v44, %v5520_v44  ;;  %v5617_v37 = vrot.slane %v5520_v44, %v11291_v14  ;;  %v9553_v44 = vld [vmem:[#allocation2 + $0x120] ss:$8 sps:$4 sm:$0xff]  }
 0x595   : > { %v12362_v63 = vmax.f32 %v5609_v0, %v8645_v31  ;;  %v5844_v1 = vmax.f32 %v5816_v29, %v5820_v55  ;;  %v5523_v27 = vadd.f32 %v12330_v43, %v5458_v58  ;;  %v6361_v36 = vpack.c.bf16 %v5963_v10, %v5963_v10 }
 0x596   : > { %v5843_v33 = vmax.f32 %v5815_v50, %v5819_v56  ;;  %v5878_v9 = vadd.f32 %v12306_v30, %v5842_v35  ;;  %v5624_v13 = vrot.slane %v5610_v39, %v11291_v14  ;;  %v5625_v24 = vcombine.high %v5617_v37, %v5617_v37  ;;  %v9561_v56 = vld [vmem:[#allocation2 + $0x134] ss:$8 sps:$4 sm:$0xff]  }
 0x597   : > { %v5845_v32 = vmax.f32 %v12356_v61, %v12362_v63  ;;  %v12370_v57 = vadd.f32 %v12312_v18, %v5844_v1  ;;  %v8646_v54 = vrot.slane %v5617_v37, 9  ;;  %v5627_v40 = vcombine.high %v5523_v27, %v5523_v27  ;;  %6491 = vmatmul.mubr.bf16.vlgmr.msra.gmra.mrb[80].mxu1 %v6361_v36  ;;  %v9577_v63 = vld [vmem:[#allocation2 + $0x160] ss:$8 sps:$4 sm:$0xff]  }
 0x598   : > { %v5879_v19 = vadd.f32 %v12317_v23, %v5843_v33  ;;  %v5894_v43 = vmax.f32 %v5878_v9, 0.0  ;;  %v5626_v16 = vcombine.high %v5624_v13, %v5624_v13  ;;  %v8647_v41 = vrot.slane %v5625_v24, 9  ;;  %7821 = vmatpush1.bf16.msra.mxu1 %v9541_v17 }
 0x599   : > { %v5896_v34 = vmax.f32 %v12370_v57, 0.0  ;;  %v8648_v50 = vrot.slane %v5624_v13, 9  ;;  %v5822_v29 = vmax.f32 %v5617_v37, %v8646_v54  ;;  %v5634_v49 = vrot.slane %v5523_v27, %v11291_v14  ;;  %7822 = vmatprep.subr.bf16.mxu1 %v9549_v45 }
 0x59a   : > { %v5895_v6 = vmax.f32 %v5879_v19, 0.0  ;;  %v12376_v8 = vrot.slane %v5894_v43, %v12745_v5  ;;  %v8649_v15 = vrot.slane %v5626_v16, 9  ;;  %v5823_v7 = vmax.f32 %v5625_v24, %v8647_v41 }
 0x59b   : > { %v5824_v52 = vmax.f32 %v5624_v13, %v8648_v50  ;;  %v5641_v21 = vrot.slane %v5627_v40, %v11291_v14  ;;  %v5642_v0 = vcombine.high %v5634_v49, %v5634_v49  ;;  %v8650_v59 = vrot.slane %v5634_v49, 9 }
 0x59c   : > { %v12380_v38 = vrot.slane %v5895_v6, %v12745_v5  ;;  %v12382_v26 = vmax.f32 %v5626_v16, %v8649_v15  ;;  %v5463_v22 = vadd.f32 %v9227_v28, %v12297_v4  ;;  %v9230_v12 = vadd.f32 %v9229_v51, %v9228_v53  ;;  %7823 = vmatpush1.bf16.msra.mxu1 %v9547_v62  ;;  %v9565_v62 = vld [vmem:[#allocation2 + $0x140] ss:$8 sps:$4 sm:$0xff]   ;;  %v9573_v6 = vld [vmem:[#allocation2 + $0x154] ss:$8 sps:$4 sm:$0xff]  }
 0x59d   : > { %v5643_v31 = vcombine.high %v5641_v21, %v5641_v21  ;;  %v8651_v55 = vrot.slane %v5642_v0, 9  ;;  %v8652_v58 = vrot.slane %v5641_v21, 9  ;;  %v5826_v10 = vmax.f32 %v5634_v49, %v8650_v59  ;;  %7824 = vmatprep.subr.bf16.mxu1 %v9555_v3 }
 0x59e   : > { %v5528_v35 = vadd.f32 %v12322_v11, %v5463_v22  ;;  %v5466_v39 = vadd.f32 %v9230_v12, %v12299_v47  ;;  %v5995_v37 = vrot.slane %v5893_v48, %v12745_v5  ;;  %v6044_v4 = vsel %vm4544_vm6, %v12350_v25, %v12342_v60  ;;  %v9559_v11 = vld [vmem:[#allocation2 + $0x130] ss:$8 sps:$4 sm:$0xff]   ;;  %v9567_v25 = vld [vmem:[#allocation2 + $0x144] ss:$8 sps:$4 sm:$0xff]  }
 0x59f   : > { %v8653_v53 = vrot.slane %v5643_v31, 9  ;;  %v5827_v51 = vmax.f32 %v5642_v0, %v8651_v55  ;;  %v5828_v28 = vmax.f32 %v5641_v21, %v8652_v58  ;;  %v5846_v17 = vmax.f32 %v5822_v29, %v5826_v10  ;;  %v9571_v10 = vld [vmem:[#allocation2 + $0x150] ss:$8 sps:$4 sm:$0xff]  }
 0x5a0   : > { %v5644_v1 = vcombine.high %v5528_v35, %v5528_v35  ;;  %v5651_v27 = vrot.slane %v5528_v35, %v11291_v14  ;;  %v5531_v36 = vadd.f32 %v12328_v2, %v5466_v39  ;;  %v6045_v47 = vsel %vm4547_vm7, %v12353_v42, %v6044_v4  ;;  %7825 = vmatpush1.bf16.msra.mxu1 %v9553_v44 }
 0x5a1   : > { %v12397_v46 = vmax.f32 %v5643_v31, %v8653_v53  ;;  %v5847_v48 = vmax.f32 %v5823_v7, %v5827_v51  ;;  %v5848_v45 = vmax.f32 %v5824_v52, %v5828_v28  ;;  %v5882_v60 = vadd.f32 %v12306_v30, %v5846_v17  ;;  %7826 = vmatprep.subr.bf16.mxu1 %v9561_v56  ;;  %v9550_v28 = vld [vmem:[#allocation2 + $0x200] ss:$8 sps:$4 sm:$0xff]  }
 0x5a2   : > { %v5658_v33 = vrot.slane %v5644_v1, %v11291_v14  ;;  %v5659_v9 = vcombine.high %v5651_v27, %v5651_v27  ;;  %v8654_v13 = vrot.slane %v5651_v27, 9  ;;  %v5661_v24 = vcombine.high %v5531_v36, %v5531_v36  ;;  %v9579_v1 = vld [vmem:[#allocation2 + $0x164] ss:$8 sps:$4 sm:$0xff]  }
 0x5a3   : > { %v5849_v2 = vmax.f32 %v12382_v26, %v12397_v46  ;;  %v5883_v42 = vadd.f32 %v12317_v23, %v5847_v48  ;;  %v12405_v54 = vadd.f32 %v12312_v18, %v5848_v45  ;;  %v5898_v40 = vmax.f32 %v5882_v60, 0.0  ;;  %v9591_v26 = vld [vmem:[#allocation2 + $0x184] ss:$8 sps:$4 sm:$0xff]   ;;  %v9562_v46 = vld [vmem:[#allocation2 + $0x220] ss:$8 sps:$4 sm:$0xff]  }
 0x5a4   : > { %v5660_v19 = vcombine.high %v5658_v33, %v5658_v33  ;;  %v8655_v43 = vrot.slane %v5659_v9, 9  ;;  %v8656_v16 = vrot.slane %v5658_v33, 9  ;;  %v5830_v41 = vmax.f32 %v5651_v27, %v8654_v13  ;;  %7827 = vmatpush1.bf16.msra.mxu1 %v9559_v11  ;;  %v9558_v11 = vld [vmem:[#allocation2 + $0x214] ss:$8 sps:$4 sm:$0xff]  }
 0x5a5   : > { %v5899_v50 = vmax.f32 %v5883_v42, 0.0  ;;  %v5900_v29 = vmax.f32 %v12405_v54, 0.0  ;;  %v12409_v49 = vrot.slane %v5898_v40, %v12745_v5  ;;  %v5668_v3 = vrot.slane %v5531_v36, %v11291_v14  ;;  %7828 = vmatprep.subr.bf16.mxu1 %v9567_v25  ;;  %v9564_v42 = vld [vmem:[#allocation2 + $0x224] ss:$8 sps:$4 sm:$0xff]  }
 0x5a6   : > { %v8657_v15 = vrot.slane %v5660_v19, 9  ;;  %v5831_v7 = vmax.f32 %v5659_v9, %v8655_v43  ;;  %v5832_v52 = vmax.f32 %v5658_v33, %v8656_v16  ;;  %v5675_v21 = vrot.slane %v5661_v24, %v11291_v14  ;;  %v9881_v14 = vld [vmem:[%s12636_s13] sm:$0xff]  }
 0x5a7   : > { %v6019_v0 = vrot.slane %v5899_v50, %v12745_v5  ;;  %v5676_v59 = vcombine.high %v5668_v3, %v5668_v3  ;;  %v8658_v22 = vrot.slane %v5668_v3, 9  ;;  %v12415_v12 = vsel %vm4550_vm8, %v5995_v37, %v6045_v47 }
 0x5a8   : > { %v12417_v44 = vmax.f32 %v5660_v19, %v8657_v15  ;;  %v5677_v31 = vcombine.high %v5675_v21, %v5675_v21  ;;  %v8660_v55 = vrot.slane %v5675_v21, 9  ;;  %v6062_v58 = vrot.slane %v12415_v12, 1  ;;  %7829 = vmatpush1.bf16.msra.mxu1 %v9565_v62 }
 0x5a9   : > { %v8659_v56 = vrot.slane %v5676_v59, 9  ;;  %v5834_v35 = vmax.f32 %v5668_v3, %v8658_v22  ;;  %v6066_v39 = vrot.slane %v12415_v12, 3  ;;  %v8941_v37 = vpack.c.bf16 %v12415_v12, %v12415_v12  ;;  %7830 = vmatprep.subr.bf16.mxu1 %v9573_v6  ;;  %v9568_v22 = vld [vmem:[#allocation2 + $0x230] ss:$8 sps:$4 sm:$0xff]  }
 0x5aa   : > { %v8661_v4 = vrot.slane %v5677_v31, 9  ;;  %v5836_v53 = vmax.f32 %v5675_v21, %v8660_v55  ;;  %v8938_v51 = vpack.c.bf16 %v6062_v58, %v6062_v58  ;;  %v5881_v17 = vadd.f32 %v12320_v20, %v5845_v32  ;;  %v9597_v21 = vld [vmem:[#allocation2 + $0x194] ss:$8 sps:$4 sm:$0xff]   ;;  %v9595_v58 = vld [vmem:[#allocation2 + $0x190] ss:$8 sps:$4 sm:$0xff]  }
 0x5ab   : > { %v5835_v27 = vmax.f32 %v5676_v59, %v8659_v56  ;;  %v5850_v36 = vmax.f32 %v5830_v41, %v5834_v35  ;;  %v8944_v47 = vpack.c.bf16 %v6066_v39, %v6066_v39  ;;  %v6007_v48 = vrot.slane %v5896_v34, %v12745_v5  ;;  %v9585_v34 = vld [vmem:[#allocation2 + $0x174] ss:$8 sps:$4 sm:$0xff]   ;;  %v9574_v35 = vld [vmem:[#allocation2 + $0x240] ss:$8 sps:$4 sm:$0xff]  }
 0x5ac   : > { %v5837_v45 = vmax.f32 %v5677_v31, %v8661_v4  ;;  %v5852_v60 = vmax.f32 %v5832_v52, %v5836_v53  ;;  %8939 = vmatprep.mubr.msk.bf16.mxu0 %vm12422_vm15, %v8938_v51  ;;  %v5897_v25 = vmax.f32 %v5881_v17, 0.0  ;;  %v6047_v61 = vsel %vm4544_vm6, %v12380_v38, %v12376_v8  ;;  %7831 = vmatpush1.bf16.msra.mxu1 %v9571_v10  ;;  %v9556_v8 = vld [vmem:[#allocation2 + $0x210] ss:$8 sps:$4 sm:$0xff]   ;;  %v9576_v31 = vld [vmem:[#allocation2 + $0x244] ss:$8 sps:$4 sm:$0xff]  }
 0x5ad   : > { %v5851_v32 = vmax.f32 %v5831_v7, %v5835_v27  ;;  %v5886_v33 = vadd.f32 %v12306_v30, %v5850_v36  ;;  %8945 = vmatprep.mubr.msk.bf16.mxu1 %vm12422_vm15, %v8944_v47  ;;  %8942 = vmatmul.mubr.msk.bf16.vlgmr.msra.gmra.mrb[92].mxu0 %vm12422_vm15, %v8941_v37  ;;  %v6048_v57 = vsel %vm4547_vm7, %v6007_v48, %v6047_v61  ;;  %v9603_v10 = vld [vmem:[#allocation2 + $0x1a4] ss:$8 sps:$4 sm:$0xff]   ;;  %v9582_v39 = vld [vmem:[#allocation2 + $0x254] ss:$8 sps:$4 sm:$0xff]   ;;  %v9601_v37 = vld [vmem:[#allocation2 + $0x1a0] ss:$8 sps:$4 sm:$0xff]  }
 0x5ae   : > { %v5853_v9 = vmax.f32 %v12417_v44, %v5837_v45  ;;  %v5888_v13 = vadd.f32 %v12312_v18, %v5852_v60  ;;  %7862 = vmatpush1.bf16.msra.mxu0 %v9550_v28  ;;  %v6011_v38 = vrot.slane %v5897_v25, %v12745_v5  ;;  %7832 = vmatprep.subr.bf16.mxu1 %v9579_v1  ;;  %v9583_v18 = vld [vmem:[#allocation2 + $0x170] ss:$8 sps:$4 sm:$0xff]   ;;  %v9609_v4 = vld [vmem:[#allocation2 + $0x1b4] ss:$8 sps:$4 sm:$0xff]   ;;  %v9588_v51 = vld [vmem:[#allocation2 + $0x264] ss:$8 sps:$4 sm:$0xff]  }
 0x5af   : > { %v5887_v30 = vadd.f32 %v12317_v23, %v5851_v32  ;;  %v5902_v24 = vmax.f32 %v5886_v33, 0.0  ;;  %7863 = vmatprep.subr.bf16.mxu0 %v9558_v11  ;;  %v5885_v40 = vadd.f32 %v12320_v20, %v5849_v2  ;;  %v6023_v16 = vrot.slane %v5900_v29, %v12745_v5  ;;  %v9570_v29 = vld [vmem:[#allocation2 + $0x234] ss:$8 sps:$4 sm:$0xff]   ;;  %v9580_v53 = vld [vmem:[#allocation2 + $0x250] ss:$8 sps:$4 sm:$0xff]  }
 0x5b0   : > { %v5904_v19 = vmax.f32 %v5888_v13, 0.0  ;;  %v12456_v43 = vsel %vm4550_vm8, %v6011_v38, %v6048_v57  ;;  %7833 = vmatpush1.bf16.msra.mxu1 %v9577_v63  ;;  %v6050_v23 = vsel %vm4544_vm6, %v6019_v0, %v12409_v49  ;;  %v5889_v15 = vadd.f32 %v12320_v20, %v5853_v9  ;;  %v9589_v49 = vld [vmem:[#allocation2 + $0x180] ss:$8 sps:$4 sm:$0xff]   ;;  %v9607_v28 = vld [vmem:[#allocation2 + $0x1b0] ss:$8 sps:$4 sm:$0xff]  }
 0x5b1   : > { %v5903_v41 = vmax.f32 %v5887_v30, 0.0  ;;  %v6069_v62 = vrot.slane %v12456_v43, 1  ;;  %7834 = vmatprep.subr.bf16.mxu1 %v9585_v34  ;;  %v5901_v2 = vmax.f32 %v5885_v40, 0.0  ;;  %v6051_v50 = vsel %vm4547_vm7, %v6023_v16, %v6050_v23  ;;  %v9615_v17 = vld [vmem:[#allocation2 + $0x1c4] ss:$8 sps:$4 sm:$0xff]  }
 0x5b2   : > { %7864 = vmatpush1.bf16.msra.mxu0 %v9556_v8  ;;  %v6031_v3 = vrot.slane %v5902_v24, %v12745_v5  ;;  %v6039_v52 = vrot.slane %v5904_v19, %v12745_v5  ;;  %v5905_v0 = vmax.f32 %v5889_v15, 0.0  ;;  %v9586_v1 = vld [vmem:[#allocation2 + $0x260] ss:$8 sps:$4 sm:$0xff]   ;;  %v9594_v27 = vld [vmem:[#allocation2 + $0x274] ss:$8 sps:$4 sm:$0xff]   ;;  %v6064_v9 = vrot.slane %v12415_v12, 2 }
 0x5b3   : > { %v6035_v6 = vrot.slane %v5903_v41, %v12745_v5  ;;  %7865 = vmatprep.subr.bf16.mxu0 %v9564_v42  ;;  %v8950_v54 = vpack.c.bf16 %v6069_v62, %v6069_v62  ;;  %v6027_v7 = vrot.slane %v5901_v2, %v12745_v5  ;;  %v9613_v36 = vld [vmem:[#allocation2 + $0x1c0] ss:$8 sps:$4 sm:$0xff]   ;;  %v9621_v47 = vld [vmem:[#allocation2 + $0x1d4] ss:$8 sps:$4 sm:$0xff]   ;;  %v9592_v11 = vld [vmem:[#allocation2 + $0x270] ss:$8 sps:$4 sm:$0xff]  }
 0x5b4   : > { %7835 = vmatpush1.bf16.msra.mxu1 %v9583_v18  ;;  %v6043_v55 = vrot.slane %v5905_v0, %v12745_v5  ;;  %v9600_v48 = vld [vmem:[#allocation2 + $0x284] ss:$8 sps:$4 sm:$0xff]   ;;  %v9619_v45 = vld [vmem:[#allocation2 + $0x1d0] ss:$8 sps:$4 sm:$0xff]   ;;  %v9598_v25 = vld [vmem:[#allocation2 + $0x280] ss:$8 sps:$4 sm:$0xff]   ;;  %v8947_v42 = vpack.c.bf16 %v6064_v9, %v6064_v9 }
 0x5b5   : > { %8951 = vmatprep.mubr.msk.bf16.mxu0 %vm12422_vm15, %v8950_v54  ;;  %7836 = vmatprep.subr.bf16.mxu1 %v9591_v26  ;;  %v6053_v59 = vsel %vm4544_vm6, %v6035_v6, %v6031_v3  ;;  %v12474_v44 = vsel %vm4550_vm8, %v6027_v7, %v6051_v50  ;;  %v9627_v60 = vld [vmem:[#allocation2 + $0x1e4] ss:$8 sps:$4 sm:$0xff]   ;;  %v9606_v61 = vld [vmem:[#allocation2 + $0x294] ss:$8 sps:$4 sm:$0xff]   ;;  %v9625_v63 = vld [vmem:[#allocation2 + $0x1e0] ss:$8 sps:$4 sm:$0xff]  }
 0x5b6   : > { %7866 = vmatpush1.bf16.msra.mxu0 %v9562_v46  ;;  %v6054_v20 = vsel %vm4547_vm7, %v6039_v52, %v6053_v59  ;;  %v9633_v32 = vld [vmem:[#allocation2 + $0x1f4] ss:$8 sps:$4 sm:$0xff]   ;;  %v9604_v33 = vld [vmem:[#allocation2 + $0x290] ss:$8 sps:$4 sm:$0xff]   ;;  %v9612_v57 = vld [vmem:[#allocation2 + $0x2a4] ss:$8 sps:$4 sm:$0xff]  }
 0x5b7   : > { %7867 = vmatprep.subr.bf16.mxu0 %v9570_v29  ;;  %v12479_v56 = vsel %vm4550_vm8, %v6043_v55, %v6054_v20  ;;  %v9631_v34 = vld [vmem:[#allocation2 + $0x1f0] ss:$8 sps:$4 sm:$0xff]   ;;  %v9639_v13 = vld [vmem:[#allocation2 + $0x304] ss:$8 sps:$4 sm:$0xff]   ;;  %v9610_v8 = vld [vmem:[#allocation2 + $0x2a0] ss:$8 sps:$4 sm:$0xff]   ;;  %v8953_v20 = vpack.c.bf16 %v12456_v43, %v12456_v43 }
 0x5b8   : > { %7837 = vmatpush1.bf16.msra.mxu1 %v9589_v49  ;;  %v6073_v38 = vrot.slane %v12456_v43, 3  ;;  %v9618_v30 = vld [vmem:[#allocation2 + $0x2b4] ss:$8 sps:$4 sm:$0xff]   ;;  %v9637_v24 = vld [vmem:[#allocation2 + $0x300] ss:$8 sps:$4 sm:$0xff]  }
 0x5b9   : > { %7838 = vmatprep.subr.bf16.mxu1 %v9597_v21  ;;  %v9645_v40 = vld [vmem:[#allocation2 + $0x314] ss:$8 sps:$4 sm:$0xff]   ;;  %v9616_v19 = vld [vmem:[#allocation2 + $0x2b0] ss:$8 sps:$4 sm:$0xff]   ;;  %v9624_v16 = vld [vmem:[#allocation2 + $0x2c4] ss:$8 sps:$4 sm:$0xff]  }
 0x5ba   : > { %7868 = vmatpush1.bf16.msra.mxu0 %v9568_v22  ;;  %v8956_v18 = vpack.c.bf16 %v6073_v38, %v6073_v38  ;;  %v9643_v12 = vld [vmem:[#allocation2 + $0x310] ss:$8 sps:$4 sm:$0xff]   ;;  %v9651_v23 = vld [vmem:[#allocation2 + $0x324] ss:$8 sps:$4 sm:$0xff]   ;;  %v9622_v41 = vld [vmem:[#allocation2 + $0x2c0] ss:$8 sps:$4 sm:$0xff]  }
 0x5bb   : > { %7869 = vmatprep.subr.bf16.mxu0 %v9576_v31  ;;  %v9630_v62 = vld [vmem:[#allocation2 + $0x2d4] ss:$8 sps:$4 sm:$0xff]   ;;  %v9649_v26 = vld [vmem:[#allocation2 + $0x320] ss:$8 sps:$4 sm:$0xff]   ;;  %v9628_v2 = vld [vmem:[#allocation2 + $0x2d0] ss:$8 sps:$4 sm:$0xff]  }
 0x5bc   : > { %7839 = vmatpush1.bf16.msra.mxu1 %v9595_v58  ;;  %v9657_v46 = vld [vmem:[#allocation2 + $0x334] ss:$8 sps:$4 sm:$0xff]   ;;  %v9636_v50 = vld [vmem:[#allocation2 + $0x2e4] ss:$8 sps:$4 sm:$0xff]   ;;  %v9655_v3 = vld [vmem:[#allocation2 + $0x330] ss:$8 sps:$4 sm:$0xff]  }
 0x5bd   : > { %7840 = vmatprep.subr.bf16.mxu1 %v9603_v10  ;;  %v9663_v6 = vld [vmem:[#allocation2 + $0x344] ss:$8 sps:$4 sm:$0xff]   ;;  %v9634_v54 = vld [vmem:[#allocation2 + $0x2e0] ss:$8 sps:$4 sm:$0xff]   ;;  %v9642_v29 = vld [vmem:[#allocation2 + $0x2f4] ss:$8 sps:$4 sm:$0xff]  }
 0x5be   : > { %7870 = vmatpush1.bf16.msra.mxu0 %v9574_v35  ;;  %v9661_v15 = vld [vmem:[#allocation2 + $0x340] ss:$8 sps:$4 sm:$0xff]   ;;  %v9669_v49 = vld [vmem:[#allocation2 + $0x354] ss:$8 sps:$4 sm:$0xff]   ;;  %v9640_v7 = vld [vmem:[#allocation2 + $0x2f0] ss:$8 sps:$4 sm:$0xff]  }
 0x5bf   : > { %7871 = vmatprep.subr.bf16.mxu0 %v9582_v39  ;;  %v9648_v52 = vld [vmem:[#allocation2 + $0x404] ss:$8 sps:$4 sm:$0xff]   ;;  %v6076_v21 = vrot.slane %v12474_v44, 1  ;;  %v9667_v0 = vld [vmem:[#allocation2 + $0x350] ss:$8 sps:$4 sm:$0xff]  }
 0x5c0   : > { %7841 = vmatpush1.bf16.msra.mxu1 %v9601_v37  ;;  %v9675_v59 = vld [vmem:[#allocation2 + $0x364] ss:$8 sps:$4 sm:$0xff]   ;;  %v9646_v22 = vld [vmem:[#allocation2 + $0x400] ss:$8 sps:$4 sm:$0xff]   ;;  %v9654_v31 = vld [vmem:[#allocation2 + $0x414] ss:$8 sps:$4 sm:$0xff]  }
 0x5c1   : > { %7842 = vmatprep.subr.bf16.mxu1 %v9609_v4  ;;  %v8962_v55 = vpack.c.bf16 %v6076_v21, %v6076_v21  ;;  %v9673_v58 = vld [vmem:[#allocation2 + $0x360] ss:$8 sps:$4 sm:$0xff]   ;;  %v9681_v10 = vld [vmem:[#allocation2 + $0x374] ss:$8 sps:$4 sm:$0xff]   ;;  %v9652_v35 = vld [vmem:[#allocation2 + $0x410] ss:$8 sps:$4 sm:$0xff]  }
 0x5c2   : > { %7872 = vmatpush1.bf16.msra.mxu0 %v9580_v53  ;;  %v9660_v39 = vld [vmem:[#allocation2 + $0x424] ss:$8 sps:$4 sm:$0xff]   ;;  %v9679_v37 = vld [vmem:[#allocation2 + $0x370] ss:$8 sps:$4 sm:$0xff]   ;;  %v9658_v53 = vld [vmem:[#allocation2 + $0x420] ss:$8 sps:$4 sm:$0xff]  }
 0x5c3   : > { %7873 = vmatprep.subr.bf16.mxu0 %v9588_v51  ;;  %v9687_v4 = vld [vmem:[#allocation2 + $0x384] ss:$8 sps:$4 sm:$0xff]   ;;  %v9666_v51 = vld [vmem:[#allocation2 + $0x434] ss:$8 sps:$4 sm:$0xff]   ;;  %v9715_v38 = vld [vmem:[#allocation2 + $0x3d0] ss:$8 sps:$4 sm:$0xff]  }
 0x5c4   : > { %7843 = vmatpush1.bf16.msra.mxu1 %v9607_v28  ;;  %v9685_v28 = vld [vmem:[#allocation2 + $0x380] ss:$8 sps:$4 sm:$0xff]   ;;  %v9717_v9 = vld [vmem:[#allocation2 + $0x3d4] ss:$8 sps:$4 sm:$0xff]  }
 0x5c5   : > { %7844 = vmatprep.subr.bf16.mxu1 %v9615_v17  ;;  %v9693_v17 = vld [vmem:[#allocation2 + $0x394] ss:$8 sps:$4 sm:$0xff]  }
 0x5c6   : > { %7874 = vmatpush1.bf16.msra.mxu0 %v9586_v1  ;;  %v9664_v1 = vld [vmem:[#allocation2 + $0x430] ss:$8 sps:$4 sm:$0xff]   ;;  %v9753_v21 = vld [vmem:[#allocation2 + $0x534] ss:$8 sps:$4 sm:$0xff]  }
 0x5c7   : > { %7875 = vmatprep.subr.bf16.mxu0 %v9594_v27  ;;  %v9672_v27 = vld [vmem:[#allocation2 + $0x444] ss:$8 sps:$4 sm:$0xff]  }
 0x5c8   : > { %7845 = vmatpush1.bf16.msra.mxu1 %v9613_v36  ;;  %v9691_v36 = vld [vmem:[#allocation2 + $0x390] ss:$8 sps:$4 sm:$0xff]  }
 0x5c9   : > { %7846 = vmatprep.subr.bf16.mxu1 %v9621_v47  ;;  %v9699_v47 = vld [vmem:[#allocation2 + $0x3a4] ss:$8 sps:$4 sm:$0xff]  }
 0x5ca   : > { %7876 = vmatpush1.bf16.msra.mxu0 %v9592_v11  ;;  %v9670_v11 = vld [vmem:[#allocation2 + $0x440] ss:$8 sps:$4 sm:$0xff]  }
 0x5cb   : > { %7877 = vmatprep.subr.bf16.mxu0 %v9600_v48  ;;  %v9678_v48 = vld [vmem:[#allocation2 + $0x454] ss:$8 sps:$4 sm:$0xff]  }
 0x5cc   : > { %7847 = vmatpush1.bf16.msra.mxu1 %v9619_v45  ;;  %v9697_v45 = vld [vmem:[#allocation2 + $0x3a0] ss:$8 sps:$4 sm:$0xff]  }
 0x5cd   : > { %7848 = vmatprep.subr.bf16.mxu1 %v9627_v60  ;;  %v9705_v60 = vld [vmem:[#allocation2 + $0x3b4] ss:$8 sps:$4 sm:$0xff]  }
 0x5ce   : > { %7878 = vmatpush1.bf16.msra.mxu0 %v9598_v25  ;;  %v9676_v25 = vld [vmem:[#allocation2 + $0x450] ss:$8 sps:$4 sm:$0xff]  }
 0x5cf   : > { %7879 = vmatprep.subr.bf16.mxu0 %v9606_v61  ;;  %v9684_v61 = vld [vmem:[#allocation2 + $0x464] ss:$8 sps:$4 sm:$0xff]  }
 0x5d0   : > { %7849 = vmatpush1.bf16.msra.mxu1 %v9625_v63  ;;  %v9703_v63 = vld [vmem:[#allocation2 + $0x3b0] ss:$8 sps:$4 sm:$0xff]  }
 0x5d1   : > { %7850 = vmatprep.subr.bf16.mxu1 %v9633_v32  ;;  %v9711_v32 = vld [vmem:[#allocation2 + $0x3c4] ss:$8 sps:$4 sm:$0xff]  }
 0x5d2   : > { %7880 = vmatpush1.bf16.msra.mxu0 %v9604_v33  ;;  %v9682_v33 = vld [vmem:[#allocation2 + $0x460] ss:$8 sps:$4 sm:$0xff]  }
 0x5d3   : > { %7881 = vmatprep.subr.bf16.mxu0 %v9612_v57  ;;  %v9690_v57 = vld [vmem:[#allocation2 + $0x474] ss:$8 sps:$4 sm:$0xff]  }
 0x5d4   : > { %7851 = vmatpush1.bf16.msra.mxu1 %v9631_v34  ;;  %v9709_v34 = vld [vmem:[#allocation2 + $0x3c0] ss:$8 sps:$4 sm:$0xff]  }
 0x5d5   : > { %7902 = vmatprep.subr.bf16.mxu1 %v9639_v13  ;;  %v9688_v13 = vld [vmem:[#allocation2 + $0x470] ss:$8 sps:$4 sm:$0xff]  }
 0x5d6   : > { %7882 = vmatpush1.bf16.msra.mxu0 %v9610_v8  ;;  %v9696_v8 = vld [vmem:[#allocation2 + $0x484] ss:$8 sps:$4 sm:$0xff]  }
 0x5d7   : > { %7883 = vmatprep.subr.bf16.mxu0 %v9618_v30  ;;  %8948 = vmatmul.mubr.msk.bf16.vlgmr.msra.gmra.mrb[84].mxu1 %vm12422_vm15, %v8947_v42  ;;  %v9723_v30 = vld [vmem:[#allocation2 + $0x3e4] ss:$8 sps:$4 sm:$0xff]   ;;  %v9702_v42 = vld [vmem:[#allocation2 + $0x494] ss:$8 sps:$4 sm:$0xff]  }
 0x5d8   : > { %7903 = vmatpush1.bf16.msra.mxu1 %v9637_v24  ;;  %8957 = vmatprep.mubr.msk.bf16.mxu1 %vm12422_vm15, %v8956_v18  ;;  %v9694_v24 = vld [vmem:[#allocation2 + $0x480] ss:$8 sps:$4 sm:$0xff]   ;;  %v9700_v18 = vld [vmem:[#allocation2 + $0x490] ss:$8 sps:$4 sm:$0xff]  }
 0x5d9   : > { %7904 = vmatprep.subr.bf16.mxu1 %v9645_v40  ;;  %v9721_v40 = vld [vmem:[#allocation2 + $0x3e0] ss:$8 sps:$4 sm:$0xff]  }
 0x5da   : > { %7884 = vmatpush1.bf16.msra.mxu0 %v9616_v19  ;;  %v9729_v19 = vld [vmem:[#allocation2 + $0x3f4] ss:$8 sps:$4 sm:$0xff]  }
 0x5db   : > { %7885 = vmatprep.subr.bf16.mxu0 %v9624_v16  ;;  %v9708_v16 = vld [vmem:[#allocation2 + $0x4a4] ss:$8 sps:$4 sm:$0xff]  }
 0x5dc   : > { %7905 = vmatpush1.bf16.msra.mxu1 %v9643_v12  ;;  %v9727_v12 = vld [vmem:[#allocation2 + $0x3f0] ss:$8 sps:$4 sm:$0xff]  }
 0x5dd   : > { %7906 = vmatprep.subr.bf16.mxu1 %v9651_v23  ;;  %v6071_v23 = vrot.slane %v12456_v43, 2  ;;  %v9739_v43 = vld [vmem:[#allocation2 + $0x510] ss:$8 sps:$4 sm:$0xff]  }
 0x5de   : > { %7886 = vmatpush1.bf16.msra.mxu0 %v9622_v41  ;;  %v9735_v41 = vld [vmem:[#allocation2 + $0x504] ss:$8 sps:$4 sm:$0xff]  }
 0x5df   : > { %7887 = vmatprep.subr.bf16.mxu0 %v9630_v62  ;;  %v9706_v62 = vld [vmem:[#allocation2 + $0x4a0] ss:$8 sps:$4 sm:$0xff]  }
 0x5e0   : > { %7907 = vmatpush1.bf16.msra.mxu1 %v9649_v26  ;;  %v6080_v26 = vrot.slane %v12474_v44, 3 }
 0x5e1   : > { %7908 = vmatprep.subr.bf16.mxu1 %v9657_v46  ;;  %v9714_v46 = vld [vmem:[#allocation2 + $0x4b4] ss:$8 sps:$4 sm:$0xff]  }
 0x5e2   : > { %7888 = vmatpush1.bf16.msra.mxu0 %v9628_v2  ;;  %v9733_v2 = vld [vmem:[#allocation2 + $0x500] ss:$8 sps:$4 sm:$0xff]  }
 0x5e3   : > { %7889 = vmatprep.subr.bf16.mxu0 %v9636_v50  ;;  %v8959_v50 = vpack.c.bf16 %v6071_v23, %v6071_v23  ;;  %v9784_v23 = vld [vmem:[#allocation2 + $0x670] ss:$8 sps:$4 sm:$0xff]  }
 0x5e4   : > { %7909 = vmatpush1.bf16.msra.mxu1 %v9655_v3  ;;  %v9741_v3 = vld [vmem:[#allocation2 + $0x514] ss:$8 sps:$4 sm:$0xff]  }
 0x5e5   : > { %7910 = vmatprep.subr.bf16.mxu1 %v9663_v6  ;;  %v9712_v6 = vld [vmem:[#allocation2 + $0x4b0] ss:$8 sps:$4 sm:$0xff]  }
 0x5e6   : > { %7890 = vmatpush1.bf16.msra.mxu0 %v9634_v54  ;;  %v8968_v54 = vpack.c.bf16 %v6080_v26, %v6080_v26  ;;  %v9819_v26 = vld [vmem:[#allocation2 + $0x5e4] ss:$8 sps:$4 sm:$0xff]  }
 0x5e7   : > { %7891 = vmatprep.subr.bf16.mxu0 %v9642_v29  ;;  %v9720_v29 = vld [vmem:[#allocation2 + $0x4c4] ss:$8 sps:$4 sm:$0xff]  }
 0x5e8   : > { %7911 = vmatpush1.bf16.msra.mxu1 %v9661_v15  ;;  %v9747_v15 = vld [vmem:[#allocation2 + $0x524] ss:$8 sps:$4 sm:$0xff]  }
 0x5e9   : > { %7912 = vmatprep.subr.bf16.mxu1 %v9669_v49  ;;  %v9718_v49 = vld [vmem:[#allocation2 + $0x4c0] ss:$8 sps:$4 sm:$0xff]  }
 0x5ea   : > { %7892 = vmatpush1.bf16.msra.mxu0 %v9640_v7  ;;  %v9726_v7 = vld [vmem:[#allocation2 + $0x4d4] ss:$8 sps:$4 sm:$0xff]  }
 0x5eb   : > { %7943 = vmatprep.subr.bf16.mxu0 %v9648_v52  ;;  %v9745_v52 = vld [vmem:[#allocation2 + $0x520] ss:$8 sps:$4 sm:$0xff]  }
 0x5ec   : > { %7913 = vmatpush1.bf16.msra.mxu1 %v9667_v0  ;;  %v9724_v0 = vld [vmem:[#allocation2 + $0x4d0] ss:$8 sps:$4 sm:$0xff]  }
 0x5ed   : > { %8954 = vmatmul.mubr.msk.bf16.vlgmr.msra.gmra.mrb[96].mxu0 %vm12422_vm15, %v8953_v20  ;;  %7914 = vmatprep.subr.bf16.mxu1 %v9675_v59  ;;  %v9732_v59 = vld [vmem:[#allocation2 + $0x4e4] ss:$8 sps:$4 sm:$0xff]  }
 0x5ee   : > { %7944 = vmatpush1.bf16.msra.mxu0 %v9646_v22  ;;  %8963 = vmatprep.mubr.msk.bf16.mxu0 %vm12422_vm15, %v8962_v55  ;;  %v9751_v22 = vld [vmem:[#allocation2 + $0x530] ss:$8 sps:$4 sm:$0xff]   ;;  %v9759_v20 = vld [vmem:[#allocation2 + $0x544] ss:$8 sps:$4 sm:$0xff]   ;;  %v9738_v55 = vld [vmem:[#allocation2 + $0x4f4] ss:$8 sps:$4 sm:$0xff]  }
 0x5ef   : > { %7945 = vmatprep.subr.bf16.mxu0 %v9654_v31  ;;  %v9730_v31 = vld [vmem:[#allocation2 + $0x4e0] ss:$8 sps:$4 sm:$0xff]  }
 0x5f0   : > { %7915 = vmatpush1.bf16.msra.mxu1 %v9673_v58  ;;  %v9757_v58 = vld [vmem:[#allocation2 + $0x540] ss:$8 sps:$4 sm:$0xff]  }
 0x5f1   : > { %7916 = vmatprep.subr.bf16.mxu1 %v9681_v10  ;;  %v9765_v10 = vld [vmem:[#allocation2 + $0x554] ss:$8 sps:$4 sm:$0xff]  }
 0x5f2   : > { %7946 = vmatpush1.bf16.msra.mxu0 %v9652_v35  ;;  %v9736_v35 = vld [vmem:[#allocation2 + $0x4f0] ss:$8 sps:$4 sm:$0xff]  }
 0x5f3   : > { %7947 = vmatprep.subr.bf16.mxu0 %v9660_v39  ;;  %v9744_v39 = vld [vmem:[#allocation2 + $0x604] ss:$8 sps:$4 sm:$0xff]  }
 0x5f4   : > { %7917 = vmatpush1.bf16.msra.mxu1 %v9679_v37  ;;  %v6083_v37 = vrot.slane %v12479_v56, 1 }
 0x5f5   : > { %7918 = vmatprep.subr.bf16.mxu1 %v9687_v4  ;;  %v9763_v4 = vld [vmem:[#allocation2 + $0x550] ss:$8 sps:$4 sm:$0xff]  }
 0x5f6   : > { %7948 = vmatpush1.bf16.msra.mxu0 %v9658_v53  ;;  %v9771_v53 = vld [vmem:[#allocation2 + $0x564] ss:$8 sps:$4 sm:$0xff]  }
 0x5f7   : > { %7949 = vmatprep.subr.bf16.mxu0 %v9666_v51  ;;  %v9742_v51 = vld [vmem:[#allocation2 + $0x600] ss:$8 sps:$4 sm:$0xff]  }
 0x5f8   : > { %7919 = vmatpush1.bf16.msra.mxu1 %v9685_v28  ;;  %v8965_v28 = vpack.c.bf16 %v12474_v44, %v12474_v44 }
 0x5f9   : > { %7920 = vmatprep.subr.bf16.mxu1 %v9693_v17  ;;  %v9750_v17 = vld [vmem:[#allocation2 + $0x614] ss:$8 sps:$4 sm:$0xff]  }
 0x5fa   : > { %7950 = vmatpush1.bf16.msra.mxu0 %v9664_v1  ;;  %v8974_v1 = vpack.c.bf16 %v6083_v37, %v6083_v37  ;;  %v9820_v37 = vld [vmem:[#allocation2 + $0x6d0] ss:$8 sps:$4 sm:$0xff]  }
 0x5fb   : > { %7951 = vmatprep.subr.bf16.mxu0 %v9672_v27  ;;  %v9769_v27 = vld [vmem:[#allocation2 + $0x560] ss:$8 sps:$4 sm:$0xff]  }
 0x5fc   : > { %7921 = vmatpush1.bf16.msra.mxu1 %v9691_v36  ;;  %v9777_v36 = vld [vmem:[#allocation2 + $0x574] ss:$8 sps:$4 sm:$0xff]  }
 0x5fd   : > { %7922 = vmatprep.subr.bf16.mxu1 %v9699_v47  ;;  %v9748_v47 = vld [vmem:[#allocation2 + $0x610] ss:$8 sps:$4 sm:$0xff]  }
 0x5fe   : > { %7952 = vmatpush1.bf16.msra.mxu0 %v9670_v11  ;;  %v9756_v11 = vld [vmem:[#allocation2 + $0x624] ss:$8 sps:$4 sm:$0xff]  }
 0x5ff   : > { %7953 = vmatprep.subr.bf16.mxu0 %v9678_v48  ;;  %v9775_v48 = vld [vmem:[#allocation2 + $0x570] ss:$8 sps:$4 sm:$0xff]  }
 0x600   : > { %7923 = vmatpush1.bf16.msra.mxu1 %v9697_v45  ;;  %v9783_v45 = vld [vmem:[#allocation2 + $0x584] ss:$8 sps:$4 sm:$0xff]  }
 0x601   : > { %7924 = vmatprep.subr.bf16.mxu1 %v9705_v60  ;;  %v9754_v60 = vld [vmem:[#allocation2 + $0x620] ss:$8 sps:$4 sm:$0xff]  }
 0x602   : > { %7954 = vmatpush1.bf16.msra.mxu0 %v9676_v25  ;;  %v9762_v25 = vld [vmem:[#allocation2 + $0x634] ss:$8 sps:$4 sm:$0xff]  }
 0x603   : > { %7955 = vmatprep.subr.bf16.mxu0 %v9684_v61  ;;  %v9781_v61 = vld [vmem:[#allocation2 + $0x580] ss:$8 sps:$4 sm:$0xff]  }
 0x604   : > { %7925 = vmatpush1.bf16.msra.mxu1 %v9703_v63  ;;  %v9789_v63 = vld [vmem:[#allocation2 + $0x594] ss:$8 sps:$4 sm:$0xff]  }
 0x605   : > { %7926 = vmatprep.subr.bf16.mxu1 %v9711_v32  ;;  %v9760_v32 = vld [vmem:[#allocation2 + $0x630] ss:$8 sps:$4 sm:$0xff]  }
 0x606   : > { %7956 = vmatpush1.bf16.msra.mxu0 %v9682_v33  ;;  %v9768_v33 = vld [vmem:[#allocation2 + $0x644] ss:$8 sps:$4 sm:$0xff]  }
 0x607   : > { %7957 = vmatprep.subr.bf16.mxu0 %v9690_v57  ;;  %v9787_v57 = vld [vmem:[#allocation2 + $0x590] ss:$8 sps:$4 sm:$0xff]  }
 0x608   : > { %7927 = vmatpush1.bf16.msra.mxu1 %v9709_v34  ;;  %v9795_v34 = vld [vmem:[#allocation2 + $0x5a4] ss:$8 sps:$4 sm:$0xff]  }
 0x609   : > { %7928 = vmatprep.subr.bf16.mxu1 %v9717_v9  ;;  %v9766_v9 = vld [vmem:[#allocation2 + $0x640] ss:$8 sps:$4 sm:$0xff]  }
 0x60a   : > { %7958 = vmatpush1.bf16.msra.mxu0 %v9688_v13  ;;  %v9774_v13 = vld [vmem:[#allocation2 + $0x654] ss:$8 sps:$4 sm:$0xff]  }
 0x60b   : > { %7959 = vmatprep.subr.bf16.mxu0 %v9696_v8  ;;  %v9793_v8 = vld [vmem:[#allocation2 + $0x5a0] ss:$8 sps:$4 sm:$0xff]  }
 0x60c   : > { %7929 = vmatpush1.bf16.msra.mxu1 %v9715_v38  ;;  %v9801_v38 = vld [vmem:[#allocation2 + $0x5b4] ss:$8 sps:$4 sm:$0xff]  }
 0x60d   : > { %7930 = vmatprep.subr.bf16.mxu1 %v9723_v30  ;;  %v9772_v30 = vld [vmem:[#allocation2 + $0x650] ss:$8 sps:$4 sm:$0xff]  }
 0x60e   : > { %7960 = vmatpush1.bf16.msra.mxu0 %v9694_v24  ;;  %v9780_v24 = vld [vmem:[#allocation2 + $0x664] ss:$8 sps:$4 sm:$0xff]  }
 0x60f   : > { %7961 = vmatprep.subr.bf16.mxu0 %v9702_v42  ;;  %v9799_v42 = vld [vmem:[#allocation2 + $0x5b0] ss:$8 sps:$4 sm:$0xff]  }
 0x610   : > { %7931 = vmatpush1.bf16.msra.mxu1 %v9721_v40  ;;  %v9807_v40 = vld [vmem:[#allocation2 + $0x5c4] ss:$8 sps:$4 sm:$0xff]  }
 0x611   : > { %7932 = vmatprep.subr.bf16.mxu1 %v9729_v19  ;;  %v9778_v19 = vld [vmem:[#allocation2 + $0x660] ss:$8 sps:$4 sm:$0xff]  }
 0x612   : > { %7962 = vmatpush1.bf16.msra.mxu0 %v9700_v18  ;;  %v9786_v18 = vld [vmem:[#allocation2 + $0x674] ss:$8 sps:$4 sm:$0xff]  }
 0x613   : > { %7963 = vmatprep.subr.bf16.mxu0 %v9708_v16  ;;  %v9805_v16 = vld [vmem:[#allocation2 + $0x5c0] ss:$8 sps:$4 sm:$0xff]  }
 0x614   : > { %7933 = vmatpush1.bf16.msra.mxu1 %v9727_v12  ;;  %v9813_v12 = vld [vmem:[#allocation2 + $0x5d4] ss:$8 sps:$4 sm:$0xff]  }
 0x615   : > { %7984 = vmatprep.subr.bf16.mxu1 %v9735_v41  ;;  %v9792_v41 = vld [vmem:[#allocation2 + $0x684] ss:$8 sps:$4 sm:$0xff]  }
 0x616   : > { %7964 = vmatpush1.bf16.msra.mxu0 %v9706_v62  ;;  %v9811_v62 = vld [vmem:[#allocation2 + $0x5d0] ss:$8 sps:$4 sm:$0xff]  }
 0x617   : > { %7965 = vmatprep.subr.bf16.mxu0 %v9714_v46  ;;  %8960 = vmatmul.mubr.msk.bf16.vlgmr.msra.gmra.mrb[88].mxu1 %vm12422_vm15, %v8959_v50  ;;  %v9790_v46 = vld [vmem:[#allocation2 + $0x680] ss:$8 sps:$4 sm:$0xff]  }
 0x618   : > { %7985 = vmatpush1.bf16.msra.mxu1 %v9733_v2  ;;  %8969 = vmatprep.mubr.msk.bf16.mxu1 %vm12422_vm15, %v8968_v54  ;;  %v9798_v2 = vld [vmem:[#allocation2 + $0x694] ss:$8 sps:$4 sm:$0xff]   ;;  %v9817_v50 = vld [vmem:[#allocation2 + $0x5e0] ss:$8 sps:$4 sm:$0xff]   ;;  %v9804_v54 = vld [vmem:[#allocation2 + $0x6a4] ss:$8 sps:$4 sm:$0xff]  }
 0x619   : > { %7986 = vmatprep.subr.bf16.mxu1 %v9741_v3  ;;  %v9825_v3 = vld [vmem:[#allocation2 + $0x5f4] ss:$8 sps:$4 sm:$0xff]  }
 0x61a   : > { %7966 = vmatpush1.bf16.msra.mxu0 %v9712_v6  ;;  %v9796_v6 = vld [vmem:[#allocation2 + $0x690] ss:$8 sps:$4 sm:$0xff]  }
 0x61b   : > { %7967 = vmatprep.subr.bf16.mxu0 %v9720_v29  ;;  %v9823_v29 = vld [vmem:[#allocation2 + $0x5f0] ss:$8 sps:$4 sm:$0xff]  }
 0x61c   : > { %7987 = vmatpush1.bf16.msra.mxu1 %v9739_v43  ;;  %v6078_v43 = vrot.slane %v12474_v44, 2  ;;  %v9835_v44 = vld [vmem:[#allocation2 + $0x710] ss:$8 sps:$4 sm:$0xff]  }
 0x61d   : > { %7988 = vmatprep.subr.bf16.mxu1 %v9747_v15  ;;  %v9831_v15 = vld [vmem:[#allocation2 + $0x704] ss:$8 sps:$4 sm:$0xff]  }
 0x61e   : > { %7968 = vmatpush1.bf16.msra.mxu0 %v9718_v49  ;;  %v9802_v49 = vld [vmem:[#allocation2 + $0x6a0] ss:$8 sps:$4 sm:$0xff]  }
 0x61f   : > { %7969 = vmatprep.subr.bf16.mxu0 %v9726_v7  ;;  %v6087_v7 = vrot.slane %v12479_v56, 3 }
 0x620   : > { %7989 = vmatpush1.bf16.msra.mxu1 %v9745_v52  ;;  %v9810_v52 = vld [vmem:[#allocation2 + $0x6b4] ss:$8 sps:$4 sm:$0xff]  }
 0x621   : > { %7990 = vmatprep.subr.bf16.mxu1 %v9753_v21  ;;  %v9829_v21 = vld [vmem:[#allocation2 + $0x700] ss:$8 sps:$4 sm:$0xff]  }
 0x622   : > { %7970 = vmatpush1.bf16.msra.mxu0 %v9724_v0  ;;  %v8971_v0 = vpack.c.bf16 %v6078_v43, %v6078_v43 }
 0x623   : > { %7971 = vmatprep.subr.bf16.mxu0 %v9732_v59  ;;  %v9837_v59 = vld [vmem:[#allocation2 + $0x714] ss:$8 sps:$4 sm:$0xff]  }
 0x624   : > { %7991 = vmatpush1.bf16.msra.mxu1 %v9751_v22  ;;  %v9808_v22 = vld [vmem:[#allocation2 + $0x6b0] ss:$8 sps:$4 sm:$0xff]  }
 0x625   : > { %7992 = vmatprep.subr.bf16.mxu1 %v9759_v20  ;;  %v8980_v20 = vpack.c.bf16 %v6087_v7, %v6087_v7 }
 0x626   : > { %7972 = vmatpush1.bf16.msra.mxu0 %v9730_v31  ;;  %v9816_v31 = vld [vmem:[#allocation2 + $0x6c4] ss:$8 sps:$4 sm:$0xff]  }
 0x627   : > { %7973 = vmatprep.subr.bf16.mxu0 %v9738_v55  ;;  %v9840_v55 = vld [vmem:[#allocation2 + $0x724] ss:$8 sps:$4 sm:$0xff]  }
 0x628   : > { %7993 = vmatpush1.bf16.msra.mxu1 %v9757_v58  ;;  %v9814_v58 = vld [vmem:[#allocation2 + $0x6c0] ss:$8 sps:$4 sm:$0xff]  }
 0x629   : > { %7994 = vmatprep.subr.bf16.mxu1 %v9765_v10  ;;  %v9822_v10 = vld [vmem:[#allocation2 + $0x6d4] ss:$8 sps:$4 sm:$0xff]  }
 0x62a   : > { %7974 = vmatpush1.bf16.msra.mxu0 %v9736_v35  ;;  %v9838_v35 = vld [vmem:[#allocation2 + $0x720] ss:$8 sps:$4 sm:$0xff]  }
 0x62b   : > { %8025 = vmatprep.subr.bf16.mxu0 %v9744_v39  ;;  %v9843_v39 = vld [vmem:[#allocation2 + $0x734] ss:$8 sps:$4 sm:$0xff]  }
 0x62c   : > { %7995 = vmatpush1.bf16.msra.mxu1 %v9763_v4  ;;  %v9828_v4 = vld [vmem:[#allocation2 + $0x6e4] ss:$8 sps:$4 sm:$0xff]  }
 0x62d   : > { %8966 = vmatmul.mubr.msk.bf16.vlgmr.msra.gmra.mrb[100].mxu0 %vm12422_vm15, %v8965_v28  ;;  %7996 = vmatprep.subr.bf16.mxu1 %v9771_v53  ;;  %v9841_v53 = vld [vmem:[#allocation2 + $0x730] ss:$8 sps:$4 sm:$0xff]   ;;  %v9826_v28 = vld [vmem:[#allocation2 + $0x6e0] ss:$8 sps:$4 sm:$0xff]  }
 0x62e   : > { %8026 = vmatpush1.bf16.msra.mxu0 %v9742_v51  ;;  %8975 = vmatprep.mubr.msk.bf16.mxu0 %vm12422_vm15, %v8974_v1  ;;  %v9846_v51 = vld [vmem:[#allocation2 + $0x744] ss:$8 sps:$4 sm:$0xff]   ;;  %v9844_v1 = vld [vmem:[#allocation2 + $0x740] ss:$8 sps:$4 sm:$0xff]  }
 0x62f   : > { %8027 = vmatprep.subr.bf16.mxu0 %v9750_v17  ;;  %v9834_v17 = vld [vmem:[#allocation2 + $0x6f4] ss:$8 sps:$4 sm:$0xff]  }
 0x630   : > { %7997 = vmatpush1.bf16.msra.mxu1 %v9769_v27  ;;  %v9849_v27 = vld [vmem:[#allocation2 + $0x754] ss:$8 sps:$4 sm:$0xff]  }
 0x631   : > { %7998 = vmatprep.subr.bf16.mxu1 %v9777_v36  ;;  %v9832_v36 = vld [vmem:[#allocation2 + $0x6f0] ss:$8 sps:$4 sm:$0xff]  }
 0x632   : > { %8028 = vmatpush1.bf16.msra.mxu0 %v9748_v47  ;;  %v9847_v47 = vld [vmem:[#allocation2 + $0x750] ss:$8 sps:$4 sm:$0xff]  }
 0x633   : > { %8029 = vmatprep.subr.bf16.mxu0 %v9756_v11  ;;  %v9852_v11 = vld [vmem:[#allocation2 + $0x764] ss:$8 sps:$4 sm:$0xff]  }
 0x634   : > { %7999 = vmatpush1.bf16.msra.mxu1 %v9775_v48 }
 0x635   : > { %8000 = vmatprep.subr.bf16.mxu1 %v9783_v45  ;;  %v8977_v45 = vpack.c.bf16 %v12479_v56, %v12479_v56 }
 0x636   : > { %8030 = vmatpush1.bf16.msra.mxu0 %v9754_v60 }
 0x637   : > { %8031 = vmatprep.subr.bf16.mxu0 %v9762_v25 }
 0x638   : > { %8001 = vmatpush1.bf16.msra.mxu1 %v9781_v61  ;;  %v9850_v61 = vld [vmem:[#allocation2 + $0x760] ss:$8 sps:$4 sm:$0xff]  }
 0x639   : > { %8002 = vmatprep.subr.bf16.mxu1 %v9789_v63 }
 0x63a   : > { %8032 = vmatpush1.bf16.msra.mxu0 %v9760_v32  ;;  %v9855_v32 = vld [vmem:[#allocation2 + $0x774] ss:$8 sps:$4 sm:$0xff]  }
 0x63b   : > { %8033 = vmatprep.subr.bf16.mxu0 %v9768_v33  ;;  %v9853_v33 = vld [vmem:[#allocation2 + $0x770] ss:$8 sps:$4 sm:$0xff]  }
 0x63c   : > { %8003 = vmatpush1.bf16.msra.mxu1 %v9787_v57  ;;  %v9858_v57 = vld [vmem:[#allocation2 + $0x784] ss:$8 sps:$4 sm:$0xff]  }
 0x63d   : > { %8004 = vmatprep.subr.bf16.mxu1 %v9795_v34  ;;  %v9856_v34 = vld [vmem:[#allocation2 + $0x780] ss:$8 sps:$4 sm:$0xff]  }
 0x63e   : > { %8034 = vmatpush1.bf16.msra.mxu0 %v9766_v9  ;;  %v9861_v9 = vld [vmem:[#allocation2 + $0x794] ss:$8 sps:$4 sm:$0xff]  }
 0x63f   : > { %8035 = vmatprep.subr.bf16.mxu0 %v9774_v13  ;;  %v9859_v13 = vld [vmem:[#allocation2 + $0x790] ss:$8 sps:$4 sm:$0xff]  }
 0x640   : > { %8005 = vmatpush1.bf16.msra.mxu1 %v9793_v8  ;;  %v9864_v8 = vld [vmem:[#allocation2 + $0x7a4] ss:$8 sps:$4 sm:$0xff]  }
 0x641   : > { %8006 = vmatprep.subr.bf16.mxu1 %v9801_v38  ;;  %v9862_v38 = vld [vmem:[#allocation2 + $0x7a0] ss:$8 sps:$4 sm:$0xff]  }
 0x642   : > { %8036 = vmatpush1.bf16.msra.mxu0 %v9772_v30  ;;  %v9867_v30 = vld [vmem:[#allocation2 + $0x7b4] ss:$8 sps:$4 sm:$0xff]  }
 0x643   : > { %8037 = vmatprep.subr.bf16.mxu0 %v9780_v24 }
 0x644   : > { %8007 = vmatpush1.bf16.msra.mxu1 %v9799_v42  ;;  %v9865_v42 = vld [vmem:[#allocation2 + $0x7b0] ss:$8 sps:$4 sm:$0xff]  }
 0x645   : > { %8008 = vmatprep.subr.bf16.mxu1 %v9807_v40 }
 0x646   : > { %8038 = vmatpush1.bf16.msra.mxu0 %v9778_v19 }
 0x647   : > { %8039 = vmatprep.subr.bf16.mxu0 %v9786_v18  ;;  %v9870_v18 = vld [vmem:[#allocation2 + $0x7c4] ss:$8 sps:$4 sm:$0xff]  }
 0x648   : > { %8009 = vmatpush1.bf16.msra.mxu1 %v9805_v16 }
 0x649   : > { %8010 = vmatprep.subr.bf16.mxu1 %v9813_v12 }
 0x64a   : > { %8040 = vmatpush1.bf16.msra.mxu0 %v9784_v23 }
 0x64b   : > { %8041 = vmatprep.subr.bf16.mxu0 %v9792_v41  ;;  %v9868_v41 = vld [vmem:[#allocation2 + $0x7c0] ss:$8 sps:$4 sm:$0xff]  }
 0x64c   : > { %8011 = vmatpush1.bf16.msra.mxu1 %v9811_v62  ;;  %v9873_v62 = vld [vmem:[#allocation2 + $0x7d4] ss:$8 sps:$4 sm:$0xff]  }
 0x64d   : > { %8012 = vmatprep.subr.bf16.mxu1 %v9819_v26  ;;  %v9871_v26 = vld [vmem:[#allocation2 + $0x7d0] ss:$8 sps:$4 sm:$0xff]  }
 0x64e   : > { %8042 = vmatpush1.bf16.msra.mxu0 %v9790_v46  ;;  %v9876_v46 = vld [vmem:[#allocation2 + $0x7e4] ss:$8 sps:$4 sm:$0xff]  }
 0x64f   : > { %8043 = vmatprep.subr.bf16.mxu0 %v9798_v2  ;;  %v9874_v2 = vld [vmem:[#allocation2 + $0x7e0] ss:$8 sps:$4 sm:$0xff]  }
 0x650   : > { %8013 = vmatpush1.bf16.msra.mxu1 %v9817_v50  ;;  %v9879_v50 = vld [vmem:[#allocation2 + $0x7f4] ss:$8 sps:$4 sm:$0xff]  }
 0x651   : > { %8014 = vmatprep.subr.bf16.mxu1 %v9825_v3  ;;  %v9877_v3 = vld [vmem:[#allocation2 + $0x7f0] ss:$8 sps:$4 sm:$0xff]  }
 0x652   : > { %8044 = vmatpush1.bf16.msra.mxu0 %v9796_v6  ;;  %v6085_v6 = vrot.slane %v12479_v56, 2  ;;  %v9880_v56 = vld [vmem:[%s12636_s13 + $0x40] sm:$0xff]  }
 0x653   : > { %8045 = vmatprep.subr.bf16.mxu0 %v9804_v54 }
 0x654   : > { %8015 = vmatpush1.bf16.msra.mxu1 %v9823_v29  ;;  %v8983_v54 = vpack.c.bf16 %v6085_v6, %v6085_v6 }
 0x655   : > { %8066 = vmatprep.subr.bf16.mxu1 %v9831_v15 }
 0x656   : > { %8046 = vmatpush1.bf16.msra.mxu0 %v9802_v49 }
 0x657   : > { %8047 = vmatprep.subr.bf16.mxu0 %v9810_v52  ;;  %8972 = vmatmul.mubr.msk.bf16.vlgmr.msra.gmra.mrb[92].mxu1 %vm12422_vm15, %v8971_v0 }
 0x658   : > { %8067 = vmatpush1.bf16.msra.mxu1 %v9829_v21  ;;  %8981 = vmatprep.mubr.msk.bf16.mxu1 %vm12422_vm15, %v8980_v20 }
 0x659   : > { %8068 = vmatprep.subr.bf16.mxu1 %v9837_v59 }
 0x65a   : > { %8048 = vmatpush1.bf16.msra.mxu0 %v9808_v22 }
 0x65b   : > { %8049 = vmatprep.subr.bf16.mxu0 %v9816_v31 }
 0x65c   : > { %8069 = vmatpush1.bf16.msra.mxu1 %v9835_v44  ;;  %v9882_v44 = vld [vmem:[%s12636_s13 + $0x48] sm:$0xff]  }
 0x65d   : > { %8070 = vmatprep.subr.bf16.mxu1 %v9840_v55  ;;  %v9883_v55 = vld [vmem:[%s12636_s13 + $0x8] sm:$0xff]  }
 0x65e   : > { %8050 = vmatpush1.bf16.msra.mxu0 %v9814_v58  ;;  %v9884_v58 = vld [vmem:[%s12636_s13 + $0x50] sm:$0xff]  }
 0x65f   : > { %8051 = vmatprep.subr.bf16.mxu0 %v9822_v10  ;;  %v9885_v10 = vld [vmem:[%s12636_s13 + $0x10] sm:$0xff]  }
 0x660   : > { %8071 = vmatpush1.bf16.msra.mxu1 %v9838_v35  ;;  %v9886_v35 = vld [vmem:[%s12636_s13 + $0x58] sm:$0xff]  }
 0x661   : > { %8072 = vmatprep.subr.bf16.mxu1 %v9843_v39  ;;  %v9887_v39 = vld [vmem:[%s12636_s13 + $0x18] sm:$0xff]  }
 0x662   : > { %8052 = vmatpush1.bf16.msra.mxu0 %v9820_v37  ;;  %v9888_v37 = vld [vmem:[%s12636_s13 + $0x60] sm:$0xff]  }
 0x663   : > { %8053 = vmatprep.subr.bf16.mxu0 %v9828_v4  ;;  %v9889_v4 = vld [vmem:[%s12636_s13 + $0x20] sm:$0xff]  }
 0x664   : > { %8073 = vmatpush1.bf16.msra.mxu1 %v9841_v53  ;;  %v9890_v53 = vld [vmem:[%s12636_s13 + $0x68] sm:$0xff]  }
 0x665   : > { %8074 = vmatprep.subr.bf16.mxu1 %v9846_v51 }
 0x666   : > { %8054 = vmatpush1.bf16.msra.mxu0 %v9826_v28 }
 0x667   : > { %8055 = vmatprep.subr.bf16.mxu0 %v9834_v17 }
 0x668   : > { %8075 = vmatpush1.bf16.msra.mxu1 %v9844_v1 }
 0x669   : > { %8076 = vmatprep.subr.bf16.mxu1 %v9849_v27 }
 0x66a   : > { %8056 = vmatpush1.bf16.msra.mxu0 %v9832_v36  ;;  %v6492_v48 = vpop.f32.mrb[80].mxu1 }
 0x66b   : > { %v6494_v60 = vpop.f32.mrb[81].mxu1  ;;  %9241 = vmatprep.subr.bf16.mxu0 %v9880_v56 }
 0x66c   : > { %8077 = vmatpush1.bf16.msra.mxu1 %v9847_v47  ;;  %v6496_v25 = vpop.f32.mrb[82].mxu1  ;;  %v9891_v47 = vld [vmem:[%s12636_s13 + $0x28] sm:$0xff]  }
 0x66d   : > { %8978 = vmatmul.mubr.msk.bf16.vlgmr.msra.gmra.mrb[104].mxu0 %vm12422_vm15, %v8977_v45  ;;  %v6497_v63 = vpop.f32.mrb[83].mxu1  ;;  %8078 = vmatprep.subr.bf16.mxu1 %v9852_v11  ;;  %v9892_v11 = vld [vmem:[%s12636_s13 + $0x70] sm:$0xff]   ;;  %v9894_v45 = vld [vmem:[%s12636_s13 + $0x78] sm:$0xff]  }
 0x66e   : > { %9242 = vmatpush3.bf16.msra.mxu0 %v9881_v14 }
 0x66f   : > { %9243 = vmatprep.subr.bf16.mxu0 %v9882_v44 }
 0x670   : > { %8079 = vmatpush1.bf16.msra.mxu1 %v9850_v61 }
 0x671   : > { %8080 = vmatprep.subr.bf16.mxu1 %v9855_v32 }
 0x672   : > { %9244 = vmatpush3.bf16.msra.mxu0 %v9883_v55 }
 0x673   : > { %9245 = vmatprep.subr.bf16.mxu0 %v9884_v58 }
 0x674   : > { %8081 = vmatpush1.bf16.msra.mxu1 %v9853_v33 }
 0x675   : > { %8082 = vmatprep.subr.bf16.mxu1 %v9858_v57 }
 0x676   : > { %9246 = vmatpush3.bf16.msra.mxu0 %v9885_v10 }
 0x677   : > { %9247 = vmatprep.subr.bf16.mxu0 %v9886_v35 }
 0x678   : > { %8083 = vmatpush1.bf16.msra.mxu1 %v9856_v34 }
 0x679   : > { %8084 = vmatprep.subr.bf16.mxu1 %v9861_v9 }
 0x67a   : > { %9248 = vmatpush3.bf16.msra.mxu0 %v9887_v39 }
 0x67b   : > { %9249 = vmatprep.subr.bf16.mxu0 %v9888_v37 }
 0x67c   : > { %8085 = vmatpush1.bf16.msra.mxu1 %v9859_v13 }
 0x67d   : > { %8086 = vmatprep.subr.bf16.mxu1 %v9864_v8 }
 0x67e   : > { %9250 = vmatpush3.bf16.msra.mxu0 %v9889_v4 }
 0x67f   : > { %9251 = vmatprep.subr.bf16.mxu0 %v9890_v53 }
 0x680   : > { %v7813_v24 = vpop.f32.mrb[92].mxu0  ;;  %8087 = vmatpush1.bf16.msra.mxu1 %v9862_v38 }
 0x681   : > { %v7814_v40 = vadd.f32 %v7813_v24, %v6492_v48  ;;  %v7815_v19 = vpop.f32.mrb[93].mxu0  ;;  %8088 = vmatprep.subr.bf16.mxu1 %v9867_v30  ;;  %v9893_v48 = vld [vmem:[%s12636_s13 + $0x30] sm:$0xff]  }
 0x682   : > { %v7816_v16 = vadd.f32 %v7815_v19, %v6494_v60  ;;  %v7817_v12 = vpop.f32.mrb[94].mxu0  ;;  %9252 = vmatpush3.bf16.msra.mxu0 %v9891_v47  ;;  %v9895_v60 = vld [vmem:[%s12636_s13 + $0x38] sm:$0xff]  }
 0x683   : > { %v7818_v23 = vpop.f32.mrb[95].mxu0  ;;  %9253 = vmatprep.subr.bf16.mxu0 %v9892_v11  ;;  %v8107_v12 = vld [vmem:[%s12635_s12] sm:$0x3] }
 0x684   : > { %8089 = vmatpush1.bf16.msra.mxu1 %v9865_v42  ;;  %v8112_v23 = vrot.slane %v8107_v12, %v12745_v5 }
 0x685   : > { %8090 = vmatprep.subr.bf16.mxu1 %v9870_v18 }
 0x686   : > { %9254 = vmatpush3.bf16.msra.mxu0 %v9893_v48 }
 0x687   : > { %9255 = vmatprep.subr.bf16.mxu0 %v9894_v45 }
 0x688   : > { %8091 = vmatpush1.bf16.msra.mxu1 %v9868_v41 }
 0x689   : > { %8092 = vmatprep.subr.bf16.mxu1 %v9873_v62  ;;  %v12748_v62 = vld [vmem:[#allocation14_spill] sm:$0xff] }
 0x68a   : > { %9256 = vmatpush3.bf16.msra.mxu0 %v9895_v60 }
 0x68c   : > { %8093 = vmatpush1.bf16.msra.mxu1 %v9871_v26  ;;  %v8116_v26 = vrot.slane %v8107_v12, %v12748_v62 }
 0x68d   : > { %8094 = vmatprep.subr.bf16.mxu1 %v9876_v46 }
 0x690   : > { %8095 = vmatpush1.bf16.msra.mxu1 %v9874_v2 }
 0x691   : > { %8096 = vmatprep.subr.bf16.mxu1 %v9879_v50 }
 0x694   : > { %8097 = vmatpush1.bf16.msra.mxu1 %v9877_v3 }
 0x697   : > { %8984 = vmatmul.mubr.msk.bf16.vlgmr.msra.gmra.mrb[96].mxu1 %vm12422_vm15, %v8983_v54 }
 0x6aa   : > { %v7854_v29 = vpop.f32.mrb[84].mxu1 }
 0x6ab   : > { %v7855_v43 = vadd.f32 %v7854_v29, %v7814_v40  ;;  %v7856_v15 = vpop.f32.mrb[85].mxu1 }
 0x6ac   : > { %v7857_v49 = vadd.f32 %v7856_v15, %v7816_v16  ;;  %v7858_v7 = vpop.f32.mrb[86].mxu1 }
 0x6ad   : > { %v7859_v52 = vpop.f32.mrb[87].mxu1 }
 0x6ae   : > { %v8157_v52 = vld [vmem:[%s12637_s14] sm:$0x1] }
 0x6c0   : > { %v7895_v21 = vpop.f32.mrb[96].mxu0 }
 0x6c1   : > { %v7896_v0 = vadd.f32 %v7895_v21, %v7855_v43  ;;  %v7897_v59 = vpop.f32.mrb[97].mxu0 }
 0x6c2   : > { %v7898_v22 = vadd.f32 %v7897_v59, %v7857_v49  ;;  %v7899_v20 = vpop.f32.mrb[98].mxu0 }
 0x6c3   : > { %v7900_v31 = vpop.f32.mrb[99].mxu0 }
 0x6ea   : > { %v7936_v51 = vpop.f32.mrb[88].mxu1 }
 0x6eb   : > { %v7937_v28 = vadd.f32 %v7936_v51, %v7896_v0  ;;  %v7938_v17 = vpop.f32.mrb[89].mxu1 }
 0x6ec   : > { %v7939_v1 = vadd.f32 %v7938_v17, %v7898_v22  ;;  %v7940_v27 = vpop.f32.mrb[90].mxu1 }
 0x6ed   : > { %v7941_v36 = vpop.f32.mrb[91].mxu1 }
 0x700   : > { %v7977_v25 = vpop.f32.mrb[100].mxu0 }
 0x701   : > { %v7978_v61 = vadd.f32 %v7977_v25, %v7937_v28  ;;  %v7979_v63 = vpop.f32.mrb[101].mxu0 }
 0x702   : > { %v7980_v32 = vadd.f32 %v7979_v63, %v7939_v1  ;;  %v7981_v33 = vpop.f32.mrb[102].mxu0 }
 0x703   : > { %v7982_v57 = vpop.f32.mrb[103].mxu0 }
 0x72a   : > { %v8018_v34 = vpop.f32.mrb[92].mxu1 }
 0x72b   : > { %v8019_v9 = vadd.f32 %v8018_v34, %v7978_v61  ;;  %v8020_v13 = vpop.f32.mrb[93].mxu1 }
 0x72c   : > { %v8021_v8 = vadd.f32 %v8020_v13, %v7980_v32  ;;  %v8022_v38 = vpop.f32.mrb[94].mxu1 }
 0x72d   : > { %v8023_v30 = vpop.f32.mrb[95].mxu1 }
 0x740   : > { %v8059_v24 = vpop.f32.mrb[104].mxu0 }
 0x741   : > { %v8060_v42 = vadd.f32 %v8059_v24, %v8019_v9  ;;  %v8061_v40 = vpop.f32.mrb[105].mxu0 }
 0x742   : > { %v8062_v19 = vadd.f32 %v8061_v40, %v8021_v8  ;;  %v8063_v18 = vpop.f32.mrb[106].mxu0 }
 0x743   : > { %v8064_v16 = vpop.f32.mrb[107].mxu0 }
 0x76a   : > { %v8100_v41 = vpop.f32.mrb[96].mxu1 }
 0x76b   : > { %v8101_v46 = vadd.f32 %v8100_v41, %v8060_v42  ;;  %v8102_v2 = vpop.f32.mrb[97].mxu1 }
 0x76c   : > { %v8103_v50 = vadd.f32 %v8102_v2, %v8062_v19  ;;  %v8104_v3 = vpop.f32.mrb[98].mxu1 }
 0x76d   : > { %v8119_v6 = vadd.f32 %v8112_v23, %v8101_v46  ;;  %v8105_v54 = vpop.f32.mrb[99].mxu1 }
 0x76e   : > { %v8120_v29 = vadd.f32 %v8116_v26, %v8103_v50 }
 0x76f   : > { %v8121_v43 = vmax.f32 %v8119_v6, 0.0 }
 0x770   : > { %v8122_v15 = vmax.f32 %v8120_v29, 0.0 }
 0x771   : > { %v8123_v7 = vpack.c.bf16 %v8121_v43, %v8121_v43 }
 0x772   : > { %v8124_v49 = vpack.c.bf16 %v8122_v15, %v8122_v15 }
 0x774   : > { %8286 = vmatprep.mubr.bf16.mxu0 %v8124_v49 }
 0x775   : > { %8287 = vmatmul.mubr.bf16.vlgmr.msra.gmra.mrb[108].mxu0 %v8123_v7 }
 0x848   : > { %v9257_v5 = vpop.f32.mrb[108].mxu0 }
 0x849   : > { %v9258_v21 = vpop.f32.mrb[109].mxu0 }
 0x84a   : > { %v9259_v0 = vadd.f32 %v9258_v21, %v9257_v5  ;;  %v9260_v59 = vpop.f32.mrb[110].mxu0 }
 0x84b   : > { %v9261_v22 = vpop.f32.mrb[111].mxu0 }
 0x84c   : > { %v8289_v20 = vadd.f32 %v9259_v0, %v8157_v52 }
 0x84e   : > { %8295 = vst.msk [vmem:[%s512_s17] sm:$0x1] %vm8294_vm13, %v8289_v20 }
 0x84f   : > { %9937 = shalt.err (!%p9934_p7)
}
 0x850   : > { %s9938_s24 = scalar_lea.hbm %s12581_s16, 16  ;;  %s9942_s23 = scalar_lea.hbm %s12638_s15, 32 }
 0x851   : > { %p9939_p8 = scmp.ne.s32.totalorder %s12581_s16, %s9938_s24  ;;  %p9943_p1 = scmp.lt.u32.totalorder %s12581_s16, %s12638_s15 }
 0x852   : > { %p9944_p0 = scmp.lt.u32.totalorder %s9942_s23, %s9938_s24  ;;  %p9946_p6 = scmp.lt.u32.totalorder %s9938_s24, %s12581_s16 }
 0x853   : > { %p9940_p11 = pnand %p9939_p8, %p12749_p9 }
 0x854   : > { %p9945_p5 = por %p9944_p0, %p9943_p1 }
 0x855   : > { %p9941_p13 = pneg %p9940_p11 }
 0x856   : > { %p9947_p10 = por %p9946_p6, %p9945_p5 }
 0x858   : > { %p9948_p12 = pnand %p9947_p10, %p9941_p13 }
 0x85a   : > { %9951 = shalt.err (!%p9948_p12)
}
 0x85b   : > { %9360 = dma.vmem_to_hbm [thread:$0]  (%p12749_p9), %s12583_s30, 16, %s12581_s16, %s8297_s25  }
 0x85c PF: > { %s12750_s22 = sld [smem:[#allocation8_spill]]  ;;  %s12751_s27 = sld [smem:[#allocation12_spill]] }
 0x85d   : > { %p9372_p2 = scmp.ge.s32.totalorder %s9990_s21, 2 }
 0x862   : > { %s8321_s26 = sand.u32 1, %s12750_s22   ;;  %p12752_p3 = scmp.ne.s32.totalorder %s12751_s27, 0 }
 0x863   : > { %s8322_s29 = scalar_lea.sflag [#allocation4], %s8321_s26 }
 0x864   : > { %p9367_p4 = pnand %p9372_p2, %p12752_p3 }
 0x866   : > { %9973 = dma.done.wait (!%p9367_p4), %s8322_s29, 16  }
 0x867   : > { %9975 = vsyncadd (!%p9367_p4), %s8322_s29, 4294967280  ;;  %s12753_s21 = sld [smem:[#allocation10_spill]]  ;;  %s12754_s24 = sld [smem:[#allocation9_spill]] }
 0x868   : > { %s12755_s20 = sld [smem:[#allocation11_spill]]  ;;  %s12756_s18 = smov %s9982_s19 }
 0x86d   : > { %p26_p7 = scmp.ge.s32.totalorder %s12753_s21, 4   ;;  %s12757_s19 = smov %s12754_s24 }
 0x86f   :  { %28 = sbr.rel (!%p26_p7) target bundleno = 4 (0x4), region = 123 }
 0x876   :  { %8326 = vsyncpa [#allocation3], 1 }
 0x877   :  { %8328 = vsyncpa [#allocation3 + $0x1], 1 }
 0x878   :  { %8329 = vsyncpa [#allocation4], 1 }
 0x879   :  { %8331 = vsyncpa [#allocation4 + $0x1], 1 }

</bundles_post_ra>
